<compile_context>
chip_gen: v6e
topology: v6e:2x2x1
jax: 0.10.0
libtpu: 0.0.40
codegen_flags: <defaults>
</compile_context>

<pallas_src>
import jax
import jax.numpy as jnp
from jax.experimental import pallas as pl
from jax.experimental.pallas import tpu as pltpu

LANES = 128    # vreg lane width; batch rows packed per lane-dense flat row
MAX_TM = 1024  # max flat rows per grid step (~22 MiB double-buffered VMEM)


def _round_up(x: int, m: int) -> int:
    return ((x + m - 1) // m) * m


def linear_kernel(x_ref, w_ref, b_ref, o_ref):
    # x: (TM, 128*IN) f32; w: (128*IN, 128*OUT) block-diag f32; b: (1, 128*OUT).
    y = jnp.dot(x_ref[...], w_ref[...], preferred_element_type=jnp.float32)
    o_ref[...] = (y + b_ref[...]).astype(o_ref.dtype)


@jax.jit
def simple_net_forward(x, weight, bias):
    """x: (B, 10) f32; weight: (5, 10) f32 (PyTorch layout); bias: (5,) f32."""
    B, in_features = x.shape
    out_features = weight.shape[0]

    # --- Lane-densify (wrapper-side, cheap one-time ops under jit) ----------
    # Pack 128 batch rows per flat row so x / out use every lane of a vreg.
    Bp = _round_up(B, LANES)
    x_pad = jnp.pad(x, ((0, Bp - B), (0, 0))) if Bp != B else x
    n_rows = Bp // LANES
    k_dense = LANES * in_features          # 1280
    n_dense = LANES * out_features         # 640
    x_flat = x_pad.reshape(n_rows, k_dense)  # contiguous row-major reshape

    # Block-diagonal weight: 128 copies of W^T on the diagonal; bias tiled.
    w_bd = jnp.kron(jnp.eye(LANES, dtype=x.dtype), weight.T.astype(x.dtype))
    b_bd = jnp.tile(bias.astype(x.dtype), LANES).reshape(1, n_dense)

    # --- Tile selection ------------------------------------------------------
    if n_rows <= 8:
        tm = n_rows  # single full block (block dim == full array dim -> valid)
    else:
        # >= 2 grid steps so "parallel" can shard across v7x's 2 TensorCores;
        # rows a multiple of 8; capped by the VMEM-derived maximum.
        tm = min(MAX_TM, _round_up(pl.cdiv(n_rows, 2), 8))
    grid = (pl.cdiv(n_rows, tm),)

    # Double-buffered footprint + headroom.  v5e's default scoped VMEM is only
    # 16 MiB, so raise it explicitly; cap under v7x's 64 MiB physical.
    blk_bytes = tm * (k_dense + n_dense) * 4          # x + out, one buffer
    w_bytes = k_dense * n_dense * 4
    vmem_limit = min(max(2 * blk_bytes + 2 * w_bytes + (8 << 20), 32 << 20),
                     60 << 20)

    out_flat = pl.pallas_call(
        linear_kernel,
        out_shape=jax.ShapeDtypeStruct((n_rows, n_dense), x.dtype),
        grid_spec=pl.GridSpec(
            grid=grid,
            in_specs=[
                # x tiled over flat batch rows; weight/bias fetched once and
                # held resident (constant index_map).
                pl.BlockSpec((tm, k_dense), lambda i: (i, 0)),
                pl.BlockSpec((k_dense, n_dense), lambda i: (0, 0)),
                pl.BlockSpec((1, n_dense), lambda i: (0, 0)),
            ],
            out_specs=pl.BlockSpec((tm, n_dense), lambda i: (i, 0)),
        ),
        compiler_params=pltpu.CompilerParams(
            dimension_semantics=("parallel",),   # independent batch tiles
            vmem_limit_bytes=vmem_limit,
        ),
    )(x_flat, w_bd, b_bd)

    # Un-pack and drop padding rows before anything downstream reduces over B.
    return out_flat.reshape(Bp, out_features)[:B]


if __name__ == "__main__":
    key = jax.random.PRNGKey(0)
    kx, kw, kb, kx2 = jax.random.split(key, 4)

    B, IN, OUT = 8, 10, 5
    x = jax.random.normal(kx, (B, IN), dtype=jnp.float32)
    # Parameter shapes mirroring nn.Linear(10, 5): weight (5, 10), bias (5,).
    bound = 1.0 / (IN ** 0.5)
    weight = jax.random.uniform(kw, (OUT, IN), minval=-bound, maxval=bound,
                                dtype=jnp.float32)
    bias = jax.random.uniform(kb, (OUT,), minval=-bound, maxval=bound,
                              dtype=jnp.float32)

    out = simple_net_forward(x, weight, bias)
    jax.block_until_ready(out)
    ref = x @ weight.T + bias
    assert out.shape == (B, OUT)
    assert jnp.allclose(out, ref, atol=1e-5, rtol=1e-5)

    # Second check: batch not a multiple of 128 (exercises pad + slice path).
    B2 = 300
    x2 = jax.random.normal(kx2, (B2, IN), dtype=jnp.float32)
    out2 = simple_net_forward(x2, weight, bias)
    jax.block_until_ready(out2)
    ref2 = x2 @ weight.T + bias
    assert out2.shape == (B2, OUT)
    assert jnp.allclose(out2, ref2, atol=1e-5, rtol=1e-5)

    print("KERNEL_OK")
</pallas_src>

<mosaic_0001>
module attributes {stable_mosaic.version = 11 : i64} {
  func.func @linear_kernel(%arg0: i32, %arg1: memref<1x1280xf32, #tpu.memory_space<vmem>>, %arg2: memref<1280x640xf32, #tpu.memory_space<vmem>>, %arg3: memref<1x640xf32, #tpu.memory_space<vmem>>, %arg4: memref<1x640xf32, #tpu.memory_space<vmem>>) attributes {dimension_semantics = [#tpu.dimension_semantics<parallel>], iteration_bounds = array<i64: 1>, scalar_prefetch = 0 : i64, scratch_operands = 0 : i64, tpu.core_type = #tpu.core_type<tc>, window_params = [{transform_indices = @transform_0, window_bounds = array<i64: 1, 1280>}, {pipeline_mode = #tpu.pipeline_mode<synchronous>, transform_indices = @transform_1, window_bounds = array<i64: 1280, 640>}, {pipeline_mode = #tpu.pipeline_mode<synchronous>, transform_indices = @transform_2, window_bounds = array<i64: 1, 640>}, {transform_indices = @transform_3, window_bounds = array<i64: 1, 640>}]} {
    %c0 = arith.constant 0 : index
    %c0_0 = arith.constant 0 : index
    %0 = vector.load %arg1[%c0, %c0_0] : memref<1x1280xf32, #tpu.memory_space<vmem>>, vector<1x1280xf32>
    %c0_1 = arith.constant 0 : index
    %c0_2 = arith.constant 0 : index
    %1 = vector.load %arg2[%c0_1, %c0_2] : memref<1280x640xf32, #tpu.memory_space<vmem>>, vector<1280x640xf32>
    %cst = arith.constant dense<0.000000e+00> : vector<1x640xf32>
    %2 = tpu.matmul %0, %1, %cst {dimension_numbers = #tpu.dot_dimension_numbers<[1], [0], [0], [1], [0, 0, 1, 1], [], []>} : vector<1x1280xf32>, vector<1280x640xf32>, vector<1x640xf32> -> vector<1x640xf32>
    %c0_3 = arith.constant 0 : index
    %c0_4 = arith.constant 0 : index
    %3 = vector.load %arg3[%c0_3, %c0_4] : memref<1x640xf32, #tpu.memory_space<vmem>>, vector<1x640xf32>
    %4 = arith.addf %2, %3 : vector<1x640xf32>
    %c0_5 = arith.constant 0 : index
    %c0_6 = arith.constant 0 : index
    %5 = vector.load %arg4[%c0_5, %c0_6] : memref<1x640xf32, #tpu.memory_space<vmem>>, vector<1x640xf32>
    tpu.vector_store %arg4[%c0_5, %c0_6], %4 {strides = array<i32>} : memref<1x640xf32, #tpu.memory_space<vmem>>, vector<1x640xf32>,
    return
  }
  func.func @transform_0(%arg0: i32) -> (i32, i32) {
    %c0_i32 = arith.constant 0 : i32
    %c0_i32_0 = arith.constant 0 : i32
    return %arg0, %c0_i32 : i32, i32
  }
  func.func @transform_1(%arg0: i32) -> (i32, i32) {
    %c0_i32 = arith.constant 0 : i32
    %c0_i32_0 = arith.constant 0 : i32
    %c0_i32_1 = arith.constant 0 : i32
    return %c0_i32, %c0_i32_0 : i32, i32
  }
  func.func @transform_2(%arg0: i32) -> (i32, i32) {
    %c0_i32 = arith.constant 0 : i32
    %c0_i32_0 = arith.constant 0 : i32
    %c0_i32_1 = arith.constant 0 : i32
    return %c0_i32, %c0_i32_0 : i32, i32
  }
  func.func @transform_3(%arg0: i32) -> (i32, i32) {
    %c0_i32 = arith.constant 0 : i32
    %c0_i32_0 = arith.constant 0 : i32
    return %arg0, %c0_i32 : i32, i32
  }
}

</mosaic_0001>

<bundles_post_ra>
// kernel: tile.8
= control target key start
LH: loop header
LB: loop body
LE: loop exit
PB: predicated region body
PF: predicated region fallthrough
CT: control target
= control target key end

     0   :  { %s112_s0 = inlined_call_operand.vmem [shape: f32[5], index: 0, kind: input, shape index: {}]   ;;  %s113_s1 = inlined_call_operand.vmem [shape: f32[128,5], index: 1, kind: output, shape index: {}]  }
   0x1   :  { %v4_v0 = vld [vmem:[%s112_s0] ss:$0 sm:$0xff] }
   0x2   :  { %5 = vst [vmem:[%s113_s1] sm:$0xff] %v4_v0  ;;  %36 = vst [vmem:[%s113_s1 + $0x8] sm:$0xff] %v4_v0 }
   0x3   :  { %37 = vst [vmem:[%s113_s1 + $0x10] sm:$0xff] %v4_v0  ;;  %38 = vst [vmem:[%s113_s1 + $0x18] sm:$0xff] %v4_v0 }
   0x4   :  { %39 = vst [vmem:[%s113_s1 + $0x20] sm:$0xff] %v4_v0  ;;  %40 = vst [vmem:[%s113_s1 + $0x28] sm:$0xff] %v4_v0 }
   0x5   :  { %41 = vst [vmem:[%s113_s1 + $0x30] sm:$0xff] %v4_v0  ;;  %42 = vst [vmem:[%s113_s1 + $0x38] sm:$0xff] %v4_v0 }
   0x6   :  { %43 = vst [vmem:[%s113_s1 + $0x40] sm:$0xff] %v4_v0  ;;  %44 = vst [vmem:[%s113_s1 + $0x48] sm:$0xff] %v4_v0 }
   0x7   :  { %45 = vst [vmem:[%s113_s1 + $0x50] sm:$0xff] %v4_v0  ;;  %46 = vst [vmem:[%s113_s1 + $0x58] sm:$0xff] %v4_v0 }
   0x8   :  { %47 = vst [vmem:[%s113_s1 + $0x60] sm:$0xff] %v4_v0  ;;  %48 = vst [vmem:[%s113_s1 + $0x68] sm:$0xff] %v4_v0 }
   0x9   :  { %49 = vst [vmem:[%s113_s1 + $0x70] sm:$0xff] %v4_v0  ;;  %50 = vst [vmem:[%s113_s1 + $0x78] sm:$0xff] %v4_v0 }

// kernel: tile.9
= control target key start
LH: loop header
LB: loop body
LE: loop exit
PB: predicated region body
PF: predicated region fallthrough
CT: control target
= control target key end

     0   :  { %vm9_vm0 = vcmask 7168   ;;  %vm27_vm1 = vcmask 23552   ;;  %s1197_s14 = smov 127   ;;  %vm23_vm2 = vcmask 15360   ;;  %s1198_s19 = smov 125   ;;  %vm13_vm3 = vcmask 31744   ;;  %s1753_s0 = inlined_call_operand.vmem [shape: f32[128,5], index: 0, kind: input, shape index: {}]   ;;  %s1754_s1 = inlined_call_operand.vmem [shape: f32[1,640], index: 1, kind: output, shape index: {}]  }
   0x1   :  { %v935_v0 = vld [vmem:[%s1753_s0 + $0x33] sm:$0x1]   ;;  %v939_v3 = vld [vmem:[%s1753_s0 + $0x19] sm:$0x1]   ;;  %v937_v6 = vld [vmem:[%s1753_s0 + $0x66] sm:$0x1]  }
   0x2   :  { %v936_v1 = vld [vmem:[%s1753_s0 + $0x33] sm:$0x1]   ;;  %v940_v4 = vld [vmem:[%s1753_s0 + $0x19] sm:$0x1]   ;;  %v938_v7 = vld [vmem:[%s1753_s0 + $0x66] sm:$0x1]  }
   0x3   :  { %v10_v2 = vsel %vm9_vm0, %v936_v1, %v935_v0  ;;  %v38_v5 = vsel %vm27_vm1, %v940_v4, %v939_v3  ;;  %v24_v8 = vsel %vm23_vm2, %v938_v7, %v937_v6  ;;  %v941_v9 = vld [vmem:[%s1753_s0 + $0x4c] sm:$0x1]   ;;  %s1199_s24 = smov 126   ;;  %s1200_s25 = smov 124   ;;  %v943_v12 = vld [vmem:[%s1753_s0 + $0x7f] sm:$0x1]  }
   0x4   :  { %11 = vrot.lane.b32.xlu0 %v10_v2, %s1197_s14  ;;  %39 = vrot.lane.b32.xlu1 %v38_v5, %s1198_s19  ;;  %v942_v10 = vld [vmem:[%s1753_s0 + $0x4c] sm:$0x1]   ;;  %v944_v13 = vld [vmem:[%s1753_s0 + $0x32] sm:$0x1]   ;;  %s1201_s30 = smov 123   ;;  %s1202_s2 = smov 122  }
   0x5   :  { %v51_v11 = vsel %vm13_vm3, %v942_v10, %v941_v9  ;;  %v945_v14 = vld [vmem:[%s1753_s0 + $0x65] sm:$0x1]   ;;  %v946_v15 = vld [vmem:[%s1753_s0 + $0x18] sm:$0x1]   ;;  %s1203_s7 = smov 121   ;;  %s1204_s8 = smov 120  }
   0x6   :  { %v947_v16 = vld [vmem:[%s1753_s0 + $0x4b] sm:$0x1]   ;;  %v948_v17 = vld [vmem:[%s1753_s0 + $0x7e] sm:$0x1]   ;;  %s1205_s13 = smov 119   ;;  %s1206_s14 = smov 118  }
   0x7   :  { %v949_v18 = vld [vmem:[%s1753_s0 + $0x31] sm:$0x1]   ;;  %v950_v19 = vld [vmem:[%s1753_s0 + $0x64] sm:$0x1]   ;;  %s1207_s19 = smov 117   ;;  %s1208_s20 = smov 116  }
   0x8   :  { %25 = vrot.lane.b32.xlu0 %v24_v8, %s1199_s24  ;;  %52 = vrot.lane.b32.xlu1 %v51_v11, %s1200_s25  ;;  %v951_v20 = vld [vmem:[%s1753_s0 + $0x17] sm:$0x1]   ;;  %v952_v21 = vld [vmem:[%s1753_s0 + $0x4a] sm:$0x1]   ;;  %s1209_s25 = smov 115   ;;  %s1210_s26 = smov 114  }
   0x9   :  { %v953_v22 = vld [vmem:[%s1753_s0 + $0x7d] sm:$0x1]   ;;  %v954_v23 = vld [vmem:[%s1753_s0 + $0x30] sm:$0x1]   ;;  %s1212_s3 = smov 112   ;;  %vm3_vm4 = vcmask 39936  }
   0xa   :  { %v955_v24 = vld [vmem:[%s1753_s0 + $0x63] sm:$0x1]   ;;  %v956_v25 = vld [vmem:[%s1753_s0 + $0x16] sm:$0x1]   ;;  %v2_v26 = vld [vmem:[%s1753_s0] sm:$0x1]  }
   0xb   :  { %4 = vst.msk [vmem:[#allocation0] sm:$0x1] %vm3_vm4, %v2_v26   ;;  %s1213_s10 = smov 111   ;;  %s1214_s11 = smov 110   ;;  %v957_v27 = vld [vmem:[%s1753_s0 + $0x49] sm:$0x1]  }
   0xc   :  { %62 = vrot.lane.b32.xlu0 %v943_v12, %s1201_s30  ;;  %69 = vrot.lane.b32.xlu1 %v944_v13, %s1202_s2  ;;  %s1211_s2 = smov 113   ;;  %v958_v28 = vld [vmem:[%s1753_s0 + $0x7c] sm:$0x1]   ;;  %s1215_s16 = smov 109   ;;  %v959_v29 = vld [vmem:[%s1753_s0 + $0x2f] sm:$0x1]  }
   0xd   :  { %s1216_s17 = smov 108   ;;  %v960_v30 = vld [vmem:[%s1753_s0 + $0x62] sm:$0x1]   ;;  %s1217_s22 = smov 107   ;;  %v961_v31 = vld [vmem:[%s1753_s0 + $0x15] sm:$0x1]  }
   0xe   :  { %s1218_s23 = smov 106   ;;  %v962_v32 = vld [vmem:[%s1753_s0 + $0x48] sm:$0x1]   ;;  %s1219_s28 = smov 105   ;;  %v963_v33 = vld [vmem:[%s1753_s0 + $0x7b] sm:$0x1]  }
   0xf   :  { %s1220_s29 = smov 104   ;;  %v964_v34 = vld [vmem:[%s1753_s0 + $0x2e] sm:$0x1]   ;;  %s1221_s5 = smov 103   ;;  %v965_v35 = vld [vmem:[%s1753_s0 + $0x61] sm:$0x1]  }
  0x10   :  { %76 = vrot.lane.b32.xlu0 %v945_v14, %s1203_s7  ;;  %83 = vrot.lane.b32.xlu1 %v946_v15, %s1204_s8  ;;  %s1222_s6 = smov 102   ;;  %v966_v36 = vld [vmem:[%s1753_s0 + $0x14] sm:$0x1]   ;;  %s1224_s12 = smov 100   ;;  %v967_v37 = vld [vmem:[%s1753_s0 + $0x47] sm:$0x1]  }
  0x11   :  { %v968_v38 = vld [vmem:[%s1753_s0 + $0x7a] sm:$0x1]   ;;  %s1226_s18 = smov 98   ;;  %v969_v39 = vld [vmem:[%s1753_s0 + $0x2d] sm:$0x1]   ;;  %s1228_s24 = smov 96  }
  0x12   :  { %v970_v40 = vld [vmem:[%s1753_s0 + $0x60] sm:$0x1]   ;;  %v971_v41 = vld [vmem:[%s1753_s0 + $0x13] sm:$0x1]   ;;  %v972_v42 = vld [vmem:[%s1753_s0 + $0x46] sm:$0x1]  }
  0x13   :  { %s1230_s30 = smov 94   ;;  %v973_v43 = vld [vmem:[%s1753_s0 + $0x79] sm:$0x1]   ;;  %v974_v44 = vld [vmem:[%s1753_s0 + $0x2c] sm:$0x1]   ;;  %s1232_s7 = smov 92  }
  0x14   :  { %89 = vrot.lane.b32.xlu0 %v947_v16, %s1205_s13  ;;  %96 = vrot.lane.b32.xlu1 %v948_v17, %s1206_s14  ;;  %v975_v45 = vld [vmem:[%s1753_s0 + $0x5f] sm:$0x1]   ;;  %v976_v46 = vld [vmem:[%s1753_s0 + $0x12] sm:$0x1]   ;;  %s1234_s13 = smov 90   ;;  %s1242_s8 = smov 82  }
  0x15   :  { %v977_v47 = vld [vmem:[%s1753_s0 + $0x45] sm:$0x1]   ;;  %v978_v48 = vld [vmem:[%s1753_s0 + $0x78] sm:$0x1]   ;;  %v979_v49 = vld [vmem:[%s1753_s0 + $0x2b] sm:$0x1]  }
  0x16   :  { %v980_v50 = vld [vmem:[%s1753_s0 + $0x5e] sm:$0x1]   ;;  %v981_v51 = vld [vmem:[%s1753_s0 + $0x11] sm:$0x1]   ;;  %v982_v52 = vld [vmem:[%s1753_s0 + $0x44] sm:$0x1]  }
  0x17   :  { %v983_v53 = vld [vmem:[%s1753_s0 + $0x77] sm:$0x1]   ;;  %v984_v54 = vld [vmem:[%s1753_s0 + $0x2a] sm:$0x1]   ;;  %v985_v55 = vld [vmem:[%s1753_s0 + $0x5d] sm:$0x1]  }
  0x18   :  { %103 = vrot.lane.b32.xlu0 %v949_v18, %s1207_s19  ;;  %110 = vrot.lane.b32.xlu1 %v950_v19, %s1208_s20  ;;  %s1236_s19 = smov 88   ;;  %v986_v56 = vld [vmem:[%s1753_s0 + $0x10] sm:$0x1]   ;;  %s1244_s14 = smov 80   ;;  %v987_v57 = vld [vmem:[%s1753_s0 + $0x43] sm:$0x1]  }
  0x19   :  { %v988_v58 = vld [vmem:[%s1753_s0 + $0x76] sm:$0x1]   ;;  %s1246_s20 = smov 78   ;;  %v989_v59 = vld [vmem:[%s1753_s0 + $0x29] sm:$0x1]   ;;  %s1252_s9 = smov 72  }
  0x1a   :  { %v990_v60 = vld [vmem:[%s1753_s0 + $0x5c] sm:$0x1]   ;;  %v991_v61 = vld [vmem:[%s1753_s0 + $0xf] sm:$0x1]   ;;  %v992_v62 = vld [vmem:[%s1753_s0 + $0x42] sm:$0x1]  }
  0x1b   :  { %v993_v63 = vld [vmem:[%s1753_s0 + $0x75] sm:$0x1]   ;;  %v994_v0 = vld [vmem:[%s1753_s0 + $0x28] sm:$0x1]   ;;  %v995_v1 = vld [vmem:[%s1753_s0 + $0x5b] sm:$0x1]  }
  0x1c   :  { %117 = vrot.lane.b32.xlu0 %v951_v20, %s1209_s25  ;;  %123 = vrot.lane.b32.xlu1 %v952_v21, %s1210_s26  ;;  %s1238_s25 = smov 86   ;;  %s1248_s26 = smov 76   ;;  %v996_v2 = vld [vmem:[%s1753_s0 + $0xe] sm:$0x1]   ;;  %vm16_vm5 = vcmask 1048568   ;;  %vm44_vm6 = vcmask 1048552  }
  0x1d   :  { %s1254_s15 = smov 70   ;;  %v997_v3 = vld [vmem:[%s1753_s0 + $0x41] sm:$0x1]   ;;  %v998_v5 = vld [vmem:[%s1753_s0 + $0x74] sm:$0x1]   ;;  %vm30_vm7 = vcmask 1048560  }
  0x1e   :  { %s1256_s21 = smov 68   ;;  %v999_v7 = vld [vmem:[%s1753_s0 + $0x27] sm:$0x1]   ;;  %vm57_vm8 = vcmask 1048544   ;;  %v1000_v9 = vld [vmem:[%s1753_s0 + $0x5a] sm:$0x1]  }
  0x1f   :  { %vm64_vm9 = vcmask 1048536   ;;  %s1258_s27 = smov 66   ;;  %v1001_v11 = vld [vmem:[%s1753_s0 + $0xd] sm:$0x1]   ;;  %vm71_vm10 = vcmask 1040336   ;;  %vm78_vm11 = vcmask 1032136  }
  0x20   :  { %130 = vrot.lane.b32.xlu0 %v953_v22, %s1211_s2  ;;  %137 = vrot.lane.b32.xlu1 %v954_v23, %s1212_s3  ;;  %s1240_s2 = smov 84   ;;  %s1250_s3 = smov 74   ;;  %v1002_v13 = vld [vmem:[%s1753_s0 + $0x40] sm:$0x1]   ;;  %v1003_v15 = vld [vmem:[%s1753_s0 + $0x73] sm:$0x1]  }
  0x21   :  { %s1260_s4 = smov 64   ;;  %vm85_vm12 = vcmask 1023936   ;;  %v1004_v17 = vld [vmem:[%s1753_s0 + $0x26] sm:$0x1]   ;;  %vm91_vm13 = vcmask 1015736   ;;  %vm98_vm14 = vcmask 1007536  }
  0x22   :  { %v1005_v19 = vld [vmem:[%s1753_s0 + $0x59] sm:$0x1]   ;;  %v1006_v21 = vld [vmem:[%s1753_s0 + $0xc] sm:$0x1]   ;;  %vm105_vm15 = vcmask 999336   ;;  %vm139_vm4 = vcmask 958336  }
  0x23   :  { %v1007_v23 = vld [vmem:[%s1753_s0 + $0x3f] sm:$0x1]  }
  0x24   :  { %144 = vrot.lane.b32.xlu0 %v955_v24, %s1213_s10  ;;  %151 = vrot.lane.b32.xlu1 %v956_v25, %s1214_s11  ;;  %s1223_s11 = smov 101   ;;  %s1262_s10 = smov 62   ;;  %v1008_v25 = vld [vmem:[%s1753_s0 + $0x72] sm:$0x1]  }
  0x28   :  { %157 = vrot.lane.b32.xlu0 %v957_v27, %s1215_s16  ;;  %164 = vrot.lane.b32.xlu1 %v958_v28, %s1216_s17  ;;  %s1225_s17 = smov 99   ;;  %s1264_s16 = smov 60   ;;  %v1009_v27 = vld [vmem:[%s1753_s0 + $0x25] sm:$0x1]  }
  0x2c   :  { %171 = vrot.lane.b32.xlu0 %v959_v29, %s1217_s22  ;;  %178 = vrot.lane.b32.xlu1 %v960_v30, %s1218_s23  ;;  %s1227_s23 = smov 97   ;;  %s1266_s22 = smov 58   ;;  %v1010_v29 = vld [vmem:[%s1753_s0 + $0x58] sm:$0x1]  }
  0x30   :  { %185 = vrot.lane.b32.xlu0 %v961_v31, %s1219_s28  ;;  %191 = vrot.lane.b32.xlu1 %v962_v32, %s1220_s29  ;;  %s1229_s29 = smov 95   ;;  %s1268_s28 = smov 56   ;;  %v1011_v31 = vld [vmem:[%s1753_s0 + $0xb] sm:$0x1]  }
  0x34   :  { %198 = vrot.lane.b32.xlu0 %v963_v33, %s1221_s5  ;;  %205 = vrot.lane.b32.xlu1 %v964_v34, %s1222_s6  ;;  %s1231_s6 = smov 93   ;;  %v1012_v33 = vld [vmem:[%s1753_s0 + $0x3e] sm:$0x1]   ;;  %s1270_s5 = smov 54  }
  0x38   :  { %212 = vrot.lane.b32.xlu0 %v965_v35, %s1223_s11  ;;  %219 = vrot.lane.b32.xlu1 %v966_v36, %s1224_s12  ;;  %s1233_s12 = smov 91   ;;  %v1013_v35 = vld [vmem:[%s1753_s0 + $0x71] sm:$0x1]   ;;  %s1272_s11 = smov 52  }
  0x3c   :  { %225 = vrot.lane.b32.xlu0 %v967_v37, %s1225_s17  ;;  %232 = vrot.lane.b32.xlu1 %v968_v38, %s1226_s18  ;;  %s1235_s18 = smov 89   ;;  %v1014_v37 = vld [vmem:[%s1753_s0 + $0x24] sm:$0x1]   ;;  %s1274_s17 = smov 50  }
  0x40   :  { %239 = vrot.lane.b32.xlu0 %v969_v39, %s1227_s23  ;;  %246 = vrot.lane.b32.xlu1 %v970_v40, %s1228_s24  ;;  %s1237_s24 = smov 87   ;;  %v1015_v39 = vld [vmem:[%s1753_s0 + $0x57] sm:$0x1]   ;;  %s1276_s23 = smov 48  }
  0x44   :  { %253 = vrot.lane.b32.xlu0 %v971_v41, %s1229_s29  ;;  %259 = vrot.lane.b32.xlu1 %v972_v42, %s1230_s30  ;;  %s1239_s30 = smov 85   ;;  %v1016_v41 = vld [vmem:[%s1753_s0 + $0xa] sm:$0x1]   ;;  %s1278_s29 = smov 46  }
  0x48   :  { %266 = vrot.lane.b32.xlu0 %v973_v43, %s1231_s6  ;;  %273 = vrot.lane.b32.xlu1 %v974_v44, %s1232_s7  ;;  %s1241_s7 = smov 83   ;;  %v1017_v43 = vld [vmem:[%s1753_s0 + $0x3d] sm:$0x1]   ;;  %s1280_s6 = smov 44  }
  0x4c   :  { %280 = vrot.lane.b32.xlu0 %v975_v45, %s1233_s12  ;;  %287 = vrot.lane.b32.xlu1 %v976_v46, %s1234_s13  ;;  %s1243_s13 = smov 81   ;;  %v1018_v45 = vld [vmem:[%s1753_s0 + $0x70] sm:$0x1]   ;;  %s1282_s12 = smov 42  }
  0x50   :  { %293 = vrot.lane.b32.xlu0 %v977_v47, %s1235_s18  ;;  %300 = vrot.lane.b32.xlu1 %v978_v48, %s1236_s19  ;;  %s1245_s19 = smov 79   ;;  %v1019_v47 = vld [vmem:[%s1753_s0 + $0x23] sm:$0x1]   ;;  %s1284_s18 = smov 40  }
  0x54   :  { %307 = vrot.lane.b32.xlu0 %v979_v49, %s1237_s24  ;;  %314 = vrot.lane.b32.xlu1 %v980_v50, %s1238_s25  ;;  %s1247_s25 = smov 77   ;;  %v1020_v49 = vld [vmem:[%s1753_s0 + $0x56] sm:$0x1]   ;;  %s1286_s24 = smov 38  }
  0x58   :  { %321 = vrot.lane.b32.xlu0 %v981_v51, %s1239_s30  ;;  %327 = vrot.lane.b32.xlu1 %v982_v52, %s1240_s2  ;;  %s1249_s2 = smov 75   ;;  %v1021_v51 = vld [vmem:[%s1753_s0 + $0x9] sm:$0x1]   ;;  %s1288_s30 = smov 36  }
  0x5c   :  { %334 = vrot.lane.b32.xlu0 %v983_v53, %s1241_s7  ;;  %341 = vrot.lane.b32.xlu1 %v984_v54, %s1242_s8  ;;  %s1251_s8 = smov 73   ;;  %v1022_v53 = vld [vmem:[%s1753_s0 + $0x3c] sm:$0x1]   ;;  %s1290_s7 = smov 34  }
  0x60   :  { %348 = vrot.lane.b32.xlu0 %v985_v55, %s1243_s13  ;;  %355 = vrot.lane.b32.xlu1 %v986_v56, %s1244_s14  ;;  %s1253_s14 = smov 71   ;;  %v1023_v55 = vld [vmem:[%s1753_s0 + $0x6f] sm:$0x1]   ;;  %s1292_s13 = smov 32  }
  0x64   :  { %361 = vrot.lane.b32.xlu0 %v987_v57, %s1245_s19  ;;  %368 = vrot.lane.b32.xlu1 %v988_v58, %s1246_s20  ;;  %s1255_s20 = smov 69   ;;  %v1024_v57 = vld [vmem:[%s1753_s0 + $0x22] sm:$0x1]   ;;  %s1294_s19 = smov 30  }
  0x68   :  { %375 = vrot.lane.b32.xlu0 %v989_v59, %s1247_s25  ;;  %382 = vrot.lane.b32.xlu1 %v990_v60, %s1248_s26  ;;  %s1257_s26 = smov 67   ;;  %v1025_v59 = vld [vmem:[%s1753_s0 + $0x55] sm:$0x1]   ;;  %s1296_s25 = smov 28  }
  0x6c   :  { %389 = vrot.lane.b32.xlu0 %v991_v61, %s1249_s2  ;;  %395 = vrot.lane.b32.xlu1 %v992_v62, %s1250_s3  ;;  %s1259_s3 = smov 65   ;;  %v1026_v61 = vld [vmem:[%s1753_s0 + $0x8] sm:$0x1]   ;;  %s1298_s2 = smov 26  }
  0x70   :  { %402 = vrot.lane.b32.xlu0 %v993_v63, %s1251_s8  ;;  %409 = vrot.lane.b32.xlu1 %v994_v0, %s1252_s9  ;;  %s1261_s9 = smov 63   ;;  %v1027_v63 = vld [vmem:[%s1753_s0 + $0x3b] sm:$0x1]   ;;  %s1300_s8 = smov 24  }
  0x74   :  { %416 = vrot.lane.b32.xlu0 %v995_v1, %s1253_s14  ;;  %423 = vrot.lane.b32.xlu1 %v996_v2, %s1254_s15  ;;  %s1263_s15 = smov 61   ;;  %v1028_v1 = vld [vmem:[%s1753_s0 + $0x6e] sm:$0x1]   ;;  %s1302_s14 = smov 22  }
  0x76   :  { %v12_v4 = vpop.permute.xlu0 %11   ;;  %v40_v6 = vpop.permute.xlu1 %39  }
  0x77   :  { %15 = vst.msk [vmem:[#allocation0 + $0x10] sm:$0x1] %vm13_vm3, %v12_v4   ;;  %vm132_vm3 = vcmask 966536  }
  0x78   :  { %18 = vst.msk [vmem:[#allocation0 + $0x8] sm:$0x1] %vm16_vm5, %v12_v4   ;;  %429 = vrot.lane.b32.xlu0 %v997_v3, %s1255_s20  ;;  %436 = vrot.lane.b32.xlu1 %v998_v5, %s1256_s21  ;;  %s1265_s21 = smov 59   ;;  %vm146_vm5 = vcmask 950136   ;;  %v1029_v3 = vld [vmem:[%s1753_s0 + $0x21] sm:$0x1]  }
  0x79   :  { %43 = vst.msk [vmem:[#allocation0 + $0x8] sm:$0x1] %vm23_vm2, %v40_v6   ;;  %vm125_vm2 = vcmask 974736   ;;  %v1030_v5 = vld [vmem:[%s1753_s0 + $0x54] sm:$0x1]   ;;  %s1304_s20 = smov 20  }
  0x7a   :  { %45 = vst.msk [vmem:[#allocation0] sm:$0x1] %vm44_vm6, %v40_v6   ;;  %v26_v8 = vpop.permute.xlu0 %25   ;;  %v53_v10 = vpop.permute.xlu1 %52   ;;  %vm153_vm6 = vcmask 941936  }
  0x7b   :  { %29 = vst.msk [vmem:[#allocation0 + $0x20] sm:$0x1] %vm27_vm1, %v26_v8   ;;  %vm119_vm1 = vcmask 982936  }
  0x7c   :  { %32 = vst.msk [vmem:[#allocation0 + $0x18] sm:$0x1] %vm30_vm7, %v26_v8   ;;  %443 = vrot.lane.b32.xlu0 %v999_v7, %s1257_s26  ;;  %450 = vrot.lane.b32.xlu1 %v1000_v9, %s1258_s27  ;;  %s1267_s27 = smov 57   ;;  %vm159_vm7 = vcmask 933736   ;;  %v1031_v7 = vld [vmem:[%s1753_s0 + $0x7] sm:$0x1]  }
  0x7d   :  { %56 = vst.msk [vmem:[#allocation0 + $0x18] sm:$0x1] %vm9_vm0, %v53_v10   ;;  %vm112_vm0 = vcmask 991136   ;;  %v1032_v9 = vld [vmem:[%s1753_s0 + $0x3a] sm:$0x1]   ;;  %s1306_s26 = smov 18  }
  0x7e   :  { %59 = vst.msk [vmem:[#allocation0 + $0x10] sm:$0x1] %vm57_vm8, %v53_v10   ;;  %v63_v12 = vpop.permute.xlu0 %62   ;;  %v70_v14 = vpop.permute.xlu1 %69   ;;  %vm166_vm8 = vcmask 925536  }
  0x7f   :  { %66 = vst.msk [vmem:[#allocation0 + $0x20] sm:$0x1] %vm64_vm9, %v63_v12   ;;  %vm173_vm9 = vcmask 917336  }
  0x80   :  { %457 = vrot.lane.b32.xlu0 %v1001_v11, %s1259_s3  ;;  %73 = vst.msk [vmem:[#allocation0 + $0x8] sm:$0x1] %vm71_vm10, %v70_v14   ;;  %463 = vrot.lane.b32.xlu1 %v1002_v13, %s1260_s4  ;;  %s1269_s4 = smov 55   ;;  %vm180_vm10 = vcmask 909136   ;;  %v1033_v11 = vld [vmem:[%s1753_s0 + $0x6d] sm:$0x1]  }
  0x81   :  { %v1034_v13 = vld [vmem:[%s1753_s0 + $0x20] sm:$0x1]   ;;  %s1308_s3 = smov 16  }
  0x82   :  { %v77_v16 = vpop.permute.xlu0 %76   ;;  %v84_v18 = vpop.permute.xlu1 %83  }
  0x83   :  { %80 = vst.msk [vmem:[#allocation0 + $0x18] sm:$0x1] %vm78_vm11, %v77_v16   ;;  %vm187_vm11 = vcmask 900936  }
  0x84   :  { %470 = vrot.lane.b32.xlu0 %v1003_v15, %s1261_s9  ;;  %86 = vst.msk [vmem:[#allocation0] sm:$0x1] %vm85_vm12, %v84_v18   ;;  %477 = vrot.lane.b32.xlu1 %v1004_v17, %s1262_s10  ;;  %s1271_s10 = smov 53   ;;  %vm193_vm12 = vcmask 892736   ;;  %v1035_v15 = vld [vmem:[%s1753_s0 + $0x53] sm:$0x1]  }
  0x85   :  { %v1036_v17 = vld [vmem:[%s1753_s0 + $0x6] sm:$0x1]   ;;  %s1310_s9 = smov 14  }
  0x86   :  { %v90_v20 = vpop.permute.xlu0 %89   ;;  %v97_v22 = vpop.permute.xlu1 %96  }
  0x87   :  { %93 = vst.msk [vmem:[#allocation0 + $0x10] sm:$0x1] %vm91_vm13, %v90_v20   ;;  %vm200_vm13 = vcmask 884536  }
  0x88   :  { %484 = vrot.lane.b32.xlu0 %v1005_v19, %s1263_s15  ;;  %100 = vst.msk [vmem:[#allocation0 + $0x20] sm:$0x1] %vm98_vm14, %v97_v22   ;;  %491 = vrot.lane.b32.xlu1 %v1006_v21, %s1264_s16  ;;  %s1273_s16 = smov 51   ;;  %vm207_vm14 = vcmask 876336   ;;  %v1037_v19 = vld [vmem:[%s1753_s0 + $0x39] sm:$0x1]  }
  0x89   :  { %v1038_v21 = vld [vmem:[%s1753_s0 + $0x6c] sm:$0x1]   ;;  %s1312_s15 = smov 12  }
  0x8a   :  { %v104_v24 = vpop.permute.xlu0 %103   ;;  %v111_v26 = vpop.permute.xlu1 %110  }
  0x8b   :  { %107 = vst.msk [vmem:[#allocation0 + $0x8] sm:$0x1] %vm105_vm15, %v104_v24   ;;  %vm214_vm15 = vcmask 868136  }
  0x8c   :  { %497 = vrot.lane.b32.xlu0 %v1007_v23, %s1265_s21  ;;  %114 = vst.msk [vmem:[#allocation0 + $0x18] sm:$0x1] %vm112_vm0, %v111_v26   ;;  %504 = vrot.lane.b32.xlu1 %v1008_v25, %s1266_s22  ;;  %s1275_s22 = smov 49   ;;  %vm221_vm0 = vcmask 859936   ;;  %v1039_v23 = vld [vmem:[%s1753_s0 + $0x1f] sm:$0x1]  }
  0x8d   :  { %v1040_v25 = vld [vmem:[%s1753_s0 + $0x52] sm:$0x1]   ;;  %s1314_s21 = smov 10  }
  0x8e   :  { %v118_v28 = vpop.permute.xlu0 %117   ;;  %v124_v30 = vpop.permute.xlu1 %123  }
  0x8f   :  { %120 = vst.msk [vmem:[#allocation0] sm:$0x1] %vm119_vm1, %v118_v28   ;;  %vm227_vm1 = vcmask 851736  }
  0x90   :  { %511 = vrot.lane.b32.xlu0 %v1009_v27, %s1267_s27  ;;  %127 = vst.msk [vmem:[#allocation0 + $0x10] sm:$0x1] %vm125_vm2, %v124_v30   ;;  %518 = vrot.lane.b32.xlu1 %v1010_v29, %s1268_s28  ;;  %s1277_s28 = smov 47   ;;  %vm234_vm2 = vcmask 843536   ;;  %v1041_v27 = vld [vmem:[%s1753_s0 + $0x5] sm:$0x1]  }
  0x91   :  { %v1042_v29 = vld [vmem:[%s1753_s0 + $0x38] sm:$0x1]   ;;  %s1316_s27 = smov 8  }
  0x92   :  { %v131_v32 = vpop.permute.xlu0 %130   ;;  %v138_v34 = vpop.permute.xlu1 %137  }
  0x93   :  { %134 = vst.msk [vmem:[#allocation0 + $0x20] sm:$0x1] %vm132_vm3, %v131_v32   ;;  %vm241_vm3 = vcmask 835336  }
  0x94   :  { %525 = vrot.lane.b32.xlu0 %v1011_v31, %s1269_s4  ;;  %141 = vst.msk [vmem:[#allocation0 + $0x8] sm:$0x1] %vm139_vm4, %v138_v34   ;;  %531 = vrot.lane.b32.xlu1 %v1012_v33, %s1270_s5  ;;  %s1279_s5 = smov 45   ;;  %vm248_vm4 = vcmask 827136   ;;  %v1043_v31 = vld [vmem:[%s1753_s0 + $0x6b] sm:$0x1]  }
  0x95   :  { %v1044_v33 = vld [vmem:[%s1753_s0 + $0x1e] sm:$0x1]   ;;  %s1318_s4 = smov 6  }
  0x96   :  { %v145_v36 = vpop.permute.xlu0 %144   ;;  %v152_v38 = vpop.permute.xlu1 %151  }
  0x97   :  { %148 = vst.msk [vmem:[#allocation0 + $0x18] sm:$0x1] %vm146_vm5, %v145_v36   ;;  %vm255_vm5 = vcmask 818936  }
  0x98   :  { %538 = vrot.lane.b32.xlu0 %v1013_v35, %s1271_s10  ;;  %154 = vst.msk [vmem:[#allocation0] sm:$0x1] %vm153_vm6, %v152_v38   ;;  %545 = vrot.lane.b32.xlu1 %v1014_v37, %s1272_s11  ;;  %s1281_s11 = smov 43   ;;  %vm261_vm6 = vcmask 810736   ;;  %v1045_v35 = vld [vmem:[%s1753_s0 + $0x51] sm:$0x1]  }
  0x99   :  { %v1046_v37 = vld [vmem:[%s1753_s0 + $0x4] sm:$0x1]   ;;  %s1320_s10 = smov 4  }
  0x9a   :  { %v158_v40 = vpop.permute.xlu0 %157   ;;  %v165_v42 = vpop.permute.xlu1 %164  }
  0x9b   :  { %161 = vst.msk [vmem:[#allocation0 + $0x10] sm:$0x1] %vm159_vm7, %v158_v40   ;;  %vm268_vm7 = vcmask 802536  }
  0x9c   :  { %552 = vrot.lane.b32.xlu0 %v1015_v39, %s1273_s16  ;;  %168 = vst.msk [vmem:[#allocation0 + $0x20] sm:$0x1] %vm166_vm8, %v165_v42   ;;  %559 = vrot.lane.b32.xlu1 %v1016_v41, %s1274_s17  ;;  %s1283_s17 = smov 41   ;;  %vm275_vm8 = vcmask 794336   ;;  %v1047_v39 = vld [vmem:[%s1753_s0 + $0x37] sm:$0x1]  }
  0x9d   :  { %v1048_v41 = vld [vmem:[%s1753_s0 + $0x6a] sm:$0x1]   ;;  %s1322_s16 = smov 2  }
  0x9e   :  { %v172_v44 = vpop.permute.xlu0 %171   ;;  %v179_v46 = vpop.permute.xlu1 %178  }
  0x9f   :  { %175 = vst.msk [vmem:[#allocation0 + $0x8] sm:$0x1] %vm173_vm9, %v172_v44   ;;  %vm282_vm9 = vcmask 786136  }
  0xa0   :  { %565 = vrot.lane.b32.xlu0 %v1017_v43, %s1275_s22  ;;  %182 = vst.msk [vmem:[#allocation0 + $0x18] sm:$0x1] %vm180_vm10, %v179_v46   ;;  %572 = vrot.lane.b32.xlu1 %v1018_v45, %s1276_s23  ;;  %s1285_s23 = smov 39   ;;  %vm289_vm10 = vcmask 777936   ;;  %v1049_v43 = vld [vmem:[%s1753_s0 + $0x1d] sm:$0x1]  }
  0xa1   :  { %v1050_v45 = vld [vmem:[%s1753_s0 + $0x50] sm:$0x1]  }
  0xa2   :  { %v186_v48 = vpop.permute.xlu0 %185   ;;  %v192_v50 = vpop.permute.xlu1 %191  }
  0xa3   :  { %188 = vst.msk [vmem:[#allocation0] sm:$0x1] %vm187_vm11, %v186_v48   ;;  %vm295_vm11 = vcmask 769736  }
  0xa4   :  { %579 = vrot.lane.b32.xlu0 %v1019_v47, %s1277_s28  ;;  %195 = vst.msk [vmem:[#allocation0 + $0x10] sm:$0x1] %vm193_vm12, %v192_v50   ;;  %586 = vrot.lane.b32.xlu1 %v1020_v49, %s1278_s29  ;;  %s1287_s29 = smov 37   ;;  %vm302_vm12 = vcmask 761536   ;;  %v1051_v47 = vld [vmem:[%s1753_s0 + $0x3] sm:$0x1]  }
  0xa5   :  { %v1052_v49 = vld [vmem:[%s1753_s0 + $0x36] sm:$0x1]  }
  0xa6   :  { %v199_v52 = vpop.permute.xlu0 %198   ;;  %v206_v54 = vpop.permute.xlu1 %205  }
  0xa7   :  { %202 = vst.msk [vmem:[#allocation0 + $0x20] sm:$0x1] %vm200_vm13, %v199_v52   ;;  %vm309_vm13 = vcmask 753336  }
  0xa8   :  { %593 = vrot.lane.b32.xlu0 %v1021_v51, %s1279_s5  ;;  %209 = vst.msk [vmem:[#allocation0 + $0x8] sm:$0x1] %vm207_vm14, %v206_v54   ;;  %599 = vrot.lane.b32.xlu1 %v1022_v53, %s1280_s6  ;;  %s1289_s6 = smov 35   ;;  %vm316_vm14 = vcmask 745136   ;;  %v1053_v51 = vld [vmem:[%s1753_s0 + $0x69] sm:$0x1]  }
  0xa9   :  { %v1054_v53 = vld [vmem:[%s1753_s0 + $0x1c] sm:$0x1]  }
  0xaa   :  { %v213_v56 = vpop.permute.xlu0 %212   ;;  %v220_v58 = vpop.permute.xlu1 %219  }
  0xab   :  { %216 = vst.msk [vmem:[#allocation0 + $0x18] sm:$0x1] %vm214_vm15, %v213_v56   ;;  %vm323_vm15 = vcmask 736936  }
  0xac   :  { %606 = vrot.lane.b32.xlu0 %v1023_v55, %s1281_s11  ;;  %222 = vst.msk [vmem:[#allocation0] sm:$0x1] %vm221_vm0, %v220_v58   ;;  %613 = vrot.lane.b32.xlu1 %v1024_v57, %s1282_s12  ;;  %s1291_s12 = smov 33   ;;  %vm329_vm0 = vcmask 728736   ;;  %v1055_v55 = vld [vmem:[%s1753_s0 + $0x4f] sm:$0x1]  }
  0xad   :  { %v1056_v57 = vld [vmem:[%s1753_s0 + $0x2] sm:$0x1]  }
  0xae   :  { %v226_v60 = vpop.permute.xlu0 %225   ;;  %v233_v62 = vpop.permute.xlu1 %232  }
  0xaf   :  { %229 = vst.msk [vmem:[#allocation0 + $0x10] sm:$0x1] %vm227_vm1, %v226_v60   ;;  %vm336_vm1 = vcmask 720536  }
  0xb0   :  { %620 = vrot.lane.b32.xlu0 %v1025_v59, %s1283_s17  ;;  %236 = vst.msk [vmem:[#allocation0 + $0x20] sm:$0x1] %vm234_vm2, %v233_v62   ;;  %627 = vrot.lane.b32.xlu1 %v1026_v61, %s1284_s18  ;;  %s1293_s18 = smov 31   ;;  %vm343_vm2 = vcmask 712336   ;;  %v1057_v59 = vld [vmem:[%s1753_s0 + $0x35] sm:$0x1]  }
  0xb1   :  { %v1058_v61 = vld [vmem:[%s1753_s0 + $0x68] sm:$0x1]  }
  0xb2   :  { %v240_v0 = vpop.permute.xlu0 %239   ;;  %v247_v2 = vpop.permute.xlu1 %246  }
  0xb3   :  { %243 = vst.msk [vmem:[#allocation0 + $0x8] sm:$0x1] %vm241_vm3, %v240_v0   ;;  %vm350_vm3 = vcmask 704136  }
  0xb4   :  { %633 = vrot.lane.b32.xlu0 %v1027_v63, %s1285_s23  ;;  %250 = vst.msk [vmem:[#allocation0 + $0x18] sm:$0x1] %vm248_vm4, %v247_v2   ;;  %640 = vrot.lane.b32.xlu1 %v1028_v1, %s1286_s24  ;;  %s1295_s24 = smov 29   ;;  %vm357_vm4 = vcmask 695936   ;;  %v1059_v63 = vld [vmem:[%s1753_s0 + $0x1b] sm:$0x1]  }
  0xb5   :  { %v1060_v1 = vld [vmem:[%s1753_s0 + $0x4e] sm:$0x1]  }
  0xb6   :  { %v254_v4 = vpop.permute.xlu0 %253   ;;  %v260_v6 = vpop.permute.xlu1 %259  }
  0xb7   :  { %256 = vst.msk [vmem:[#allocation0] sm:$0x1] %vm255_vm5, %v254_v4   ;;  %vm363_vm5 = vcmask 687736  }
  0xb8   :  { %647 = vrot.lane.b32.xlu0 %v1029_v3, %s1287_s29  ;;  %263 = vst.msk [vmem:[#allocation0 + $0x10] sm:$0x1] %vm261_vm6, %v260_v6   ;;  %654 = vrot.lane.b32.xlu1 %v1030_v5, %s1288_s30  ;;  %s1297_s30 = smov 27   ;;  %vm370_vm6 = vcmask 679536   ;;  %v1061_v3 = vld [vmem:[%s1753_s0 + $0x1] sm:$0x1]  }
  0xb9   :  { %v1062_v5 = vld [vmem:[%s1753_s0 + $0x34] sm:$0x1]  }
  0xba   :  { %v267_v8 = vpop.permute.xlu0 %266   ;;  %v274_v10 = vpop.permute.xlu1 %273  }
  0xbb   :  { %270 = vst.msk [vmem:[#allocation0 + $0x20] sm:$0x1] %vm268_vm7, %v267_v8   ;;  %vm377_vm7 = vcmask 671336  }
  0xbc   :  { %661 = vrot.lane.b32.xlu0 %v1031_v7, %s1289_s6  ;;  %277 = vst.msk [vmem:[#allocation0 + $0x8] sm:$0x1] %vm275_vm8, %v274_v10   ;;  %667 = vrot.lane.b32.xlu1 %v1032_v9, %s1290_s7  ;;  %s1299_s7 = smov 25   ;;  %vm384_vm8 = vcmask 663136   ;;  %v1063_v7 = vld [vmem:[%s1753_s0 + $0x67] sm:$0x1]  }
  0xbd   :  { %v1064_v9 = vld [vmem:[%s1753_s0 + $0x1a] sm:$0x1]  }
  0xbe   :  { %v281_v12 = vpop.permute.xlu0 %280   ;;  %v288_v14 = vpop.permute.xlu1 %287  }
  0xbf   :  { %284 = vst.msk [vmem:[#allocation0 + $0x18] sm:$0x1] %vm282_vm9, %v281_v12   ;;  %vm391_vm9 = vcmask 654936  }
  0xc0   :  { %674 = vrot.lane.b32.xlu0 %v1033_v11, %s1291_s12  ;;  %290 = vst.msk [vmem:[#allocation0] sm:$0x1] %vm289_vm10, %v288_v14   ;;  %681 = vrot.lane.b32.xlu1 %v1034_v13, %s1292_s13  ;;  %s1301_s13 = smov 23   ;;  %vm397_vm10 = vcmask 646736   ;;  %v1065_v11 = vld [vmem:[%s1753_s0 + $0x4d] sm:$0x1]  }
  0xc1   :  { %s1323_s0 = smov 1  }
  0xc2   :  { %v294_v16 = vpop.permute.xlu0 %293   ;;  %v301_v18 = vpop.permute.xlu1 %300  }
  0xc3   :  { %297 = vst.msk [vmem:[#allocation0 + $0x10] sm:$0x1] %vm295_vm11, %v294_v16   ;;  %vm404_vm11 = vcmask 638536  }
  0xc4   :  { %688 = vrot.lane.b32.xlu0 %v1035_v15, %s1293_s18  ;;  %304 = vst.msk [vmem:[#allocation0 + $0x20] sm:$0x1] %vm302_vm12, %v301_v18   ;;  %695 = vrot.lane.b32.xlu1 %v1036_v17, %s1294_s19  ;;  %s1303_s19 = smov 21   ;;  %vm411_vm12 = vcmask 630336  }
  0xc6   :  { %v308_v20 = vpop.permute.xlu0 %307   ;;  %v315_v22 = vpop.permute.xlu1 %314  }
  0xc7   :  { %311 = vst.msk [vmem:[#allocation0 + $0x8] sm:$0x1] %vm309_vm13, %v308_v20   ;;  %vm418_vm13 = vcmask 622136  }
  0xc8   :  { %701 = vrot.lane.b32.xlu0 %v1037_v19, %s1295_s24  ;;  %318 = vst.msk [vmem:[#allocation0 + $0x18] sm:$0x1] %vm316_vm14, %v315_v22   ;;  %708 = vrot.lane.b32.xlu1 %v1038_v21, %s1296_s25  ;;  %s1305_s25 = smov 19   ;;  %vm425_vm14 = vcmask 613936  }
  0xca   :  { %v322_v24 = vpop.permute.xlu0 %321   ;;  %v328_v26 = vpop.permute.xlu1 %327  }
  0xcb   :  { %324 = vst.msk [vmem:[#allocation0] sm:$0x1] %vm323_vm15, %v322_v24   ;;  %vm431_vm15 = vcmask 605736  }
  0xcc   :  { %715 = vrot.lane.b32.xlu0 %v1039_v23, %s1297_s30  ;;  %331 = vst.msk [vmem:[#allocation0 + $0x10] sm:$0x1] %vm329_vm0, %v328_v26   ;;  %722 = vrot.lane.b32.xlu1 %v1040_v25, %s1298_s2  ;;  %s1307_s2 = smov 17   ;;  %vm438_vm0 = vcmask 597536  }
  0xce   :  { %v335_v28 = vpop.permute.xlu0 %334   ;;  %v342_v30 = vpop.permute.xlu1 %341  }
  0xcf   :  { %338 = vst.msk [vmem:[#allocation0 + $0x20] sm:$0x1] %vm336_vm1, %v335_v28   ;;  %vm445_vm1 = vcmask 589336  }
  0xd0   :  { %729 = vrot.lane.b32.xlu0 %v1041_v27, %s1299_s7  ;;  %345 = vst.msk [vmem:[#allocation0 + $0x8] sm:$0x1] %vm343_vm2, %v342_v30   ;;  %735 = vrot.lane.b32.xlu1 %v1042_v29, %s1300_s8  ;;  %s1309_s8 = smov 15   ;;  %vm452_vm2 = vcmask 581136  }
  0xd2   :  { %v349_v32 = vpop.permute.xlu0 %348   ;;  %v356_v34 = vpop.permute.xlu1 %355  }
  0xd3   :  { %352 = vst.msk [vmem:[#allocation0 + $0x18] sm:$0x1] %vm350_vm3, %v349_v32   ;;  %vm459_vm3 = vcmask 572936  }
  0xd4   :  { %742 = vrot.lane.b32.xlu0 %v1043_v31, %s1301_s13  ;;  %358 = vst.msk [vmem:[#allocation0] sm:$0x1] %vm357_vm4, %v356_v34   ;;  %749 = vrot.lane.b32.xlu1 %v1044_v33, %s1302_s14  ;;  %s1311_s14 = smov 13   ;;  %vm465_vm4 = vcmask 564736  }
  0xd6   :  { %v362_v36 = vpop.permute.xlu0 %361   ;;  %v369_v38 = vpop.permute.xlu1 %368  }
  0xd7   :  { %365 = vst.msk [vmem:[#allocation0 + $0x10] sm:$0x1] %vm363_vm5, %v362_v36   ;;  %vm472_vm5 = vcmask 556536  }
  0xd8   :  { %756 = vrot.lane.b32.xlu0 %v1045_v35, %s1303_s19  ;;  %372 = vst.msk [vmem:[#allocation0 + $0x20] sm:$0x1] %vm370_vm6, %v369_v38   ;;  %763 = vrot.lane.b32.xlu1 %v1046_v37, %s1304_s20  ;;  %s1313_s20 = smov 11   ;;  %vm479_vm6 = vcmask 548336  }
  0xda   :  { %v376_v40 = vpop.permute.xlu0 %375   ;;  %v383_v42 = vpop.permute.xlu1 %382  }
  0xdb   :  { %379 = vst.msk [vmem:[#allocation0 + $0x8] sm:$0x1] %vm377_vm7, %v376_v40   ;;  %vm486_vm7 = vcmask 540136  }
  0xdc   :  { %769 = vrot.lane.b32.xlu0 %v1047_v39, %s1305_s25  ;;  %386 = vst.msk [vmem:[#allocation0 + $0x18] sm:$0x1] %vm384_vm8, %v383_v42   ;;  %776 = vrot.lane.b32.xlu1 %v1048_v41, %s1306_s26  ;;  %s1315_s26 = smov 9   ;;  %vm493_vm8 = vcmask 531936  }
  0xde   :  { %v390_v44 = vpop.permute.xlu0 %389   ;;  %v396_v46 = vpop.permute.xlu1 %395  }
  0xdf   :  { %392 = vst.msk [vmem:[#allocation0] sm:$0x1] %vm391_vm9, %v390_v44   ;;  %vm499_vm9 = vcmask 523736  }
  0xe0   :  { %783 = vrot.lane.b32.xlu0 %v1049_v43, %s1307_s2  ;;  %399 = vst.msk [vmem:[#allocation0 + $0x10] sm:$0x1] %vm397_vm10, %v396_v46   ;;  %790 = vrot.lane.b32.xlu1 %v1050_v45, %s1308_s3  ;;  %s1317_s3 = smov 7   ;;  %vm506_vm10 = vcmask 515536  }
  0xe2   :  { %v403_v48 = vpop.permute.xlu0 %402   ;;  %v410_v50 = vpop.permute.xlu1 %409  }
  0xe3   :  { %406 = vst.msk [vmem:[#allocation0 + $0x20] sm:$0x1] %vm404_vm11, %v403_v48   ;;  %vm513_vm11 = vcmask 507336  }
  0xe4   :  { %797 = vrot.lane.b32.xlu0 %v1051_v47, %s1309_s8  ;;  %413 = vst.msk [vmem:[#allocation0 + $0x8] sm:$0x1] %vm411_vm12, %v410_v50   ;;  %803 = vrot.lane.b32.xlu1 %v1052_v49, %s1310_s9  ;;  %s1319_s9 = smov 5   ;;  %vm520_vm12 = vcmask 499136  }
  0xe6   :  { %v417_v52 = vpop.permute.xlu0 %416   ;;  %v424_v54 = vpop.permute.xlu1 %423  }
  0xe7   :  { %420 = vst.msk [vmem:[#allocation0 + $0x18] sm:$0x1] %vm418_vm13, %v417_v52   ;;  %vm527_vm13 = vcmask 490936  }
  0xe8   :  { %810 = vrot.lane.b32.xlu0 %v1053_v51, %s1311_s14  ;;  %426 = vst.msk [vmem:[#allocation0] sm:$0x1] %vm425_vm14, %v424_v54   ;;  %817 = vrot.lane.b32.xlu1 %v1054_v53, %s1312_s15  ;;  %s1321_s15 = smov 3   ;;  %vm533_vm14 = vcmask 482736  }
  0xea   :  { %v430_v56 = vpop.permute.xlu0 %429   ;;  %v437_v58 = vpop.permute.xlu1 %436  }
  0xeb   :  { %433 = vst.msk [vmem:[#allocation0 + $0x10] sm:$0x1] %vm431_vm15, %v430_v56   ;;  %vm540_vm15 = vcmask 474536  }
  0xec   :  { %824 = vrot.lane.b32.xlu0 %v1055_v55, %s1313_s20  ;;  %440 = vst.msk [vmem:[#allocation0 + $0x20] sm:$0x1] %vm438_vm0, %v437_v58   ;;  %831 = vrot.lane.b32.xlu1 %v1056_v57, %s1314_s21  ;;  %vm547_vm0 = vcmask 466336  }
  0xee   :  { %v444_v60 = vpop.permute.xlu0 %443   ;;  %v451_v62 = vpop.permute.xlu1 %450  }
  0xef   :  { %447 = vst.msk [vmem:[#allocation0 + $0x8] sm:$0x1] %vm445_vm1, %v444_v60   ;;  %vm554_vm1 = vcmask 458136  }
  0xf0   :  { %837 = vrot.lane.b32.xlu0 %v1057_v59, %s1315_s26  ;;  %454 = vst.msk [vmem:[#allocation0 + $0x18] sm:$0x1] %vm452_vm2, %v451_v62   ;;  %844 = vrot.lane.b32.xlu1 %v1058_v61, %s1316_s27  ;;  %vm561_vm2 = vcmask 449936  }
  0xf2   :  { %v458_v0 = vpop.permute.xlu0 %457   ;;  %v464_v2 = vpop.permute.xlu1 %463  }
  0xf3   :  { %460 = vst.msk [vmem:[#allocation0] sm:$0x1] %vm459_vm3, %v458_v0   ;;  %vm567_vm3 = vcmask 441736  }
  0xf4   :  { %851 = vrot.lane.b32.xlu0 %v1059_v63, %s1317_s3  ;;  %467 = vst.msk [vmem:[#allocation0 + $0x10] sm:$0x1] %vm465_vm4, %v464_v2   ;;  %858 = vrot.lane.b32.xlu1 %v1060_v1, %s1318_s4  ;;  %vm574_vm4 = vcmask 433536  }
  0xf6   :  { %v471_v4 = vpop.permute.xlu0 %470   ;;  %v478_v6 = vpop.permute.xlu1 %477  }
  0xf7   :  { %474 = vst.msk [vmem:[#allocation0 + $0x20] sm:$0x1] %vm472_vm5, %v471_v4   ;;  %vm581_vm5 = vcmask 425336  }
  0xf8   :  { %865 = vrot.lane.b32.xlu0 %v1061_v3, %s1319_s9  ;;  %481 = vst.msk [vmem:[#allocation0 + $0x8] sm:$0x1] %vm479_vm6, %v478_v6   ;;  %871 = vrot.lane.b32.xlu1 %v1062_v5, %s1320_s10  ;;  %vm588_vm6 = vcmask 417136  }
  0xfa   :  { %v485_v8 = vpop.permute.xlu0 %484   ;;  %v492_v10 = vpop.permute.xlu1 %491  }
  0xfb   :  { %488 = vst.msk [vmem:[#allocation0 + $0x18] sm:$0x1] %vm486_vm7, %v485_v8   ;;  %vm595_vm7 = vcmask 408936  }
  0xfc   :  { %878 = vrot.lane.b32.xlu0 %v1063_v7, %s1321_s15  ;;  %494 = vst.msk [vmem:[#allocation0] sm:$0x1] %vm493_vm8, %v492_v10   ;;  %885 = vrot.lane.b32.xlu1 %v1064_v9, %s1322_s16  ;;  %vm601_vm8 = vcmask 400736  }
  0xfe   :  { %v498_v12 = vpop.permute.xlu0 %497   ;;  %v505_v13 = vpop.permute.xlu1 %504  }
  0xff   :  { %501 = vst.msk [vmem:[#allocation0 + $0x10] sm:$0x1] %vm499_vm9, %v498_v12   ;;  %vm608_vm9 = vcmask 392536  }
 0x100   :  { %892 = vrot.lane.b32.xlu0 %v1065_v11, %s1323_s0  ;;  %508 = vst.msk [vmem:[#allocation0 + $0x20] sm:$0x1] %vm506_vm10, %v505_v13   ;;  %vm615_vm10 = vcmask 384336  }
 0x102   :  { %v512_v14 = vpop.permute.xlu0 %511   ;;  %v519_v15 = vpop.permute.xlu1 %518  }
 0x103   :  { %515 = vst.msk [vmem:[#allocation0 + $0x8] sm:$0x1] %vm513_vm11, %v512_v14   ;;  %vm622_vm11 = vcmask 376136  }
 0x104   :  { %522 = vst.msk [vmem:[#allocation0 + $0x18] sm:$0x1] %vm520_vm12, %v519_v15   ;;  %vm629_vm12 = vcmask 367936  }
 0x106   :  { %v526_v16 = vpop.permute.xlu0 %525   ;;  %v532_v17 = vpop.permute.xlu1 %531  }
 0x107   :  { %528 = vst.msk [vmem:[#allocation0] sm:$0x1] %vm527_vm13, %v526_v16   ;;  %vm635_vm13 = vcmask 359736  }
 0x108   :  { %535 = vst.msk [vmem:[#allocation0 + $0x10] sm:$0x1] %vm533_vm14, %v532_v17   ;;  %vm642_vm14 = vcmask 351536  }
 0x10a   :  { %v539_v18 = vpop.permute.xlu0 %538   ;;  %v546_v19 = vpop.permute.xlu1 %545  }
 0x10b   :  { %542 = vst.msk [vmem:[#allocation0 + $0x20] sm:$0x1] %vm540_vm15, %v539_v18   ;;  %vm649_vm15 = vcmask 343336  }
 0x10c   :  { %549 = vst.msk [vmem:[#allocation0 + $0x8] sm:$0x1] %vm547_vm0, %v546_v19   ;;  %vm656_vm0 = vcmask 335136  }
 0x10e   :  { %v553_v20 = vpop.permute.xlu0 %552   ;;  %v560_v21 = vpop.permute.xlu1 %559  }
 0x10f   :  { %556 = vst.msk [vmem:[#allocation0 + $0x18] sm:$0x1] %vm554_vm1, %v553_v20   ;;  %vm663_vm1 = vcmask 326936  }
 0x110   :  { %562 = vst.msk [vmem:[#allocation0] sm:$0x1] %vm561_vm2, %v560_v21   ;;  %vm669_vm2 = vcmask 318736  }
 0x112   :  { %v566_v22 = vpop.permute.xlu0 %565   ;;  %v573_v23 = vpop.permute.xlu1 %572  }
 0x113   :  { %569 = vst.msk [vmem:[#allocation0 + $0x10] sm:$0x1] %vm567_vm3, %v566_v22   ;;  %vm676_vm3 = vcmask 310536  }
 0x114   :  { %576 = vst.msk [vmem:[#allocation0 + $0x20] sm:$0x1] %vm574_vm4, %v573_v23   ;;  %vm683_vm4 = vcmask 302336  }
 0x116   :  { %v580_v24 = vpop.permute.xlu0 %579   ;;  %v587_v25 = vpop.permute.xlu1 %586  }
 0x117   :  { %583 = vst.msk [vmem:[#allocation0 + $0x8] sm:$0x1] %vm581_vm5, %v580_v24   ;;  %vm690_vm5 = vcmask 294136  }
 0x118   :  { %590 = vst.msk [vmem:[#allocation0 + $0x18] sm:$0x1] %vm588_vm6, %v587_v25   ;;  %vm697_vm6 = vcmask 285936  }
 0x11a   :  { %v594_v26 = vpop.permute.xlu0 %593   ;;  %v600_v27 = vpop.permute.xlu1 %599  }
 0x11b   :  { %596 = vst.msk [vmem:[#allocation0] sm:$0x1] %vm595_vm7, %v594_v26   ;;  %vm703_vm7 = vcmask 277736  }
 0x11c   :  { %603 = vst.msk [vmem:[#allocation0 + $0x10] sm:$0x1] %vm601_vm8, %v600_v27   ;;  %vm710_vm8 = vcmask 269536  }
 0x11e   :  { %v607_v28 = vpop.permute.xlu0 %606   ;;  %v614_v29 = vpop.permute.xlu1 %613  }
 0x11f   :  { %610 = vst.msk [vmem:[#allocation0 + $0x20] sm:$0x1] %vm608_vm9, %v607_v28   ;;  %vm717_vm9 = vcmask 261336  }
 0x120   :  { %617 = vst.msk [vmem:[#allocation0 + $0x8] sm:$0x1] %vm615_vm10, %v614_v29   ;;  %vm724_vm10 = vcmask 253136  }
 0x122   :  { %v621_v30 = vpop.permute.xlu0 %620   ;;  %v628_v31 = vpop.permute.xlu1 %627  }
 0x123   :  { %624 = vst.msk [vmem:[#allocation0 + $0x18] sm:$0x1] %vm622_vm11, %v621_v30   ;;  %vm731_vm11 = vcmask 244936  }
 0x124   :  { %630 = vst.msk [vmem:[#allocation0] sm:$0x1] %vm629_vm12, %v628_v31   ;;  %vm737_vm12 = vcmask 236736  }
 0x126   :  { %v634_v32 = vpop.permute.xlu0 %633   ;;  %v641_v33 = vpop.permute.xlu1 %640  }
 0x127   :  { %637 = vst.msk [vmem:[#allocation0 + $0x10] sm:$0x1] %vm635_vm13, %v634_v32   ;;  %vm744_vm13 = vcmask 228536  }
 0x128   :  { %644 = vst.msk [vmem:[#allocation0 + $0x20] sm:$0x1] %vm642_vm14, %v641_v33   ;;  %vm751_vm14 = vcmask 220336  }
 0x12a   :  { %v648_v34 = vpop.permute.xlu0 %647   ;;  %v655_v35 = vpop.permute.xlu1 %654  }
 0x12b   :  { %651 = vst.msk [vmem:[#allocation0 + $0x8] sm:$0x1] %vm649_vm15, %v648_v34   ;;  %vm758_vm15 = vcmask 212136  }
 0x12c   :  { %658 = vst.msk [vmem:[#allocation0 + $0x18] sm:$0x1] %vm656_vm0, %v655_v35   ;;  %vm765_vm0 = vcmask 203936  }
 0x12e   :  { %v662_v36 = vpop.permute.xlu0 %661   ;;  %v668_v37 = vpop.permute.xlu1 %667  }
 0x12f   :  { %664 = vst.msk [vmem:[#allocation0] sm:$0x1] %vm663_vm1, %v662_v36   ;;  %vm771_vm1 = vcmask 195736  }
 0x130   :  { %671 = vst.msk [vmem:[#allocation0 + $0x10] sm:$0x1] %vm669_vm2, %v668_v37   ;;  %vm778_vm2 = vcmask 187536  }
 0x132   :  { %v675_v38 = vpop.permute.xlu0 %674   ;;  %v682_v39 = vpop.permute.xlu1 %681  }
 0x133   :  { %678 = vst.msk [vmem:[#allocation0 + $0x20] sm:$0x1] %vm676_vm3, %v675_v38   ;;  %vm785_vm3 = vcmask 179336  }
 0x134   :  { %685 = vst.msk [vmem:[#allocation0 + $0x8] sm:$0x1] %vm683_vm4, %v682_v39   ;;  %vm792_vm4 = vcmask 171136  }
 0x136   :  { %v689_v40 = vpop.permute.xlu0 %688   ;;  %v696_v41 = vpop.permute.xlu1 %695  }
 0x137   :  { %692 = vst.msk [vmem:[#allocation0 + $0x18] sm:$0x1] %vm690_vm5, %v689_v40   ;;  %vm799_vm5 = vcmask 162936  }
 0x138   :  { %698 = vst.msk [vmem:[#allocation0] sm:$0x1] %vm697_vm6, %v696_v41   ;;  %vm805_vm6 = vcmask 154736  }
 0x13a   :  { %v702_v42 = vpop.permute.xlu0 %701   ;;  %v709_v43 = vpop.permute.xlu1 %708  }
 0x13b   :  { %705 = vst.msk [vmem:[#allocation0 + $0x10] sm:$0x1] %vm703_vm7, %v702_v42   ;;  %vm812_vm7 = vcmask 146536  }
 0x13c   :  { %712 = vst.msk [vmem:[#allocation0 + $0x20] sm:$0x1] %vm710_vm8, %v709_v43   ;;  %vm819_vm8 = vcmask 138336  }
 0x13e   :  { %v716_v44 = vpop.permute.xlu0 %715   ;;  %v723_v45 = vpop.permute.xlu1 %722  }
 0x13f   :  { %719 = vst.msk [vmem:[#allocation0 + $0x8] sm:$0x1] %vm717_vm9, %v716_v44   ;;  %vm826_vm9 = vcmask 130136  }
 0x140   :  { %726 = vst.msk [vmem:[#allocation0 + $0x18] sm:$0x1] %vm724_vm10, %v723_v45   ;;  %vm833_vm10 = vcmask 121936  }
 0x142   :  { %v730_v46 = vpop.permute.xlu0 %729   ;;  %v736_v47 = vpop.permute.xlu1 %735  }
 0x143   :  { %732 = vst.msk [vmem:[#allocation0] sm:$0x1] %vm731_vm11, %v730_v46   ;;  %vm839_vm11 = vcmask 113736  }
 0x144   :  { %739 = vst.msk [vmem:[#allocation0 + $0x10] sm:$0x1] %vm737_vm12, %v736_v47   ;;  %vm846_vm12 = vcmask 105536  }
 0x146   :  { %v743_v48 = vpop.permute.xlu0 %742   ;;  %v750_v49 = vpop.permute.xlu1 %749  }
 0x147   :  { %746 = vst.msk [vmem:[#allocation0 + $0x20] sm:$0x1] %vm744_vm13, %v743_v48   ;;  %vm853_vm13 = vcmask 97336  }
 0x148   :  { %753 = vst.msk [vmem:[#allocation0 + $0x8] sm:$0x1] %vm751_vm14, %v750_v49   ;;  %vm860_vm14 = vcmask 89136  }
 0x14a   :  { %v757_v50 = vpop.permute.xlu0 %756   ;;  %v764_v51 = vpop.permute.xlu1 %763  }
 0x14b   :  { %760 = vst.msk [vmem:[#allocation0 + $0x18] sm:$0x1] %vm758_vm15, %v757_v50   ;;  %vm867_vm15 = vcmask 80936  }
 0x14c   :  { %766 = vst.msk [vmem:[#allocation0] sm:$0x1] %vm765_vm0, %v764_v51   ;;  %vm873_vm0 = vcmask 72736  }
 0x14e   :  { %v770_v52 = vpop.permute.xlu0 %769   ;;  %v777_v53 = vpop.permute.xlu1 %776  }
 0x14f   :  { %773 = vst.msk [vmem:[#allocation0 + $0x10] sm:$0x1] %vm771_vm1, %v770_v52   ;;  %vm880_vm1 = vcmask 64536  }
 0x150   :  { %780 = vst.msk [vmem:[#allocation0 + $0x20] sm:$0x1] %vm778_vm2, %v777_v53   ;;  %vm887_vm2 = vcmask 56336  }
 0x152   :  { %v784_v54 = vpop.permute.xlu0 %783   ;;  %v791_v55 = vpop.permute.xlu1 %790  }
 0x153   :  { %787 = vst.msk [vmem:[#allocation0 + $0x8] sm:$0x1] %vm785_vm3, %v784_v54   ;;  %vm894_vm3 = vcmask 48136  }
 0x154   :  { %794 = vst.msk [vmem:[#allocation0 + $0x18] sm:$0x1] %vm792_vm4, %v791_v55  }
 0x156   :  { %v798_v56 = vpop.permute.xlu0 %797   ;;  %v804_v57 = vpop.permute.xlu1 %803  }
 0x157   :  { %800 = vst.msk [vmem:[#allocation0] sm:$0x1] %vm799_vm5, %v798_v56  }
 0x158   :  { %807 = vst.msk [vmem:[#allocation0 + $0x10] sm:$0x1] %vm805_vm6, %v804_v57  }
 0x15a   :  { %v811_v58 = vpop.permute.xlu0 %810   ;;  %v818_v59 = vpop.permute.xlu1 %817  }
 0x15b   :  { %814 = vst.msk [vmem:[#allocation0 + $0x20] sm:$0x1] %vm812_vm7, %v811_v58  }
 0x15c   :  { %821 = vst.msk [vmem:[#allocation0 + $0x8] sm:$0x1] %vm819_vm8, %v818_v59  }
 0x15e   :  { %v825_v60 = vpop.permute.xlu0 %824   ;;  %v832_v61 = vpop.permute.xlu1 %831  }
 0x15f   :  { %828 = vst.msk [vmem:[#allocation0 + $0x18] sm:$0x1] %vm826_vm9, %v825_v60  }
 0x160   :  { %834 = vst.msk [vmem:[#allocation0] sm:$0x1] %vm833_vm10, %v832_v61  }
 0x162   :  { %v838_v62 = vpop.permute.xlu0 %837   ;;  %v845_v63 = vpop.permute.xlu1 %844  }
 0x163   :  { %841 = vst.msk [vmem:[#allocation0 + $0x10] sm:$0x1] %vm839_vm11, %v838_v62  }
 0x164   :  { %848 = vst.msk [vmem:[#allocation0 + $0x20] sm:$0x1] %vm846_vm12, %v845_v63  }
 0x166   :  { %v852_v0 = vpop.permute.xlu0 %851   ;;  %v859_v1 = vpop.permute.xlu1 %858  }
 0x167   :  { %855 = vst.msk [vmem:[#allocation0 + $0x8] sm:$0x1] %vm853_vm13, %v852_v0  }
 0x168   :  { %862 = vst.msk [vmem:[#allocation0 + $0x18] sm:$0x1] %vm860_vm14, %v859_v1  }
 0x16a   :  { %v866_v2 = vpop.permute.xlu0 %865   ;;  %v872_v3 = vpop.permute.xlu1 %871  }
 0x16b   :  { %868 = vst.msk [vmem:[#allocation0] sm:$0x1] %vm867_vm15, %v866_v2  }
 0x16c   :  { %875 = vst.msk [vmem:[#allocation0 + $0x10] sm:$0x1] %vm873_vm0, %v872_v3  }
 0x16e   :  { %v879_v4 = vpop.permute.xlu0 %878   ;;  %v886_v5 = vpop.permute.xlu1 %885  }
 0x16f   :  { %882 = vst.msk [vmem:[#allocation0 + $0x20] sm:$0x1] %vm880_vm1, %v879_v4  }
 0x170   :  { %889 = vst.msk [vmem:[#allocation0 + $0x8] sm:$0x1] %vm887_vm2, %v886_v5  }
 0x172   :  { %v901_v6 = vld [vmem:[#allocation0] sm:$0x1]  ;;  %v893_v7 = vpop.permute.xlu0 %892  }
 0x173   :  { %904 = vst [vmem:[%s1754_s1] sm:$0x1] %v901_v6  ;;  %v912_v8 = vld [vmem:[#allocation0 + $0x10] sm:$0x1]  ;;  %896 = vst.msk [vmem:[#allocation0 + $0x18] sm:$0x1] %vm894_vm3, %v893_v7  }
 0x174   :  { %1067 = vst [vmem:[%s1754_s1 + $0x2] sm:$0x1] %v912_v8 }
 0x176   :  { %v926_v9 = vld [vmem:[#allocation0 + $0x20] sm:$0x1] }
 0x177   :  { %1069 = vst [vmem:[%s1754_s1 + $0x4] sm:$0x1] %v926_v9  ;;  %v906_v10 = vld [vmem:[#allocation0 + $0x8] sm:$0x1] }
 0x178   :  { %1066 = vst [vmem:[%s1754_s1 + $0x1] sm:$0x1] %v906_v10 }
 0x17a   :  { %v919_v11 = vld [vmem:[#allocation0 + $0x18] sm:$0x1] }
 0x17b   :  { %1068 = vst [vmem:[%s1754_s1 + $0x3] sm:$0x1] %v919_v11 }

// kernel: simple_net_forward.1
= control target key start
LH: loop header
LB: loop body
LE: loop exit
PB: predicated region body
PF: predicated region fallthrough
CT: control target
= control target key end

     0   :  { %s4713_s1 = inlined_call_operand.vmem [shape: f32[1280,640], index: 1, kind: input, shape index: {}]   ;;  %s4714_s0 = inlined_call_operand.vmem [shape: f32[1,1280], index: 0, kind: input, shape index: {}]   ;;  %s4715_s2 = inlined_call_operand.vmem [shape: f32[1,640], index: 2, kind: input, shape index: {}]   ;;  %s4716_s3 = inlined_call_operand.vmem [shape: f32[1,640], index: 3, kind: output, shape index: {}]  }
   0x1   :  { %v92_v0 = vld [vmem:[%s4713_s1 + $0x260] sm:$0xff]  ;;  %v91_v1 = vld [vmem:[%s4713_s1 + $0x258] sm:$0xff]  ;;  %v86_v4 = vld [vmem:[%s4713_s1 + $0x230] sm:$0xff] }
   0x2   :  { %v87_v2 = vld [vmem:[%s4713_s1 + $0x238] sm:$0xff]  ;;  %895 = vmatprep.subr.mxu0 %v92_v0  ;;  %v252_v3 = vld [vmem:[%s4713_s1 + $0x760] sm:$0xff]  ;;  %v82_v6 = vld [vmem:[%s4713_s1 + $0x210] sm:$0xff] }
   0x3   :  { %v251_v5 = vld [vmem:[%s4713_s1 + $0x758] sm:$0xff]  ;;  %896 = vmatpush1.msra.mxu0 %v91_v1  ;;  %966 = vmatprep.subr.mxu1 %v252_v3  ;;  %v81_v8 = vld [vmem:[%s4713_s1 + $0x208] sm:$0xff]  ;;  %v246_v9 = vld [vmem:[%s4713_s1 + $0x730] sm:$0xff] }
   0x4   :  { %v247_v7 = vld [vmem:[%s4713_s1 + $0x738] sm:$0xff]  ;;  %897 = vmatprep.subr.mxu0 %v87_v2  ;;  %967 = vmatpush1.msra.mxu1 %v251_v5  ;;  %v242_v10 = vld [vmem:[%s4713_s1 + $0x710] sm:$0xff]  ;;  %v77_v11 = vld [vmem:[%s4713_s1 + $0x1e8] sm:$0xff] }
   0x5   :  { %898 = vmatpush1.msra.mxu0 %v86_v4  ;;  %968 = vmatprep.subr.mxu1 %v247_v7  ;;  %v241_v12 = vld [vmem:[%s4713_s1 + $0x708] sm:$0xff]  ;;  %v76_v13 = vld [vmem:[%s4713_s1 + $0x1e0] sm:$0xff]  ;;  %v71_v17 = vld [vmem:[%s4713_s1 + $0x1b8] sm:$0xff] }
   0x6   :  { %899 = vmatprep.subr.mxu0 %v82_v6  ;;  %969 = vmatpush1.msra.mxu1 %v246_v9  ;;  %v237_v14 = vld [vmem:[%s4713_s1 + $0x6e8] sm:$0xff]  ;;  %v72_v15 = vld [vmem:[%s4713_s1 + $0x1c0] sm:$0xff]  ;;  %v67_v19 = vld [vmem:[%s4713_s1 + $0x198] sm:$0xff] }
   0x7   :  { %900 = vmatpush1.msra.mxu0 %v81_v8  ;;  %970 = vmatprep.subr.mxu1 %v242_v10  ;;  %v236_v16 = vld [vmem:[%s4713_s1 + $0x6e0] sm:$0xff]  ;;  %v231_v20 = vld [vmem:[%s4713_s1 + $0x6b8] sm:$0xff]  ;;  %v66_v21 = vld [vmem:[%s4713_s1 + $0x190] sm:$0xff] }
   0x8   :  { %901 = vmatprep.subr.mxu0 %v77_v11  ;;  %971 = vmatpush1.msra.mxu1 %v241_v12  ;;  %v232_v18 = vld [vmem:[%s4713_s1 + $0x6c0] sm:$0xff]  ;;  %v227_v22 = vld [vmem:[%s4713_s1 + $0x698] sm:$0xff]  ;;  %v62_v23 = vld [vmem:[%s4713_s1 + $0x170] sm:$0xff] }
   0x9   :  { %902 = vmatpush1.msra.mxu0 %v76_v13  ;;  %972 = vmatprep.subr.mxu1 %v237_v14  ;;  %v226_v24 = vld [vmem:[%s4713_s1 + $0x690] sm:$0xff]  ;;  %v61_v25 = vld [vmem:[%s4713_s1 + $0x168] sm:$0xff]  ;;  %v56_v29 = vld [vmem:[%s4713_s1 + $0x140] sm:$0xff] }
   0xa   :  { %903 = vmatprep.subr.mxu0 %v72_v15  ;;  %973 = vmatpush1.msra.mxu1 %v236_v16  ;;  %v222_v26 = vld [vmem:[%s4713_s1 + $0x670] sm:$0xff]  ;;  %v57_v27 = vld [vmem:[%s4713_s1 + $0x148] sm:$0xff]  ;;  %v52_v31 = vld [vmem:[%s4713_s1 + $0x120] sm:$0xff] }
   0xb   :  { %904 = vmatpush1.msra.mxu0 %v71_v17  ;;  %974 = vmatprep.subr.mxu1 %v232_v18  ;;  %v221_v28 = vld [vmem:[%s4713_s1 + $0x668] sm:$0xff]  ;;  %v216_v32 = vld [vmem:[%s4713_s1 + $0x640] sm:$0xff]  ;;  %v51_v33 = vld [vmem:[%s4713_s1 + $0x118] sm:$0xff] }
   0xc   :  { %905 = vmatprep.subr.mxu0 %v67_v19  ;;  %975 = vmatpush1.msra.mxu1 %v231_v20  ;;  %v217_v30 = vld [vmem:[%s4713_s1 + $0x648] sm:$0xff]  ;;  %v212_v34 = vld [vmem:[%s4713_s1 + $0x620] sm:$0xff]  ;;  %v47_v35 = vld [vmem:[%s4713_s1 + $0xf8] sm:$0xff] }
   0xd   :  { %906 = vmatpush1.msra.mxu0 %v66_v21  ;;  %976 = vmatprep.subr.mxu1 %v227_v22  ;;  %v211_v36 = vld [vmem:[%s4713_s1 + $0x618] sm:$0xff]  ;;  %v46_v37 = vld [vmem:[%s4713_s1 + $0xf0] sm:$0xff]  ;;  %v41_v41 = vld [vmem:[%s4713_s1 + $0xc8] sm:$0xff] }
   0xe   :  { %907 = vmatprep.subr.mxu0 %v62_v23  ;;  %977 = vmatpush1.msra.mxu1 %v226_v24  ;;  %v207_v38 = vld [vmem:[%s4713_s1 + $0x5f8] sm:$0xff]  ;;  %v42_v39 = vld [vmem:[%s4713_s1 + $0xd0] sm:$0xff]  ;;  %v37_v43 = vld [vmem:[%s4713_s1 + $0xa8] sm:$0xff] }
   0xf   :  { %908 = vmatpush1.msra.mxu0 %v61_v25  ;;  %978 = vmatprep.subr.mxu1 %v222_v26  ;;  %v206_v40 = vld [vmem:[%s4713_s1 + $0x5f0] sm:$0xff]  ;;  %v201_v44 = vld [vmem:[%s4713_s1 + $0x5c8] sm:$0xff]  ;;  %v36_v45 = vld [vmem:[%s4713_s1 + $0xa0] sm:$0xff] }
  0x10   :  { %909 = vmatprep.subr.mxu0 %v57_v27  ;;  %979 = vmatpush1.msra.mxu1 %v221_v28  ;;  %v202_v42 = vld [vmem:[%s4713_s1 + $0x5d0] sm:$0xff]  ;;  %v197_v46 = vld [vmem:[%s4713_s1 + $0x5a8] sm:$0xff]  ;;  %v32_v47 = vld [vmem:[%s4713_s1 + $0x80] sm:$0xff] }
  0x11   :  { %910 = vmatpush1.msra.mxu0 %v56_v29  ;;  %980 = vmatprep.subr.mxu1 %v217_v30  ;;  %v196_v48 = vld [vmem:[%s4713_s1 + $0x5a0] sm:$0xff]  ;;  %v31_v49 = vld [vmem:[%s4713_s1 + $0x78] sm:$0xff]  ;;  %v26_v53 = vld [vmem:[%s4713_s1 + $0x50] sm:$0xff] }
  0x12   :  { %911 = vmatprep.subr.mxu0 %v52_v31  ;;  %981 = vmatpush1.msra.mxu1 %v216_v32  ;;  %v192_v50 = vld [vmem:[%s4713_s1 + $0x580] sm:$0xff]  ;;  %v27_v51 = vld [vmem:[%s4713_s1 + $0x58] sm:$0xff]  ;;  %v22_v55 = vld [vmem:[%s4713_s1 + $0x30] sm:$0xff] }
  0x13   :  { %912 = vmatpush1.msra.mxu0 %v51_v33  ;;  %982 = vmatprep.subr.mxu1 %v212_v34  ;;  %v191_v52 = vld [vmem:[%s4713_s1 + $0x578] sm:$0xff]  ;;  %v186_v56 = vld [vmem:[%s4713_s1 + $0x550] sm:$0xff]  ;;  %v21_v57 = vld [vmem:[%s4713_s1 + $0x28] sm:$0xff] }
  0x14   :  { %913 = vmatprep.subr.mxu0 %v47_v35  ;;  %983 = vmatpush1.msra.mxu1 %v211_v36  ;;  %v187_v54 = vld [vmem:[%s4713_s1 + $0x558] sm:$0xff]  ;;  %v182_v58 = vld [vmem:[%s4713_s1 + $0x530] sm:$0xff]  ;;  %v17_v59 = vld [vmem:[%s4713_s1 + $0x8] sm:$0xff]  ;;  %v819_v35 = vlaneseq }
  0x15   :  { %914 = vmatpush1.msra.mxu0 %v46_v37  ;;  %984 = vmatprep.subr.mxu1 %v207_v38  ;;  %v181_v60 = vld [vmem:[%s4713_s1 + $0x528] sm:$0xff]  ;;  %v16_v61 = vld [vmem:[%s4713_s1] sm:$0xff]  ;;  %v171_v1 = vld [vmem:[%s4713_s1 + $0x4d8] sm:$0xff] }
  0x16   :  { %915 = vmatprep.subr.mxu0 %v42_v39  ;;  %985 = vmatpush1.msra.mxu1 %v206_v40  ;;  %v177_v62 = vld [vmem:[%s4713_s1 + $0x508] sm:$0xff]  ;;  %v172_v63 = vld [vmem:[%s4713_s1 + $0x4e0] sm:$0xff]  ;;  %v167_v3 = vld [vmem:[%s4713_s1 + $0x4b8] sm:$0xff]  ;;  %vm2002_vm0 = vcmp.lt.s32.totalorder %v819_v35, 640 }
  0x17   :  { %916 = vmatpush1.msra.mxu0 %v41_v41  ;;  %986 = vmatprep.subr.mxu1 %v202_v42  ;;  %v176_v0 = vld [vmem:[%s4713_s1 + $0x500] sm:$0xff]  ;;  %v331_v4 = vld [vmem:[%s4713_s1 + $0x9d8] sm:$0xff]  ;;  %v166_v5 = vld [vmem:[%s4713_s1 + $0x4b0] sm:$0xff] }
  0x18   :  { %917 = vmatprep.subr.mxu0 %v37_v43  ;;  %987 = vmatpush1.msra.mxu1 %v201_v44  ;;  %v332_v2 = vld [vmem:[%s4713_s1 + $0x9e0] sm:$0xff]  ;;  %v327_v6 = vld [vmem:[%s4713_s1 + $0x9b8] sm:$0xff]  ;;  %v162_v7 = vld [vmem:[%s4713_s1 + $0x490] sm:$0xff]  ;;  %v2528_v44 = vshrl.u32 %v819_v35, 7 }
  0x19   :  { %918 = vmatpush1.msra.mxu0 %v36_v45  ;;  %988 = vmatprep.subr.mxu1 %v197_v46  ;;  %v326_v8 = vld [vmem:[%s4713_s1 + $0x9b0] sm:$0xff]  ;;  %v161_v9 = vld [vmem:[%s4713_s1 + $0x488] sm:$0xff]  ;;  %v156_v13 = vld [vmem:[%s4713_s1 + $0x460] sm:$0xff] }
  0x1a   :  { %919 = vmatprep.subr.mxu0 %v32_v47  ;;  %989 = vmatpush1.msra.mxu1 %v196_v48  ;;  %v322_v10 = vld [vmem:[%s4713_s1 + $0x990] sm:$0xff]  ;;  %v157_v11 = vld [vmem:[%s4713_s1 + $0x468] sm:$0xff]  ;;  %v152_v15 = vld [vmem:[%s4713_s1 + $0x440] sm:$0xff] }
  0x1b   :  { %920 = vmatpush1.msra.mxu0 %v31_v49  ;;  %990 = vmatprep.subr.mxu1 %v192_v50  ;;  %v321_v12 = vld [vmem:[%s4713_s1 + $0x988] sm:$0xff]  ;;  %v316_v16 = vld [vmem:[%s4713_s1 + $0x960] sm:$0xff]  ;;  %v151_v17 = vld [vmem:[%s4713_s1 + $0x438] sm:$0xff] }
  0x1c   :  { %921 = vmatprep.subr.mxu0 %v27_v51  ;;  %991 = vmatpush1.msra.mxu1 %v191_v52  ;;  %v317_v14 = vld [vmem:[%s4713_s1 + $0x968] sm:$0xff]  ;;  %v312_v18 = vld [vmem:[%s4713_s1 + $0x940] sm:$0xff]  ;;  %v147_v19 = vld [vmem:[%s4713_s1 + $0x418] sm:$0xff] }
  0x1d   :  { %922 = vmatpush1.msra.mxu0 %v26_v53  ;;  %992 = vmatprep.subr.mxu1 %v187_v54  ;;  %v311_v20 = vld [vmem:[%s4713_s1 + $0x938] sm:$0xff]  ;;  %v146_v21 = vld [vmem:[%s4713_s1 + $0x410] sm:$0xff]  ;;  %v141_v25 = vld [vmem:[%s4713_s1 + $0x3e8] sm:$0xff]  ;;  %v2555_v53 = vsub.s32 1, %v2528_v44 }
  0x1e   :  { %923 = vmatprep.subr.mxu0 %v22_v55  ;;  %993 = vmatpush1.msra.mxu1 %v186_v56  ;;  %v307_v22 = vld [vmem:[%s4713_s1 + $0x918] sm:$0xff]  ;;  %v142_v23 = vld [vmem:[%s4713_s1 + $0x3f0] sm:$0xff]  ;;  %v137_v27 = vld [vmem:[%s4713_s1 + $0x3c8] sm:$0xff] }
  0x1f   :  { %924 = vmatpush1.msra.mxu0 %v21_v57  ;;  %994 = vmatprep.subr.mxu1 %v182_v58  ;;  %v306_v24 = vld [vmem:[%s4713_s1 + $0x910] sm:$0xff]  ;;  %v301_v28 = vld [vmem:[%s4713_s1 + $0x8e8] sm:$0xff]  ;;  %v136_v29 = vld [vmem:[%s4713_s1 + $0x3c0] sm:$0xff] }
  0x20   :  { %925 = vmatprep.subr.mxu0 %v17_v59  ;;  %995 = vmatpush1.msra.mxu1 %v181_v60  ;;  %v302_v26 = vld [vmem:[%s4713_s1 + $0x8f0] sm:$0xff]  ;;  %v297_v30 = vld [vmem:[%s4713_s1 + $0x8c8] sm:$0xff]  ;;  %v132_v31 = vld [vmem:[%s4713_s1 + $0x3a0] sm:$0xff]  ;;  %v2575_v59 = vsub.s32 0, %v2528_v44 }
  0x21   :  { %926 = vmatpush1.msra.mxu0 %v16_v61  ;;  %996 = vmatprep.subr.mxu1 %v177_v62  ;;  %v296_v32 = vld [vmem:[%s4713_s1 + $0x8c0] sm:$0xff]  ;;  %v131_v33 = vld [vmem:[%s4713_s1 + $0x398] sm:$0xff]  ;;  %v126_v38 = vld [vmem:[%s4713_s1 + $0x370] sm:$0xff] }
  0x22   :  { %927 = vmatprep.subr.mxu0 %v172_v63  ;;  %997 = vmatpush1.msra.mxu1 %v176_v0  ;;  %v292_v34 = vld [vmem:[%s4713_s1 + $0x8a0] sm:$0xff]  ;;  %v127_v36 = vld [vmem:[%s4713_s1 + $0x378] sm:$0xff]  ;;  %v122_v40 = vld [vmem:[%s4713_s1 + $0x350] sm:$0xff] }
  0x23   :  { %928 = vmatpush2.msra.mxu0 %v171_v1  ;;  %998 = vmatprep.subr.mxu1 %v332_v2  ;;  %v291_v37 = vld [vmem:[%s4713_s1 + $0x898] sm:$0xff]  ;;  %v286_v41 = vld [vmem:[%s4713_s1 + $0x870] sm:$0xff]  ;;  %v121_v42 = vld [vmem:[%s4713_s1 + $0x348] sm:$0xff]  ;;  %v833_v1 = vsub.s32 3, %v2528_v44 }
  0x24   :  { %929 = vmatprep.subr.mxu0 %v167_v3  ;;  %999 = vmatpush2.msra.mxu1 %v331_v4  ;;  %v287_v39 = vld [vmem:[%s4713_s1 + $0x878] sm:$0xff]  ;;  %v282_v43 = vld [vmem:[%s4713_s1 + $0x850] sm:$0xff]  ;;  %v117_v45 = vld [vmem:[%s4713_s1 + $0x328] sm:$0xff]  ;;  %v829_v3 = vsub.s32 2, %v2528_v44 }
  0x25   :  { %930 = vmatpush2.msra.mxu0 %v166_v5  ;;  %1000 = vmatprep.subr.mxu1 %v327_v6  ;;  %v281_v46 = vld [vmem:[%s4713_s1 + $0x848] sm:$0xff]  ;;  %v116_v47 = vld [vmem:[%s4713_s1 + $0x320] sm:$0xff]  ;;  %v111_v51 = vld [vmem:[%s4713_s1 + $0x2f8] sm:$0xff] }
  0x26   :  { %931 = vmatprep.subr.mxu0 %v162_v7  ;;  %1001 = vmatpush2.msra.mxu1 %v326_v8  ;;  %v277_v48 = vld [vmem:[%s4713_s1 + $0x828] sm:$0xff]  ;;  %v112_v49 = vld [vmem:[%s4713_s1 + $0x300] sm:$0xff]  ;;  %v107_v54 = vld [vmem:[%s4713_s1 + $0x2d8] sm:$0xff] }
  0x27   :  { %932 = vmatpush2.msra.mxu0 %v161_v9  ;;  %1002 = vmatprep.subr.mxu1 %v322_v10  ;;  %v276_v50 = vld [vmem:[%s4713_s1 + $0x820] sm:$0xff]  ;;  %v271_v55 = vld [vmem:[%s4713_s1 + $0x7f8] sm:$0xff]  ;;  %v106_v57 = vld [vmem:[%s4713_s1 + $0x2d0] sm:$0xff] }
  0x28   :  { %933 = vmatprep.subr.mxu0 %v157_v11  ;;  %1003 = vmatpush2.msra.mxu1 %v321_v12  ;;  %v272_v52 = vld [vmem:[%s4713_s1 + $0x800] sm:$0xff]  ;;  %v267_v58 = vld [vmem:[%s4713_s1 + $0x7d8] sm:$0xff]  ;;  %v102_v60 = vld [vmem:[%s4713_s1 + $0x2b0] sm:$0xff] }
  0x29   :  { %934 = vmatpush2.msra.mxu0 %v156_v13  ;;  %1004 = vmatprep.subr.mxu1 %v317_v14  ;;  %v2566_v56 = vld [vmem:[%s4714_s0] sm:$0xff]  ;;  %v266_v61 = vld [vmem:[%s4713_s1 + $0x7d0] sm:$0xff]  ;;  %v101_v62 = vld [vmem:[%s4713_s1 + $0x2a8] sm:$0xff] }
  0x2a   :  { %935 = vmatprep.subr.mxu0 %v152_v15  ;;  %1005 = vmatpush2.msra.mxu1 %v316_v16  ;;  %v262_v63 = vld [vmem:[%s4713_s1 + $0x7b0] sm:$0xff]  ;;  %v2591_v0 = vrot.slane %v2566_v56, %v2555_v53  ;;  %v97_v2 = vld [vmem:[%s4713_s1 + $0x288] sm:$0xff]  ;;  %v96_v4 = vld [vmem:[%s4713_s1 + $0x280] sm:$0xff]  ;;  %v2606_v6 = vrot.slane %v2566_v56, %v2575_v59  ;;  %v2621_v10 = vrot.slane %v2566_v56, %v833_v1 }
  0x2b   :  { %936 = vmatpush2.msra.mxu0 %v151_v17  ;;  %1006 = vmatprep.subr.mxu1 %v312_v18  ;;  %v261_v5 = vld [vmem:[%s4713_s1 + $0x7a8] sm:$0xff]  ;;  %v412_v8 = vld [vmem:[%s4713_s1 + $0xc60] sm:$0xff]  ;;  %v411_v11 = vld [vmem:[%s4713_s1 + $0xc58] sm:$0xff]  ;;  %v2629_v12 = vrot.slane %v2566_v56, %v829_v3 }
  0x2c   :  { %937 = vmatprep.subr.mxu0 %v147_v19  ;;  %1007 = vmatpush2.msra.mxu1 %v311_v20  ;;  %v257_v7 = vld [vmem:[%s4713_s1 + $0x788] sm:$0xff]  ;;  %v256_v9 = vld [vmem:[%s4713_s1 + $0x780] sm:$0xff]  ;;  %v407_v13 = vld [vmem:[%s4713_s1 + $0xc38] sm:$0xff] }
  0x2d   :  { %938 = vmatpush2.msra.mxu0 %v146_v21  ;;  %1008 = vmatprep.subr.mxu1 %v307_v22  ;;  %v572_v14 = vld [vmem:[%s4713_s1 + $0x1160] sm:$0xff]  ;;  %v406_v15 = vld [vmem:[%s4713_s1 + $0xc30] sm:$0xff]  ;;  %v571_v16 = vld [vmem:[%s4713_s1 + $0x1158] sm:$0xff] }
  0x2e   :  { %939 = vmatprep.subr.mxu0 %v142_v23  ;;  %1009 = vmatpush2.msra.mxu1 %v306_v24  ;;  %v402_v17 = vld [vmem:[%s4713_s1 + $0xc10] sm:$0xff]  ;;  %v567_v18 = vld [vmem:[%s4713_s1 + $0x1138] sm:$0xff]  ;;  %v401_v19 = vld [vmem:[%s4713_s1 + $0xc08] sm:$0xff] }
  0x2f   :  { %940 = vmatpush2.msra.mxu0 %v141_v25  ;;  %1010 = vmatprep.subr.mxu1 %v302_v26  ;;  %v566_v20 = vld [vmem:[%s4713_s1 + $0x1130] sm:$0xff]  ;;  %v397_v21 = vld [vmem:[%s4713_s1 + $0xbe8] sm:$0xff]  ;;  %v396_v23 = vld [vmem:[%s4713_s1 + $0xbe0] sm:$0xff] }
  0x30   :  { %941 = vmatprep.subr.mxu0 %v137_v27  ;;  %1011 = vmatpush2.msra.mxu1 %v301_v28  ;;  %v562_v22 = vld [vmem:[%s4713_s1 + $0x1110] sm:$0xff]  ;;  %v561_v24 = vld [vmem:[%s4713_s1 + $0x1108] sm:$0xff]  ;;  %v392_v25 = vld [vmem:[%s4713_s1 + $0xbc0] sm:$0xff] }
  0x31   :  { %942 = vmatpush2.msra.mxu0 %v136_v29  ;;  %1012 = vmatprep.subr.mxu1 %v297_v30  ;;  %v557_v26 = vld [vmem:[%s4713_s1 + $0x10e8] sm:$0xff]  ;;  %v391_v27 = vld [vmem:[%s4713_s1 + $0xbb8] sm:$0xff]  ;;  %v556_v28 = vld [vmem:[%s4713_s1 + $0x10e0] sm:$0xff] }
  0x32   :  { %943 = vmatprep.subr.mxu0 %v132_v31  ;;  %1013 = vmatpush2.msra.mxu1 %v296_v32  ;;  %v387_v29 = vld [vmem:[%s4713_s1 + $0xb98] sm:$0xff]  ;;  %v552_v30 = vld [vmem:[%s4713_s1 + $0x10c0] sm:$0xff]  ;;  %v386_v31 = vld [vmem:[%s4713_s1 + $0xb90] sm:$0xff] }
  0x33   :  { %944 = vmatpush2.msra.mxu0 %v131_v33  ;;  %1014 = vmatprep.subr.mxu1 %v292_v34  ;;  %v551_v32 = vld [vmem:[%s4713_s1 + $0x10b8] sm:$0xff]  ;;  %v382_v33 = vld [vmem:[%s4713_s1 + $0xb70] sm:$0xff] }
  0x34   :  { %945 = vmatprep.subr.mxu0 %v127_v36  ;;  %1015 = vmatpush2.msra.mxu1 %v291_v37  ;;  %v547_v34 = vld [vmem:[%s4713_s1 + $0x1098] sm:$0xff]  ;;  %v381_v36 = vld [vmem:[%s4713_s1 + $0xb68] sm:$0xff]  ;;  %v546_v37 = vld [vmem:[%s4713_s1 + $0x1090] sm:$0xff] }
  0x35   :  { %946 = vmatpush2.msra.mxu0 %v126_v38  ;;  %1016 = vmatprep.subr.mxu1 %v287_v39  ;;  %v377_v38 = vld [vmem:[%s4713_s1 + $0xb48] sm:$0xff]  ;;  %v542_v39 = vld [vmem:[%s4713_s1 + $0x1070] sm:$0xff] }
  0x36   :  { %947 = vmatprep.subr.mxu0 %v122_v40  ;;  %1017 = vmatpush2.msra.mxu1 %v286_v41  ;;  %v376_v40 = vld [vmem:[%s4713_s1 + $0xb40] sm:$0xff]  ;;  %v541_v41 = vld [vmem:[%s4713_s1 + $0x1068] sm:$0xff] }
  0x37   :  { %948 = vmatpush2.msra.mxu0 %v121_v42  ;;  %1018 = vmatprep.subr.mxu1 %v282_v43  ;;  %v372_v42 = vld [vmem:[%s4713_s1 + $0xb20] sm:$0xff]  ;;  %v537_v43 = vld [vmem:[%s4713_s1 + $0x1048] sm:$0xff] }
  0x38   :  { %949 = vmatprep.subr.mxu0 %v117_v45  ;;  %1019 = vmatpush2.msra.mxu1 %v281_v46  ;;  %v371_v45 = vld [vmem:[%s4713_s1 + $0xb18] sm:$0xff]  ;;  %v536_v46 = vld [vmem:[%s4713_s1 + $0x1040] sm:$0xff] }
  0x39   :  { %950 = vmatpush2.msra.mxu0 %v116_v47  ;;  %1020 = vmatprep.subr.mxu1 %v277_v48  ;;  %v367_v47 = vld [vmem:[%s4713_s1 + $0xaf8] sm:$0xff]  ;;  %v532_v48 = vld [vmem:[%s4713_s1 + $0x1020] sm:$0xff] }
  0x3a   :  { %951 = vmatprep.subr.mxu0 %v112_v49  ;;  %1021 = vmatpush2.msra.mxu1 %v276_v50  ;;  %v366_v49 = vld [vmem:[%s4713_s1 + $0xaf0] sm:$0xff]  ;;  %v531_v50 = vld [vmem:[%s4713_s1 + $0x1018] sm:$0xff] }
  0x3b   :  { %952 = vmatpush2.msra.mxu0 %v111_v51  ;;  %1022 = vmatprep.subr.mxu1 %v272_v52  ;;  %v362_v51 = vld [vmem:[%s4713_s1 + $0xad0] sm:$0xff]  ;;  %v527_v52 = vld [vmem:[%s4713_s1 + $0xff8] sm:$0xff] }
  0x3c   :  { %953 = vmatprep.subr.mxu0 %v107_v54  ;;  %1023 = vmatpush2.msra.mxu1 %v271_v55  ;;  %v361_v54 = vld [vmem:[%s4713_s1 + $0xac8] sm:$0xff]  ;;  %v526_v55 = vld [vmem:[%s4713_s1 + $0xff0] sm:$0xff] }
  0x3d   :  { %954 = vmatpush2.msra.mxu0 %v106_v57  ;;  %1024 = vmatprep.subr.mxu1 %v267_v58  ;;  %v357_v57 = vld [vmem:[%s4713_s1 + $0xaa8] sm:$0xff]  ;;  %v522_v58 = vld [vmem:[%s4713_s1 + $0xfd0] sm:$0xff] }
  0x3e   :  { %955 = vmatprep.subr.mxu0 %v102_v60  ;;  %1025 = vmatpush2.msra.mxu1 %v266_v61  ;;  %v356_v60 = vld [vmem:[%s4713_s1 + $0xaa0] sm:$0xff]  ;;  %v521_v61 = vld [vmem:[%s4713_s1 + $0xfc8] sm:$0xff] }
  0x3f   :  { %956 = vmatpush2.msra.mxu0 %v101_v62  ;;  %1026 = vmatprep.subr.mxu1 %v262_v63  ;;  %v352_v62 = vld [vmem:[%s4713_s1 + $0xa80] sm:$0xff]  ;;  %v517_v63 = vld [vmem:[%s4713_s1 + $0xfa8] sm:$0xff] }
  0x40   :  { %957 = vmatprep.subr.mxu0 %v97_v2  ;;  %959 = vmatprep.mubr.f32.mxu0 %v2591_v0  ;;  %v351_v2 = vld [vmem:[%s4713_s1 + $0xa78] sm:$0xff] }
  0x41   :  { %958 = vmatpush2.msra.mxu0 %v96_v4  ;;  %1027 = vmatpush2.msra.mxu1 %v261_v5  ;;  %v516_v4 = vld [vmem:[%s4713_s1 + $0xfa0] sm:$0xff]  ;;  %v347_v5 = vld [vmem:[%s4713_s1 + $0xa58] sm:$0xff] }
  0x42   :  { %960 = vmatmul.mubr.f32.vlgmr.msra.gmra.mxu0 %v2606_v6  ;;  %1028 = vmatprep.subr.mxu1 %v257_v7  ;;  %v512_v7 = vld [vmem:[%s4713_s1 + $0xf80] sm:$0xff] }
  0x43   :  { %1037 = vmatprep.subr.mxu0 %v412_v8  ;;  %1029 = vmatpush2.msra.mxu1 %v256_v9  ;;  %v346_v8 = vld [vmem:[%s4713_s1 + $0xa50] sm:$0xff]  ;;  %v511_v9 = vld [vmem:[%s4713_s1 + $0xf78] sm:$0xff] }
  0x44   :  { %1030 = vmatprep.mubr.f32.mxu1 %v2621_v10  ;;  %1038 = vmatpush1.msra.mxu0 %v411_v11  ;;  %v342_v11 = vld [vmem:[%s4713_s1 + $0xa30] sm:$0xff] }
  0x45   :  { %1031 = vmatmul.mubr.f32.vlgmr.msra.gmra.mxu1 %v2629_v12  ;;  %1039 = vmatprep.subr.mxu0 %v407_v13  ;;  %v507_v13 = vld [vmem:[%s4713_s1 + $0xf58] sm:$0xff] }
  0x46   :  { %1108 = vmatprep.subr.mxu1 %v572_v14  ;;  %1040 = vmatpush1.msra.mxu0 %v406_v15  ;;  %v341_v14 = vld [vmem:[%s4713_s1 + $0xa28] sm:$0xff]  ;;  %v506_v15 = vld [vmem:[%s4713_s1 + $0xf50] sm:$0xff] }
  0x47   :  { %1109 = vmatpush1.msra.mxu1 %v571_v16  ;;  %1041 = vmatprep.subr.mxu0 %v402_v17  ;;  %v337_v16 = vld [vmem:[%s4713_s1 + $0xa08] sm:$0xff]  ;;  %v502_v17 = vld [vmem:[%s4713_s1 + $0xf30] sm:$0xff] }
  0x48   :  { %1110 = vmatprep.subr.mxu1 %v567_v18  ;;  %1042 = vmatpush1.msra.mxu0 %v401_v19  ;;  %v336_v18 = vld [vmem:[%s4713_s1 + $0xa00] sm:$0xff]  ;;  %v501_v19 = vld [vmem:[%s4713_s1 + $0xf28] sm:$0xff] }
  0x49   :  { %1111 = vmatpush1.msra.mxu1 %v566_v20  ;;  %1043 = vmatprep.subr.mxu0 %v397_v21  ;;  %v492_v20 = vld [vmem:[%s4713_s1 + $0xee0] sm:$0xff]  ;;  %v497_v21 = vld [vmem:[%s4713_s1 + $0xf08] sm:$0xff] }
  0x4a   :  { %1112 = vmatprep.subr.mxu1 %v562_v22  ;;  %1044 = vmatpush1.msra.mxu0 %v396_v23  ;;  %v491_v22 = vld [vmem:[%s4713_s1 + $0xed8] sm:$0xff]  ;;  %v496_v23 = vld [vmem:[%s4713_s1 + $0xf00] sm:$0xff] }
  0x4b   :  { %1113 = vmatpush1.msra.mxu1 %v561_v24  ;;  %1045 = vmatprep.subr.mxu0 %v392_v25  ;;  %v487_v24 = vld [vmem:[%s4713_s1 + $0xeb8] sm:$0xff]  ;;  %v652_v25 = vld [vmem:[%s4713_s1 + $0x13e0] sm:$0xff] }
  0x4c   :  { %1114 = vmatprep.subr.mxu1 %v557_v26  ;;  %1046 = vmatpush1.msra.mxu0 %v391_v27  ;;  %v486_v26 = vld [vmem:[%s4713_s1 + $0xeb0] sm:$0xff]  ;;  %v651_v27 = vld [vmem:[%s4713_s1 + $0x13d8] sm:$0xff] }
  0x4d   :  { %1115 = vmatpush1.msra.mxu1 %v556_v28  ;;  %1047 = vmatprep.subr.mxu0 %v387_v29  ;;  %v482_v28 = vld [vmem:[%s4713_s1 + $0xe90] sm:$0xff]  ;;  %v647_v29 = vld [vmem:[%s4713_s1 + $0x13b8] sm:$0xff] }
  0x4e   :  { %1116 = vmatprep.subr.mxu1 %v552_v30  ;;  %1048 = vmatpush1.msra.mxu0 %v386_v31  ;;  %v481_v30 = vld [vmem:[%s4713_s1 + $0xe88] sm:$0xff]  ;;  %v646_v31 = vld [vmem:[%s4713_s1 + $0x13b0] sm:$0xff] }
  0x4f   :  { %1117 = vmatpush1.msra.mxu1 %v551_v32  ;;  %1049 = vmatprep.subr.mxu0 %v382_v33  ;;  %v477_v32 = vld [vmem:[%s4713_s1 + $0xe68] sm:$0xff]  ;;  %v642_v33 = vld [vmem:[%s4713_s1 + $0x1390] sm:$0xff] }
  0x50   :  { %1118 = vmatprep.subr.mxu1 %v547_v34  ;;  %1050 = vmatpush1.msra.mxu0 %v381_v36  ;;  %v476_v34 = vld [vmem:[%s4713_s1 + $0xe60] sm:$0xff]  ;;  %v641_v36 = vld [vmem:[%s4713_s1 + $0x1388] sm:$0xff] }
  0x51   :  { %1119 = vmatpush1.msra.mxu1 %v546_v37  ;;  %1051 = vmatprep.subr.mxu0 %v377_v38  ;;  %v472_v37 = vld [vmem:[%s4713_s1 + $0xe40] sm:$0xff]  ;;  %v637_v38 = vld [vmem:[%s4713_s1 + $0x1368] sm:$0xff] }
  0x52   :  { %1120 = vmatprep.subr.mxu1 %v542_v39  ;;  %1052 = vmatpush1.msra.mxu0 %v376_v40  ;;  %v471_v39 = vld [vmem:[%s4713_s1 + $0xe38] sm:$0xff]  ;;  %v636_v40 = vld [vmem:[%s4713_s1 + $0x1360] sm:$0xff] }
  0x53   :  { %1121 = vmatpush1.msra.mxu1 %v541_v41  ;;  %1053 = vmatprep.subr.mxu0 %v372_v42  ;;  %v467_v41 = vld [vmem:[%s4713_s1 + $0xe18] sm:$0xff]  ;;  %v632_v42 = vld [vmem:[%s4713_s1 + $0x1340] sm:$0xff] }
  0x54   :  { %1122 = vmatprep.subr.mxu1 %v537_v43  ;;  %1054 = vmatpush1.msra.mxu0 %v371_v45  ;;  %v466_v43 = vld [vmem:[%s4713_s1 + $0xe10] sm:$0xff]  ;;  %v631_v45 = vld [vmem:[%s4713_s1 + $0x1338] sm:$0xff] }
  0x55   :  { %1123 = vmatpush1.msra.mxu1 %v536_v46  ;;  %1055 = vmatprep.subr.mxu0 %v367_v47  ;;  %v462_v46 = vld [vmem:[%s4713_s1 + $0xdf0] sm:$0xff]  ;;  %v627_v47 = vld [vmem:[%s4713_s1 + $0x1318] sm:$0xff] }
  0x56   :  { %1124 = vmatprep.subr.mxu1 %v532_v48  ;;  %1056 = vmatpush1.msra.mxu0 %v366_v49  ;;  %v461_v48 = vld [vmem:[%s4713_s1 + $0xde8] sm:$0xff]  ;;  %v626_v49 = vld [vmem:[%s4713_s1 + $0x1310] sm:$0xff] }
  0x57   :  { %1125 = vmatpush1.msra.mxu1 %v531_v50  ;;  %1057 = vmatprep.subr.mxu0 %v362_v51  ;;  %v457_v50 = vld [vmem:[%s4713_s1 + $0xdc8] sm:$0xff]  ;;  %v622_v51 = vld [vmem:[%s4713_s1 + $0x12f0] sm:$0xff] }
  0x58   :  { %1126 = vmatprep.subr.mxu1 %v527_v52  ;;  %1058 = vmatpush1.msra.mxu0 %v361_v54  ;;  %v456_v52 = vld [vmem:[%s4713_s1 + $0xdc0] sm:$0xff]  ;;  %v621_v54 = vld [vmem:[%s4713_s1 + $0x12e8] sm:$0xff] }
  0x59   :  { %1127 = vmatpush1.msra.mxu1 %v526_v55  ;;  %1059 = vmatprep.subr.mxu0 %v357_v57  ;;  %v452_v55 = vld [vmem:[%s4713_s1 + $0xda0] sm:$0xff]  ;;  %v617_v57 = vld [vmem:[%s4713_s1 + $0x12c8] sm:$0xff] }
  0x5a   :  { %1128 = vmatprep.subr.mxu1 %v522_v58  ;;  %1060 = vmatpush1.msra.mxu0 %v356_v60  ;;  %v451_v58 = vld [vmem:[%s4713_s1 + $0xd98] sm:$0xff]  ;;  %v616_v60 = vld [vmem:[%s4713_s1 + $0x12c0] sm:$0xff] }
  0x5b   :  { %1129 = vmatpush1.msra.mxu1 %v521_v61  ;;  %1061 = vmatprep.subr.mxu0 %v352_v62  ;;  %v447_v61 = vld [vmem:[%s4713_s1 + $0xd78] sm:$0xff]  ;;  %v612_v62 = vld [vmem:[%s4713_s1 + $0x12a0] sm:$0xff] }
  0x5c   :  { %1130 = vmatprep.subr.mxu1 %v517_v63  ;;  %1062 = vmatpush1.msra.mxu0 %v351_v2  ;;  %v446_v63 = vld [vmem:[%s4713_s1 + $0xd70] sm:$0xff]  ;;  %v611_v2 = vld [vmem:[%s4713_s1 + $0x1298] sm:$0xff] }
  0x5d   :  { %1131 = vmatpush1.msra.mxu1 %v516_v4  ;;  %1063 = vmatprep.subr.mxu0 %v347_v5  ;;  %v442_v4 = vld [vmem:[%s4713_s1 + $0xd50] sm:$0xff]  ;;  %v607_v5 = vld [vmem:[%s4713_s1 + $0x1278] sm:$0xff] }
  0x5e   :  { %1132 = vmatprep.subr.mxu1 %v512_v7  ;;  %1064 = vmatpush1.msra.mxu0 %v346_v8  ;;  %v441_v7 = vld [vmem:[%s4713_s1 + $0xd48] sm:$0xff]  ;;  %v606_v8 = vld [vmem:[%s4713_s1 + $0x1270] sm:$0xff] }
  0x5f   :  { %1133 = vmatpush1.msra.mxu1 %v511_v9  ;;  %1065 = vmatprep.subr.mxu0 %v342_v11  ;;  %v437_v9 = vld [vmem:[%s4713_s1 + $0xd28] sm:$0xff]  ;;  %v602_v11 = vld [vmem:[%s4713_s1 + $0x1250] sm:$0xff] }
  0x60   :  { %1134 = vmatprep.subr.mxu1 %v507_v13  ;;  %1066 = vmatpush1.msra.mxu0 %v341_v14  ;;  %v436_v13 = vld [vmem:[%s4713_s1 + $0xd20] sm:$0xff]  ;;  %v601_v14 = vld [vmem:[%s4713_s1 + $0x1248] sm:$0xff] }
  0x61   :  { %1135 = vmatpush1.msra.mxu1 %v506_v15  ;;  %1067 = vmatprep.subr.mxu0 %v337_v16  ;;  %v432_v15 = vld [vmem:[%s4713_s1 + $0xd00] sm:$0xff]  ;;  %v597_v16 = vld [vmem:[%s4713_s1 + $0x1228] sm:$0xff] }
  0x62   :  { %1136 = vmatprep.subr.mxu1 %v502_v17  ;;  %1068 = vmatpush1.msra.mxu0 %v336_v18  ;;  %v431_v17 = vld [vmem:[%s4713_s1 + $0xcf8] sm:$0xff]  ;;  %v596_v18 = vld [vmem:[%s4713_s1 + $0x1220] sm:$0xff] }
  0x63   :  { %1137 = vmatpush1.msra.mxu1 %v501_v19  ;;  %1069 = vmatprep.subr.mxu0 %v492_v20  ;;  %v427_v19 = vld [vmem:[%s4713_s1 + $0xcd8] sm:$0xff]  ;;  %v592_v20 = vld [vmem:[%s4713_s1 + $0x1200] sm:$0xff] }
  0x64   :  { %1138 = vmatprep.subr.mxu1 %v497_v21  ;;  %1070 = vmatpush2.msra.mxu0 %v491_v22  ;;  %v426_v21 = vld [vmem:[%s4713_s1 + $0xcd0] sm:$0xff]  ;;  %v841_v22 = vsub.s32 5, %v2528_v44 }
  0x65   :  { %1139 = vmatpush1.msra.mxu1 %v496_v23  ;;  %1071 = vmatprep.subr.mxu0 %v487_v24  ;;  %v591_v23 = vld [vmem:[%s4713_s1 + $0x11f8] sm:$0xff]  ;;  %v422_v24 = vld [vmem:[%s4713_s1 + $0xcb0] sm:$0xff] }
  0x66   :  { %1140 = vmatprep.subr.mxu1 %v652_v25  ;;  %1072 = vmatpush2.msra.mxu0 %v486_v26  ;;  %v837_v25 = vsub.s32 4, %v2528_v44  ;;  %v587_v26 = vld [vmem:[%s4713_s1 + $0x11d8] sm:$0xff] }
  0x67   :  { %1141 = vmatpush2.msra.mxu1 %v651_v27  ;;  %1073 = vmatprep.subr.mxu0 %v482_v28  ;;  %v421_v27 = vld [vmem:[%s4713_s1 + $0xca8] sm:$0xff]  ;;  %v586_v28 = vld [vmem:[%s4713_s1 + $0x11d0] sm:$0xff] }
  0x68   :  { %1142 = vmatprep.subr.mxu1 %v647_v29  ;;  %1074 = vmatpush2.msra.mxu0 %v481_v30  ;;  %v417_v29 = vld [vmem:[%s4713_s1 + $0xc88] sm:$0xff]  ;;  %v849_v30 = vsub.s32 7, %v2528_v44 }
  0x69   :  { %1143 = vmatpush2.msra.mxu1 %v646_v31  ;;  %1075 = vmatprep.subr.mxu0 %v477_v32  ;;  %v582_v31 = vld [vmem:[%s4713_s1 + $0x11b0] sm:$0xff]  ;;  %v416_v32 = vld [vmem:[%s4713_s1 + $0xc80] sm:$0xff] }
  0x6a   :  { %1144 = vmatprep.subr.mxu1 %v642_v33  ;;  %1076 = vmatpush2.msra.mxu0 %v476_v34  ;;  %v3007_v33 = vrot.slane %v2566_v56, %v841_v22  ;;  %v845_v34 = vsub.s32 6, %v2528_v44  ;;  %v54_v22 = vld [vmem:[%s4713_s1 + $0x130] sm:$0xff] }
  0x6b   :  { %1145 = vmatpush2.msra.mxu1 %v641_v36  ;;  %1077 = vmatprep.subr.mxu0 %v472_v37  ;;  %v581_v36 = vld [vmem:[%s4713_s1 + $0x11a8] sm:$0xff]  ;;  %v3016_v37 = vrot.slane %v2566_v56, %v837_v25 }
  0x6c   :  { %1146 = vmatprep.subr.mxu1 %v637_v38  ;;  %1078 = vmatpush2.msra.mxu0 %v471_v39  ;;  %v577_v38 = vld [vmem:[%s4713_s1 + $0x1188] sm:$0xff]  ;;  %v732_v39 = vld [vmem:[%s4713_s1 + $0x1660] sm:$0xff] }
  0x6d   :  { %1147 = vmatpush2.msra.mxu1 %v636_v40  ;;  %1079 = vmatprep.subr.mxu0 %v467_v41  ;;  %v576_v40 = vld [vmem:[%s4713_s1 + $0x1180] sm:$0xff]  ;;  %v3028_v41 = vrot.slane %v2566_v56, %v849_v30  ;;  %v677_v30 = vld [vmem:[%s4713_s1 + $0x14a8] sm:$0xff] }
  0x6e   :  { %1148 = vmatprep.subr.mxu1 %v632_v42  ;;  %1080 = vmatpush2.msra.mxu0 %v466_v43  ;;  %v731_v42 = vld [vmem:[%s4713_s1 + $0x1658] sm:$0xff]  ;;  %v3035_v43 = vrot.slane %v2566_v56, %v845_v34  ;;  %v93_v56 = vld [vmem:[%s4713_s1 + $0x268] sm:$0xff] }
  0x6f   :  { %1149 = vmatpush2.msra.mxu1 %v631_v45  ;;  %1081 = vmatprep.subr.mxu0 %v462_v46  ;;  %v727_v45 = vld [vmem:[%s4713_s1 + $0x1638] sm:$0xff]  ;;  %v94_v46 = vld [vmem:[%s4713_s1 + $0x270] sm:$0xff] }
  0x70   :  { %1150 = vmatprep.subr.mxu1 %v627_v47  ;;  %1082 = vmatpush2.msra.mxu0 %v461_v48  ;;  %v726_v47 = vld [vmem:[%s4713_s1 + $0x1630] sm:$0xff]  ;;  %v43_v34 = vld [vmem:[%s4713_s1 + $0xd8] sm:$0xff] }
  0x71   :  { %1151 = vmatpush2.msra.mxu1 %v626_v49  ;;  %1083 = vmatprep.subr.mxu0 %v457_v50  ;;  %v722_v48 = vld [vmem:[%s4713_s1 + $0x1610] sm:$0xff]  ;;  %v89_v49 = vld [vmem:[%s4713_s1 + $0x248] sm:$0xff] }
  0x72   :  { %1152 = vmatprep.subr.mxu1 %v622_v51  ;;  %1084 = vmatpush2.msra.mxu0 %v456_v52  ;;  %v721_v50 = vld [vmem:[%s4713_s1 + $0x1608] sm:$0xff]  ;;  %v88_v51 = vld [vmem:[%s4713_s1 + $0x240] sm:$0xff] }
  0x73   :  { %1153 = vmatpush2.msra.mxu1 %v621_v54  ;;  %1085 = vmatprep.subr.mxu0 %v452_v55  ;;  %v717_v52 = vld [vmem:[%s4713_s1 + $0x15e8] sm:$0xff]  ;;  %v84_v54 = vld [vmem:[%s4713_s1 + $0x220] sm:$0xff] }
  0x74   :  { %1154 = vmatprep.subr.mxu1 %v617_v57  ;;  %1086 = vmatpush2.msra.mxu0 %v451_v58  ;;  %v716_v55 = vld [vmem:[%s4713_s1 + $0x15e0] sm:$0xff]  ;;  %v83_v57 = vld [vmem:[%s4713_s1 + $0x218] sm:$0xff] }
  0x75   :  { %1155 = vmatpush2.msra.mxu1 %v616_v60  ;;  %1087 = vmatprep.subr.mxu0 %v447_v61  ;;  %v712_v58 = vld [vmem:[%s4713_s1 + $0x15c0] sm:$0xff]  ;;  %v79_v60 = vld [vmem:[%s4713_s1 + $0x1f8] sm:$0xff] }
  0x76   :  { %1156 = vmatprep.subr.mxu1 %v612_v62  ;;  %1088 = vmatpush2.msra.mxu0 %v446_v63  ;;  %v711_v61 = vld [vmem:[%s4713_s1 + $0x15b8] sm:$0xff]  ;;  %v78_v62 = vld [vmem:[%s4713_s1 + $0x1f0] sm:$0xff] }
  0x77   :  { %1157 = vmatpush2.msra.mxu1 %v611_v2  ;;  %1089 = vmatprep.subr.mxu0 %v442_v4  ;;  %v707_v63 = vld [vmem:[%s4713_s1 + $0x1598] sm:$0xff]  ;;  %v74_v2 = vld [vmem:[%s4713_s1 + $0x1d0] sm:$0xff] }
  0x78   :  { %1158 = vmatprep.subr.mxu1 %v607_v5  ;;  %1090 = vmatpush2.msra.mxu0 %v441_v7  ;;  %v706_v4 = vld [vmem:[%s4713_s1 + $0x1590] sm:$0xff]  ;;  %v73_v5 = vld [vmem:[%s4713_s1 + $0x1c8] sm:$0xff] }
  0x79   :  { %1159 = vmatpush2.msra.mxu1 %v606_v8  ;;  %1091 = vmatprep.subr.mxu0 %v437_v9  ;;  %v702_v7 = vld [vmem:[%s4713_s1 + $0x1570] sm:$0xff]  ;;  %v69_v8 = vld [vmem:[%s4713_s1 + $0x1a8] sm:$0xff] }
  0x7a   :  { %1160 = vmatprep.subr.mxu1 %v602_v11  ;;  %1092 = vmatpush2.msra.mxu0 %v436_v13  ;;  %v701_v9 = vld [vmem:[%s4713_s1 + $0x1568] sm:$0xff]  ;;  %v68_v11 = vld [vmem:[%s4713_s1 + $0x1a0] sm:$0xff] }
  0x7b   :  { %1161 = vmatpush2.msra.mxu1 %v601_v14  ;;  %1093 = vmatprep.subr.mxu0 %v432_v15  ;;  %v697_v13 = vld [vmem:[%s4713_s1 + $0x1548] sm:$0xff]  ;;  %v64_v14 = vld [vmem:[%s4713_s1 + $0x180] sm:$0xff] }
  0x7c   :  { %1162 = vmatprep.subr.mxu1 %v597_v16  ;;  %1094 = vmatpush2.msra.mxu0 %v431_v17  ;;  %v696_v15 = vld [vmem:[%s4713_s1 + $0x1540] sm:$0xff]  ;;  %v63_v16 = vld [vmem:[%s4713_s1 + $0x178] sm:$0xff] }
  0x7d   :  { %1163 = vmatpush2.msra.mxu1 %v596_v18  ;;  %1095 = vmatprep.subr.mxu0 %v427_v19  ;;  %v692_v17 = vld [vmem:[%s4713_s1 + $0x1520] sm:$0xff]  ;;  %v59_v18 = vld [vmem:[%s4713_s1 + $0x158] sm:$0xff] }
  0x7e   :  { %1164 = vmatprep.subr.mxu1 %v592_v20  ;;  %1096 = vmatpush2.msra.mxu0 %v426_v21  ;;  %v691_v19 = vld [vmem:[%s4713_s1 + $0x1518] sm:$0xff]  ;;  %v58_v20 = vld [vmem:[%s4713_s1 + $0x150] sm:$0xff] }
  0x7f   :  { %1165 = vmatpush2.msra.mxu1 %v591_v23  ;;  %1097 = vmatprep.subr.mxu0 %v422_v24  ;;  %v687_v21 = vld [vmem:[%s4713_s1 + $0x14f8] sm:$0xff]  ;;  %v686_v23 = vld [vmem:[%s4713_s1 + $0x14f0] sm:$0xff]  ;;  %v53_v24 = vld [vmem:[%s4713_s1 + $0x128] sm:$0xff] }
  0x80   :  { %1166 = vmatprep.subr.mxu1 %v587_v26  ;;  %1098 = vmatpush2.msra.mxu0 %v421_v27  ;;  %v682_v26 = vld [vmem:[%s4713_s1 + $0x14d0] sm:$0xff]  ;;  %v49_v27 = vld [vmem:[%s4713_s1 + $0x108] sm:$0xff] }
  0x81   :  { %1167 = vmatpush2.msra.mxu1 %v586_v28  ;;  %1099 = vmatprep.subr.mxu0 %v417_v29  ;;  %v681_v28 = vld [vmem:[%s4713_s1 + $0x14c8] sm:$0xff]  ;;  %v48_v29 = vld [vmem:[%s4713_s1 + $0x100] sm:$0xff] }
  0x82   :  { %1168 = vmatprep.subr.mxu1 %v582_v31  ;;  %1100 = vmatpush2.msra.mxu0 %v416_v32  ;;  %v44_v31 = vld [vmem:[%s4713_s1 + $0xe0] sm:$0xff] }
  0x83   :  { %1101 = vmatprep.mubr.f32.mxu0 %v3007_v33  ;;  %1169 = vmatpush2.msra.mxu1 %v581_v36  ;;  %v676_v32 = vld [vmem:[%s4713_s1 + $0x14a0] sm:$0xff] }
  0x84   :  { %1102 = vmatmul.mubr.f32.vlgmr.msra.gmra.mxu0 %v3016_v37  ;;  %1170 = vmatprep.subr.mxu1 %v577_v38  ;;  %v672_v36 = vld [vmem:[%s4713_s1 + $0x1480] sm:$0xff]  ;;  %v39_v38 = vld [vmem:[%s4713_s1 + $0xb8] sm:$0xff] }
  0x85   :  { %1179 = vmatprep.subr.mxu0 %v732_v39  ;;  %1171 = vmatpush2.msra.mxu1 %v576_v40  ;;  %v671_v39 = vld [vmem:[%s4713_s1 + $0x1478] sm:$0xff]  ;;  %v38_v40 = vld [vmem:[%s4713_s1 + $0xb0] sm:$0xff] }
  0x86   :  { %1172 = vmatprep.mubr.f32.mxu1 %v3028_v41  ;;  %1180 = vmatpush1.msra.mxu0 %v731_v42  ;;  %v667_v42 = vld [vmem:[%s4713_s1 + $0x1458] sm:$0xff] }
  0x87   :  { %1173 = vmatmul.mubr.f32.vlgmr.msra.gmra.mxu1 %v3035_v43  ;;  %1181 = vmatprep.subr.mxu0 %v727_v45  ;;  %v34_v45 = vld [vmem:[%s4713_s1 + $0x90] sm:$0xff] }
  0x88   :  { %1250 = vmatprep.subr.mxu1 %v94_v46  ;;  %1182 = vmatpush1.msra.mxu0 %v726_v47  ;;  %v666_v46 = vld [vmem:[%s4713_s1 + $0x1450] sm:$0xff]  ;;  %v33_v47 = vld [vmem:[%s4713_s1 + $0x88] sm:$0xff] }
  0x89   :  { %1251 = vmatpush1.msra.mxu1 %v93_v56  ;;  %1183 = vmatprep.subr.mxu0 %v722_v48  ;;  %v662_v56 = vld [vmem:[%s4713_s1 + $0x1430] sm:$0xff]  ;;  %v29_v48 = vld [vmem:[%s4713_s1 + $0x68] sm:$0xff] }
  0x8a   :  { %1252 = vmatprep.subr.mxu1 %v89_v49  ;;  %1184 = vmatpush1.msra.mxu0 %v721_v50  ;;  %v661_v49 = vld [vmem:[%s4713_s1 + $0x1428] sm:$0xff]  ;;  %v28_v50 = vld [vmem:[%s4713_s1 + $0x60] sm:$0xff] }
  0x8b   :  { %1253 = vmatpush1.msra.mxu1 %v88_v51  ;;  %1185 = vmatprep.subr.mxu0 %v717_v52  ;;  %v657_v51 = vld [vmem:[%s4713_s1 + $0x1408] sm:$0xff]  ;;  %v24_v52 = vld [vmem:[%s4713_s1 + $0x40] sm:$0xff] }
  0x8c   :  { %1254 = vmatprep.subr.mxu1 %v84_v54  ;;  %1186 = vmatpush1.msra.mxu0 %v716_v55  ;;  %v656_v54 = vld [vmem:[%s4713_s1 + $0x1400] sm:$0xff]  ;;  %v23_v55 = vld [vmem:[%s4713_s1 + $0x38] sm:$0xff] }
  0x8d   :  { %1255 = vmatpush1.msra.mxu1 %v83_v57  ;;  %1187 = vmatprep.subr.mxu0 %v712_v58  ;;  %v812_v57 = vld [vmem:[%s4713_s1 + $0x18e0] sm:$0xff]  ;;  %v19_v58 = vld [vmem:[%s4713_s1 + $0x18] sm:$0xff] }
  0x8e   :  { %1256 = vmatprep.subr.mxu1 %v79_v60  ;;  %1188 = vmatpush1.msra.mxu0 %v711_v61  ;;  %v811_v60 = vld [vmem:[%s4713_s1 + $0x18d8] sm:$0xff]  ;;  %v18_v61 = vld [vmem:[%s4713_s1 + $0x10] sm:$0xff] }
  0x8f   :  { %1257 = vmatpush1.msra.mxu1 %v78_v62  ;;  %1189 = vmatprep.subr.mxu0 %v707_v63  ;;  %v807_v62 = vld [vmem:[%s4713_s1 + $0x18b8] sm:$0xff]  ;;  %v174_v63 = vld [vmem:[%s4713_s1 + $0x4f0] sm:$0xff] }
  0x90   :  { %1258 = vmatprep.subr.mxu1 %v74_v2  ;;  %1190 = vmatpush1.msra.mxu0 %v706_v4  ;;  %v806_v2 = vld [vmem:[%s4713_s1 + $0x18b0] sm:$0xff]  ;;  %v173_v4 = vld [vmem:[%s4713_s1 + $0x4e8] sm:$0xff] }
  0x91   :  { %1259 = vmatpush1.msra.mxu1 %v73_v5  ;;  %1191 = vmatprep.subr.mxu0 %v702_v7  ;;  %v802_v5 = vld [vmem:[%s4713_s1 + $0x1890] sm:$0xff]  ;;  %v169_v7 = vld [vmem:[%s4713_s1 + $0x4c8] sm:$0xff] }
  0x92   :  { %1260 = vmatprep.subr.mxu1 %v69_v8  ;;  %1192 = vmatpush1.msra.mxu0 %v701_v9  ;;  %v801_v8 = vld [vmem:[%s4713_s1 + $0x1888] sm:$0xff]  ;;  %v168_v9 = vld [vmem:[%s4713_s1 + $0x4c0] sm:$0xff] }
  0x93   :  { %1261 = vmatpush1.msra.mxu1 %v68_v11  ;;  %1193 = vmatprep.subr.mxu0 %v697_v13  ;;  %v797_v11 = vld [vmem:[%s4713_s1 + $0x1868] sm:$0xff]  ;;  %v164_v13 = vld [vmem:[%s4713_s1 + $0x4a0] sm:$0xff] }
  0x94   :  { %1262 = vmatprep.subr.mxu1 %v64_v14  ;;  %1194 = vmatpush1.msra.mxu0 %v696_v15  ;;  %v796_v14 = vld [vmem:[%s4713_s1 + $0x1860] sm:$0xff]  ;;  %v163_v15 = vld [vmem:[%s4713_s1 + $0x498] sm:$0xff] }
  0x95   :  { %1263 = vmatpush1.msra.mxu1 %v63_v16  ;;  %1195 = vmatprep.subr.mxu0 %v692_v17  ;;  %v792_v16 = vld [vmem:[%s4713_s1 + $0x1840] sm:$0xff]  ;;  %v159_v17 = vld [vmem:[%s4713_s1 + $0x478] sm:$0xff] }
  0x96   :  { %1264 = vmatprep.subr.mxu1 %v59_v18  ;;  %1196 = vmatpush1.msra.mxu0 %v691_v19  ;;  %v791_v18 = vld [vmem:[%s4713_s1 + $0x1838] sm:$0xff]  ;;  %v158_v19 = vld [vmem:[%s4713_s1 + $0x470] sm:$0xff] }
  0x97   :  { %1265 = vmatpush1.msra.mxu1 %v58_v20  ;;  %1197 = vmatprep.subr.mxu0 %v687_v21  ;;  %v787_v20 = vld [vmem:[%s4713_s1 + $0x1818] sm:$0xff]  ;;  %v154_v21 = vld [vmem:[%s4713_s1 + $0x450] sm:$0xff] }
  0x98   :  { %1266 = vmatprep.subr.mxu1 %v54_v22  ;;  %1198 = vmatpush1.msra.mxu0 %v686_v23  ;;  %v786_v22 = vld [vmem:[%s4713_s1 + $0x1810] sm:$0xff]  ;;  %v153_v23 = vld [vmem:[%s4713_s1 + $0x448] sm:$0xff] }
  0x99   :  { %1267 = vmatpush1.msra.mxu1 %v53_v24  ;;  %1199 = vmatprep.subr.mxu0 %v682_v26  ;;  %v782_v24 = vld [vmem:[%s4713_s1 + $0x17f0] sm:$0xff]  ;;  %v149_v26 = vld [vmem:[%s4713_s1 + $0x428] sm:$0xff] }
  0x9a   :  { %1268 = vmatprep.subr.mxu1 %v49_v27  ;;  %1200 = vmatpush1.msra.mxu0 %v681_v28  ;;  %v781_v27 = vld [vmem:[%s4713_s1 + $0x17e8] sm:$0xff]  ;;  %v148_v28 = vld [vmem:[%s4713_s1 + $0x420] sm:$0xff] }
  0x9b   :  { %1269 = vmatpush1.msra.mxu1 %v48_v29  ;;  %1201 = vmatprep.subr.mxu0 %v677_v30  ;;  %v777_v29 = vld [vmem:[%s4713_s1 + $0x17c8] sm:$0xff]  ;;  %v144_v30 = vld [vmem:[%s4713_s1 + $0x400] sm:$0xff] }
  0x9c   :  { %1270 = vmatprep.subr.mxu1 %v44_v31  ;;  %1202 = vmatpush1.msra.mxu0 %v676_v32  ;;  %v776_v31 = vld [vmem:[%s4713_s1 + $0x17c0] sm:$0xff]  ;;  %v143_v32 = vld [vmem:[%s4713_s1 + $0x3f8] sm:$0xff] }
  0x9d   :  { %1271 = vmatpush1.msra.mxu1 %v43_v34  ;;  %1203 = vmatprep.subr.mxu0 %v672_v36  ;;  %v772_v34 = vld [vmem:[%s4713_s1 + $0x17a0] sm:$0xff]  ;;  %v139_v36 = vld [vmem:[%s4713_s1 + $0x3d8] sm:$0xff] }
  0x9e   :  { %1272 = vmatprep.subr.mxu1 %v39_v38  ;;  %1204 = vmatpush1.msra.mxu0 %v671_v39  ;;  %v771_v38 = vld [vmem:[%s4713_s1 + $0x1798] sm:$0xff]  ;;  %v138_v39 = vld [vmem:[%s4713_s1 + $0x3d0] sm:$0xff] }
  0x9f   :  { %1273 = vmatpush1.msra.mxu1 %v38_v40  ;;  %1205 = vmatprep.subr.mxu0 %v667_v42  ;;  %v767_v40 = vld [vmem:[%s4713_s1 + $0x1778] sm:$0xff]  ;;  %v134_v42 = vld [vmem:[%s4713_s1 + $0x3b0] sm:$0xff] }
  0xa0   :  { %1274 = vmatprep.subr.mxu1 %v34_v45  ;;  %1206 = vmatpush1.msra.mxu0 %v666_v46  ;;  %v766_v45 = vld [vmem:[%s4713_s1 + $0x1770] sm:$0xff]  ;;  %v133_v46 = vld [vmem:[%s4713_s1 + $0x3a8] sm:$0xff] }
  0xa1   :  { %1275 = vmatpush1.msra.mxu1 %v33_v47  ;;  %1207 = vmatprep.subr.mxu0 %v662_v56  ;;  %v762_v47 = vld [vmem:[%s4713_s1 + $0x1750] sm:$0xff]  ;;  %v129_v56 = vld [vmem:[%s4713_s1 + $0x388] sm:$0xff] }
  0xa2   :  { %1276 = vmatprep.subr.mxu1 %v29_v48  ;;  %1208 = vmatpush1.msra.mxu0 %v661_v49  ;;  %v761_v48 = vld [vmem:[%s4713_s1 + $0x1748] sm:$0xff]  ;;  %v128_v49 = vld [vmem:[%s4713_s1 + $0x380] sm:$0xff] }
  0xa3   :  { %1277 = vmatpush1.msra.mxu1 %v28_v50  ;;  %1209 = vmatprep.subr.mxu0 %v657_v51  ;;  %v757_v50 = vld [vmem:[%s4713_s1 + $0x1728] sm:$0xff]  ;;  %v124_v51 = vld [vmem:[%s4713_s1 + $0x360] sm:$0xff] }
  0xa4   :  { %1278 = vmatprep.subr.mxu1 %v24_v52  ;;  %1210 = vmatpush1.msra.mxu0 %v656_v54  ;;  %v756_v52 = vld [vmem:[%s4713_s1 + $0x1720] sm:$0xff]  ;;  %v123_v54 = vld [vmem:[%s4713_s1 + $0x358] sm:$0xff] }
  0xa5   :  { %1279 = vmatpush1.msra.mxu1 %v23_v55  ;;  %1211 = vmatprep.subr.mxu0 %v812_v57  ;;  %v752_v55 = vld [vmem:[%s4713_s1 + $0x1700] sm:$0xff]  ;;  %v119_v57 = vld [vmem:[%s4713_s1 + $0x338] sm:$0xff] }
  0xa6   :  { %1280 = vmatprep.subr.mxu1 %v19_v58  ;;  %1212 = vmatpush2.msra.mxu0 %v811_v60  ;;  %v751_v58 = vld [vmem:[%s4713_s1 + $0x16f8] sm:$0xff]  ;;  %v118_v60 = vld [vmem:[%s4713_s1 + $0x330] sm:$0xff] }
  0xa7   :  { %1281 = vmatpush1.msra.mxu1 %v18_v61  ;;  %1213 = vmatprep.subr.mxu0 %v807_v62  ;;  %v747_v61 = vld [vmem:[%s4713_s1 + $0x16d8] sm:$0xff]  ;;  %v114_v62 = vld [vmem:[%s4713_s1 + $0x310] sm:$0xff] }
  0xa8   :  { %1282 = vmatprep.subr.mxu1 %v174_v63  ;;  %1214 = vmatpush2.msra.mxu0 %v806_v2  ;;  %v746_v63 = vld [vmem:[%s4713_s1 + $0x16d0] sm:$0xff]  ;;  %v113_v2 = vld [vmem:[%s4713_s1 + $0x308] sm:$0xff] }
  0xa9   :  { %1283 = vmatpush2.msra.mxu1 %v173_v4  ;;  %1215 = vmatprep.subr.mxu0 %v802_v5  ;;  %v742_v4 = vld [vmem:[%s4713_s1 + $0x16b0] sm:$0xff]  ;;  %v15_v5 = vld [vmem:[%s4714_s0 + $0x8] sm:$0x3] }
  0xaa   :  { %1284 = vmatprep.subr.mxu1 %v169_v7  ;;  %1216 = vmatpush2.msra.mxu0 %v801_v8  ;;  %v109_v7 = vld [vmem:[%s4713_s1 + $0x2e8] sm:$0xff] }
  0xab   :  { %1285 = vmatpush2.msra.mxu1 %v168_v9  ;;  %1217 = vmatprep.subr.mxu0 %v797_v11  ;;  %v741_v8 = vld [vmem:[%s4713_s1 + $0x16a8] sm:$0xff]  ;;  %v108_v9 = vld [vmem:[%s4713_s1 + $0x2e0] sm:$0xff] }
  0xac   :  { %1286 = vmatprep.subr.mxu1 %v164_v13  ;;  %1218 = vmatpush2.msra.mxu0 %v796_v14  ;;  %v737_v11 = vld [vmem:[%s4713_s1 + $0x1688] sm:$0xff]  ;;  %v104_v13 = vld [vmem:[%s4713_s1 + $0x2c0] sm:$0xff] }
  0xad   :  { %1287 = vmatpush2.msra.mxu1 %v163_v15  ;;  %1219 = vmatprep.subr.mxu0 %v792_v16  ;;  %v736_v14 = vld [vmem:[%s4713_s1 + $0x1680] sm:$0xff]  ;;  %v3413_v15 = vrot.slane %v15_v5, %v2555_v53  ;;  %v3416_v16 = vrot.slane %v15_v5, %v2575_v59  ;;  %v373_v5 = vld [vmem:[%s4713_s1 + $0xb28] sm:$0xff] }
  0xae   :  { %1288 = vmatprep.subr.mxu1 %v159_v17  ;;  %1220 = vmatpush2.msra.mxu0 %v791_v18  ;;  %v103_v17 = vld [vmem:[%s4713_s1 + $0x2b8] sm:$0xff] }
  0xaf   :  { %1289 = vmatpush2.msra.mxu1 %v158_v19  ;;  %1221 = vmatprep.subr.mxu0 %v787_v20  ;;  %v99_v18 = vld [vmem:[%s4713_s1 + $0x298] sm:$0xff]  ;;  %v254_v19 = vld [vmem:[%s4713_s1 + $0x770] sm:$0xff] }
  0xb0   :  { %1290 = vmatprep.subr.mxu1 %v154_v21  ;;  %1222 = vmatpush2.msra.mxu0 %v786_v22  ;;  %v98_v20 = vld [vmem:[%s4713_s1 + $0x290] sm:$0xff]  ;;  %v253_v21 = vld [vmem:[%s4713_s1 + $0x768] sm:$0xff] }
  0xb1   :  { %1291 = vmatpush2.msra.mxu1 %v153_v23  ;;  %1223 = vmatprep.subr.mxu0 %v782_v24  ;;  %v249_v22 = vld [vmem:[%s4713_s1 + $0x748] sm:$0xff]  ;;  %v414_v23 = vld [vmem:[%s4713_s1 + $0xc70] sm:$0xff]  ;;  %v248_v24 = vld [vmem:[%s4713_s1 + $0x740] sm:$0xff] }
  0xb2   :  { %1292 = vmatprep.subr.mxu1 %v149_v26  ;;  %1224 = vmatpush2.msra.mxu0 %v781_v27  ;;  %v413_v26 = vld [vmem:[%s4713_s1 + $0xc68] sm:$0xff]  ;;  %v244_v27 = vld [vmem:[%s4713_s1 + $0x720] sm:$0xff] }
  0xb3   :  { %1293 = vmatpush2.msra.mxu1 %v148_v28  ;;  %1225 = vmatprep.subr.mxu0 %v777_v29  ;;  %v409_v28 = vld [vmem:[%s4713_s1 + $0xc48] sm:$0xff]  ;;  %v243_v29 = vld [vmem:[%s4713_s1 + $0x718] sm:$0xff] }
  0xb4   :  { %1294 = vmatprep.subr.mxu1 %v144_v30  ;;  %1226 = vmatpush2.msra.mxu0 %v776_v31  ;;  %v408_v30 = vld [vmem:[%s4713_s1 + $0xc40] sm:$0xff]  ;;  %v239_v31 = vld [vmem:[%s4713_s1 + $0x6f8] sm:$0xff] }
  0xb5   :  { %1295 = vmatpush2.msra.mxu1 %v143_v32  ;;  %1227 = vmatprep.subr.mxu0 %v772_v34  ;;  %v404_v32 = vld [vmem:[%s4713_s1 + $0xc20] sm:$0xff]  ;;  %v238_v34 = vld [vmem:[%s4713_s1 + $0x6f0] sm:$0xff] }
  0xb6   :  { %1296 = vmatprep.subr.mxu1 %v139_v36  ;;  %1228 = vmatpush2.msra.mxu0 %v771_v38  ;;  %v403_v36 = vld [vmem:[%s4713_s1 + $0xc18] sm:$0xff]  ;;  %v234_v38 = vld [vmem:[%s4713_s1 + $0x6d0] sm:$0xff] }
  0xb7   :  { %1297 = vmatpush2.msra.mxu1 %v138_v39  ;;  %1229 = vmatprep.subr.mxu0 %v767_v40  ;;  %v399_v39 = vld [vmem:[%s4713_s1 + $0xbf8] sm:$0xff]  ;;  %v233_v40 = vld [vmem:[%s4713_s1 + $0x6c8] sm:$0xff] }
  0xb8   :  { %1298 = vmatprep.subr.mxu1 %v134_v42  ;;  %1230 = vmatpush2.msra.mxu0 %v766_v45  ;;  %v398_v42 = vld [vmem:[%s4713_s1 + $0xbf0] sm:$0xff]  ;;  %v229_v45 = vld [vmem:[%s4713_s1 + $0x6a8] sm:$0xff] }
  0xb9   :  { %1299 = vmatpush2.msra.mxu1 %v133_v46  ;;  %1231 = vmatprep.subr.mxu0 %v762_v47  ;;  %v394_v46 = vld [vmem:[%s4713_s1 + $0xbd0] sm:$0xff]  ;;  %v228_v47 = vld [vmem:[%s4713_s1 + $0x6a0] sm:$0xff] }
  0xba   :  { %1300 = vmatprep.subr.mxu1 %v129_v56  ;;  %1232 = vmatpush2.msra.mxu0 %v761_v48  ;;  %v393_v56 = vld [vmem:[%s4713_s1 + $0xbc8] sm:$0xff]  ;;  %v224_v48 = vld [vmem:[%s4713_s1 + $0x680] sm:$0xff] }
  0xbb   :  { %1301 = vmatpush2.msra.mxu1 %v128_v49  ;;  %1233 = vmatprep.subr.mxu0 %v757_v50  ;;  %v389_v49 = vld [vmem:[%s4713_s1 + $0xba8] sm:$0xff]  ;;  %v223_v50 = vld [vmem:[%s4713_s1 + $0x678] sm:$0xff] }
  0xbc   :  { %1302 = vmatprep.subr.mxu1 %v124_v51  ;;  %1234 = vmatpush2.msra.mxu0 %v756_v52  ;;  %v388_v51 = vld [vmem:[%s4713_s1 + $0xba0] sm:$0xff]  ;;  %v219_v52 = vld [vmem:[%s4713_s1 + $0x658] sm:$0xff] }
  0xbd   :  { %1303 = vmatpush2.msra.mxu1 %v123_v54  ;;  %1235 = vmatprep.subr.mxu0 %v752_v55  ;;  %v384_v54 = vld [vmem:[%s4713_s1 + $0xb80] sm:$0xff]  ;;  %v218_v55 = vld [vmem:[%s4713_s1 + $0x650] sm:$0xff] }
  0xbe   :  { %1304 = vmatprep.subr.mxu1 %v119_v57  ;;  %1236 = vmatpush2.msra.mxu0 %v751_v58  ;;  %v383_v57 = vld [vmem:[%s4713_s1 + $0xb78] sm:$0xff]  ;;  %v214_v58 = vld [vmem:[%s4713_s1 + $0x630] sm:$0xff] }
  0xbf   :  { %1305 = vmatpush2.msra.mxu1 %v118_v60  ;;  %1237 = vmatprep.subr.mxu0 %v747_v61  ;;  %v379_v60 = vld [vmem:[%s4713_s1 + $0xb58] sm:$0xff]  ;;  %v213_v61 = vld [vmem:[%s4713_s1 + $0x628] sm:$0xff] }
  0xc0   :  { %1306 = vmatprep.subr.mxu1 %v114_v62  ;;  %1238 = vmatpush2.msra.mxu0 %v746_v63  ;;  %v378_v62 = vld [vmem:[%s4713_s1 + $0xb50] sm:$0xff]  ;;  %v209_v63 = vld [vmem:[%s4713_s1 + $0x608] sm:$0xff] }
  0xc1   :  { %1307 = vmatpush2.msra.mxu1 %v113_v2  ;;  %1239 = vmatprep.subr.mxu0 %v742_v4  ;;  %v374_v2 = vld [vmem:[%s4713_s1 + $0xb30] sm:$0xff]  ;;  %v208_v4 = vld [vmem:[%s4713_s1 + $0x600] sm:$0xff] }
  0xc2   :  { %1308 = vmatprep.subr.mxu1 %v109_v7  ;;  %1240 = vmatpush2.msra.mxu0 %v741_v8  ;;  %v204_v7 = vld [vmem:[%s4713_s1 + $0x5e0] sm:$0xff]  ;;  %v369_v8 = vld [vmem:[%s4713_s1 + $0xb08] sm:$0xff] }
  0xc3   :  { %1309 = vmatpush2.msra.mxu1 %v108_v9  ;;  %1241 = vmatprep.subr.mxu0 %v737_v11  ;;  %v203_v9 = vld [vmem:[%s4713_s1 + $0x5d8] sm:$0xff]  ;;  %v368_v11 = vld [vmem:[%s4713_s1 + $0xb00] sm:$0xff] }
  0xc4   :  { %1310 = vmatprep.subr.mxu1 %v104_v13  ;;  %1242 = vmatpush2.msra.mxu0 %v736_v14  ;;  %v199_v13 = vld [vmem:[%s4713_s1 + $0x5b8] sm:$0xff]  ;;  %v364_v14 = vld [vmem:[%s4713_s1 + $0xae0] sm:$0xff] }
  0xc5   :  { %1243 = vmatprep.mubr.f32.mxu0 %v3413_v15  ;;  %1311 = vmatpush2.msra.mxu1 %v103_v17  ;;  %v198_v17 = vld [vmem:[%s4713_s1 + $0x5b0] sm:$0xff] }
  0xc6   :  { %1244 = vmatmul.mubr.f32.vlgmr.msra.gmra.mxu0 %v3416_v16  ;;  %1312 = vmatprep.subr.mxu1 %v99_v18  ;;  %v363_v18 = vld [vmem:[%s4713_s1 + $0xad8] sm:$0xff] }
  0xc7   :  { %1321 = vmatprep.subr.mxu0 %v254_v19  ;;  %1313 = vmatpush2.msra.mxu1 %v98_v20  ;;  %v194_v19 = vld [vmem:[%s4713_s1 + $0x590] sm:$0xff]  ;;  %v359_v20 = vld [vmem:[%s4713_s1 + $0xab8] sm:$0xff] }
  0xc8   :  { %1322 = vmatpush1.msra.mxu0 %v253_v21  ;;  %1314 = vmatprep.mubr.f32.mxu1 %v2591_v0  ;;  %v193_v21 = vld [vmem:[%s4713_s1 + $0x588] sm:$0xff] }
  0xc9   :  { %1323 = vmatprep.subr.mxu0 %v249_v22  ;;  %1392 = vmatprep.subr.mxu1 %v414_v23  ;;  %v358_v22 = vld [vmem:[%s4713_s1 + $0xab0] sm:$0xff]  ;;  %v189_v23 = vld [vmem:[%s4713_s1 + $0x568] sm:$0xff] }
  0xca   :  { %1315 = vmatmul.mubr.f32.vlgmr.msra.gmra.mxu1 %v2606_v6  ;;  %1324 = vmatpush1.msra.mxu0 %v248_v24  ;;  %v354_v24 = vld [vmem:[%s4713_s1 + $0xa90] sm:$0xff] }
  0xcb   :  { %1393 = vmatpush1.msra.mxu1 %v413_v26  ;;  %1325 = vmatprep.subr.mxu0 %v244_v27  ;;  %v188_v26 = vld [vmem:[%s4713_s1 + $0x560] sm:$0xff]  ;;  %v353_v27 = vld [vmem:[%s4713_s1 + $0xa88] sm:$0xff] }
  0xcc   :  { %1394 = vmatprep.subr.mxu1 %v409_v28  ;;  %1326 = vmatpush1.msra.mxu0 %v243_v29  ;;  %v184_v28 = vld [vmem:[%s4713_s1 + $0x540] sm:$0xff]  ;;  %v349_v29 = vld [vmem:[%s4713_s1 + $0xa68] sm:$0xff] }
  0xcd   :  { %1395 = vmatpush1.msra.mxu1 %v408_v30  ;;  %1327 = vmatprep.subr.mxu0 %v239_v31  ;;  %v183_v30 = vld [vmem:[%s4713_s1 + $0x538] sm:$0xff]  ;;  %v348_v31 = vld [vmem:[%s4713_s1 + $0xa60] sm:$0xff] }
  0xce   :  { %1396 = vmatprep.subr.mxu1 %v404_v32  ;;  %1328 = vmatpush1.msra.mxu0 %v238_v34  ;;  %v179_v32 = vld [vmem:[%s4713_s1 + $0x518] sm:$0xff]  ;;  %v344_v34 = vld [vmem:[%s4713_s1 + $0xa40] sm:$0xff] }
  0xcf   :  { %1397 = vmatpush1.msra.mxu1 %v403_v36  ;;  %1329 = vmatprep.subr.mxu0 %v234_v38  ;;  %v178_v36 = vld [vmem:[%s4713_s1 + $0x510] sm:$0xff]  ;;  %v343_v38 = vld [vmem:[%s4713_s1 + $0xa38] sm:$0xff] }
  0xd0   :  { %1398 = vmatprep.subr.mxu1 %v399_v39  ;;  %1330 = vmatpush1.msra.mxu0 %v233_v40  ;;  %v334_v39 = vld [vmem:[%s4713_s1 + $0x9f0] sm:$0xff]  ;;  %v339_v40 = vld [vmem:[%s4713_s1 + $0xa18] sm:$0xff] }
  0xd1   :  { %1399 = vmatpush1.msra.mxu1 %v398_v42  ;;  %1331 = vmatprep.subr.mxu0 %v229_v45  ;;  %v333_v42 = vld [vmem:[%s4713_s1 + $0x9e8] sm:$0xff]  ;;  %v338_v45 = vld [vmem:[%s4713_s1 + $0xa10] sm:$0xff] }
  0xd2   :  { %1400 = vmatprep.subr.mxu1 %v394_v46  ;;  %1332 = vmatpush1.msra.mxu0 %v228_v47  ;;  %v329_v46 = vld [vmem:[%s4713_s1 + $0x9c8] sm:$0xff]  ;;  %v494_v47 = vld [vmem:[%s4713_s1 + $0xef0] sm:$0xff] }
  0xd3   :  { %1401 = vmatpush1.msra.mxu1 %v393_v56  ;;  %1333 = vmatprep.subr.mxu0 %v224_v48  ;;  %v328_v56 = vld [vmem:[%s4713_s1 + $0x9c0] sm:$0xff]  ;;  %v493_v48 = vld [vmem:[%s4713_s1 + $0xee8] sm:$0xff] }
  0xd4   :  { %1402 = vmatprep.subr.mxu1 %v389_v49  ;;  %1334 = vmatpush1.msra.mxu0 %v223_v50  ;;  %v324_v49 = vld [vmem:[%s4713_s1 + $0x9a0] sm:$0xff]  ;;  %v489_v50 = vld [vmem:[%s4713_s1 + $0xec8] sm:$0xff] }
  0xd5   :  { %1403 = vmatpush1.msra.mxu1 %v388_v51  ;;  %1335 = vmatprep.subr.mxu0 %v219_v52  ;;  %v323_v51 = vld [vmem:[%s4713_s1 + $0x998] sm:$0xff]  ;;  %v488_v52 = vld [vmem:[%s4713_s1 + $0xec0] sm:$0xff] }
  0xd6   :  { %1404 = vmatprep.subr.mxu1 %v384_v54  ;;  %1336 = vmatpush1.msra.mxu0 %v218_v55  ;;  %v319_v54 = vld [vmem:[%s4713_s1 + $0x978] sm:$0xff]  ;;  %v484_v55 = vld [vmem:[%s4713_s1 + $0xea0] sm:$0xff] }
  0xd7   :  { %1405 = vmatpush1.msra.mxu1 %v383_v57  ;;  %1337 = vmatprep.subr.mxu0 %v214_v58  ;;  %v318_v57 = vld [vmem:[%s4713_s1 + $0x970] sm:$0xff]  ;;  %v483_v58 = vld [vmem:[%s4713_s1 + $0xe98] sm:$0xff] }
  0xd8   :  { %1406 = vmatprep.subr.mxu1 %v379_v60  ;;  %1338 = vmatpush1.msra.mxu0 %v213_v61  ;;  %v314_v60 = vld [vmem:[%s4713_s1 + $0x950] sm:$0xff]  ;;  %v479_v61 = vld [vmem:[%s4713_s1 + $0xe78] sm:$0xff] }
  0xd9   :  { %1407 = vmatpush1.msra.mxu1 %v378_v62  ;;  %1339 = vmatprep.subr.mxu0 %v209_v63  ;;  %v313_v62 = vld [vmem:[%s4713_s1 + $0x948] sm:$0xff]  ;;  %v478_v63 = vld [vmem:[%s4713_s1 + $0xe70] sm:$0xff] }
  0xda   :  { %1408 = vmatprep.subr.mxu1 %v374_v2  ;;  %1340 = vmatpush1.msra.mxu0 %v208_v4  ;;  %v309_v2 = vld [vmem:[%s4713_s1 + $0x928] sm:$0xff]  ;;  %v474_v4 = vld [vmem:[%s4713_s1 + $0xe50] sm:$0xff] }
  0xdb   :  { %1409 = vmatpush1.msra.mxu1 %v373_v5  ;;  %1341 = vmatprep.subr.mxu0 %v204_v7  ;;  %v308_v5 = vld [vmem:[%s4713_s1 + $0x920] sm:$0xff]  ;;  %v473_v7 = vld [vmem:[%s4713_s1 + $0xe48] sm:$0xff] }
  0xdc   :  { %1410 = vmatprep.subr.mxu1 %v369_v8  ;;  %1342 = vmatpush1.msra.mxu0 %v203_v9  ;;  %v304_v8 = vld [vmem:[%s4713_s1 + $0x900] sm:$0xff]  ;;  %v469_v9 = vld [vmem:[%s4713_s1 + $0xe28] sm:$0xff] }
  0xdd   :  { %1411 = vmatpush1.msra.mxu1 %v368_v11  ;;  %1343 = vmatprep.subr.mxu0 %v199_v13  ;;  %v303_v11 = vld [vmem:[%s4713_s1 + $0x8f8] sm:$0xff]  ;;  %v468_v13 = vld [vmem:[%s4713_s1 + $0xe20] sm:$0xff] }
  0xde   :  { %1412 = vmatprep.subr.mxu1 %v364_v14  ;;  %1344 = vmatpush1.msra.mxu0 %v198_v17  ;;  %v299_v14 = vld [vmem:[%s4713_s1 + $0x8d8] sm:$0xff]  ;;  %v464_v17 = vld [vmem:[%s4713_s1 + $0xe00] sm:$0xff] }
  0xdf   :  { %1413 = vmatpush1.msra.mxu1 %v363_v18  ;;  %1345 = vmatprep.subr.mxu0 %v194_v19  ;;  %v298_v18 = vld [vmem:[%s4713_s1 + $0x8d0] sm:$0xff]  ;;  %v463_v19 = vld [vmem:[%s4713_s1 + $0xdf8] sm:$0xff] }
  0xe0   :  { %1414 = vmatprep.subr.mxu1 %v359_v20  ;;  %1346 = vmatpush1.msra.mxu0 %v193_v21  ;;  %v294_v20 = vld [vmem:[%s4713_s1 + $0x8b0] sm:$0xff]  ;;  %v459_v21 = vld [vmem:[%s4713_s1 + $0xdd8] sm:$0xff] }
  0xe1   :  { %1415 = vmatpush1.msra.mxu1 %v358_v22  ;;  %1347 = vmatprep.subr.mxu0 %v189_v23  ;;  %v293_v22 = vld [vmem:[%s4713_s1 + $0x8a8] sm:$0xff]  ;;  %v458_v23 = vld [vmem:[%s4713_s1 + $0xdd0] sm:$0xff] }
  0xe2   :  { %1416 = vmatprep.subr.mxu1 %v354_v24  ;;  %1348 = vmatpush1.msra.mxu0 %v188_v26  ;;  %v289_v24 = vld [vmem:[%s4713_s1 + $0x888] sm:$0xff]  ;;  %v454_v26 = vld [vmem:[%s4713_s1 + $0xdb0] sm:$0xff] }
  0xe3   :  { %1417 = vmatpush1.msra.mxu1 %v353_v27  ;;  %1349 = vmatprep.subr.mxu0 %v184_v28  ;;  %v288_v27 = vld [vmem:[%s4713_s1 + $0x880] sm:$0xff]  ;;  %v453_v28 = vld [vmem:[%s4713_s1 + $0xda8] sm:$0xff] }
  0xe4   :  { %1418 = vmatprep.subr.mxu1 %v349_v29  ;;  %1350 = vmatpush1.msra.mxu0 %v183_v30  ;;  %v284_v29 = vld [vmem:[%s4713_s1 + $0x860] sm:$0xff]  ;;  %v449_v30 = vld [vmem:[%s4713_s1 + $0xd88] sm:$0xff] }
  0xe5   :  { %1419 = vmatpush1.msra.mxu1 %v348_v31  ;;  %1351 = vmatprep.subr.mxu0 %v179_v32  ;;  %v283_v31 = vld [vmem:[%s4713_s1 + $0x858] sm:$0xff]  ;;  %v448_v32 = vld [vmem:[%s4713_s1 + $0xd80] sm:$0xff] }
  0xe6   :  { %1420 = vmatprep.subr.mxu1 %v344_v34  ;;  %1352 = vmatpush1.msra.mxu0 %v178_v36  ;;  %v279_v34 = vld [vmem:[%s4713_s1 + $0x838] sm:$0xff]  ;;  %v444_v36 = vld [vmem:[%s4713_s1 + $0xd60] sm:$0xff] }
  0xe7   :  { %1421 = vmatpush1.msra.mxu1 %v343_v38  ;;  %1353 = vmatprep.subr.mxu0 %v334_v39  ;;  %v278_v38 = vld [vmem:[%s4713_s1 + $0x830] sm:$0xff]  ;;  %v443_v39 = vld [vmem:[%s4713_s1 + $0xd58] sm:$0xff] }
  0xe8   :  { %1422 = vmatprep.subr.mxu1 %v339_v40  ;;  %1354 = vmatpush2.msra.mxu0 %v333_v42  ;;  %v274_v40 = vld [vmem:[%s4713_s1 + $0x810] sm:$0xff]  ;;  %v439_v42 = vld [vmem:[%s4713_s1 + $0xd38] sm:$0xff] }
  0xe9   :  { %1423 = vmatpush1.msra.mxu1 %v338_v45  ;;  %1355 = vmatprep.subr.mxu0 %v329_v46  ;;  %v273_v45 = vld [vmem:[%s4713_s1 + $0x808] sm:$0xff]  ;;  %v438_v46 = vld [vmem:[%s4713_s1 + $0xd30] sm:$0xff] }
  0xea   :  { %1424 = vmatprep.subr.mxu1 %v494_v47  ;;  %1356 = vmatpush2.msra.mxu0 %v328_v56  ;;  %v269_v47 = vld [vmem:[%s4713_s1 + $0x7e8] sm:$0xff]  ;;  %v434_v56 = vld [vmem:[%s4713_s1 + $0xd10] sm:$0xff] }
  0xeb   :  { %1425 = vmatpush2.msra.mxu1 %v493_v48  ;;  %1357 = vmatprep.subr.mxu0 %v324_v49  ;;  %v268_v48 = vld [vmem:[%s4713_s1 + $0x7e0] sm:$0xff]  ;;  %v433_v49 = vld [vmem:[%s4713_s1 + $0xd08] sm:$0xff] }
  0xec   :  { %1426 = vmatprep.subr.mxu1 %v489_v50  ;;  %1358 = vmatpush2.msra.mxu0 %v323_v51  ;;  %v264_v50 = vld [vmem:[%s4713_s1 + $0x7c0] sm:$0xff]  ;;  %v429_v51 = vld [vmem:[%s4713_s1 + $0xce8] sm:$0xff] }
  0xed   :  { %1427 = vmatpush2.msra.mxu1 %v488_v52  ;;  %1359 = vmatprep.subr.mxu0 %v319_v54  ;;  %v263_v52 = vld [vmem:[%s4713_s1 + $0x7b8] sm:$0xff]  ;;  %v428_v54 = vld [vmem:[%s4713_s1 + $0xce0] sm:$0xff] }
  0xee   :  { %1428 = vmatprep.subr.mxu1 %v484_v55  ;;  %1360 = vmatpush2.msra.mxu0 %v318_v57  ;;  %v259_v55 = vld [vmem:[%s4713_s1 + $0x798] sm:$0xff]  ;;  %v424_v57 = vld [vmem:[%s4713_s1 + $0xcc0] sm:$0xff] }
  0xef   :  { %1429 = vmatpush2.msra.mxu1 %v483_v58  ;;  %1361 = vmatprep.subr.mxu0 %v314_v60  ;;  %v258_v58 = vld [vmem:[%s4713_s1 + $0x790] sm:$0xff]  ;;  %v423_v60 = vld [vmem:[%s4713_s1 + $0xcb8] sm:$0xff] }
  0xf0   :  { %1430 = vmatprep.subr.mxu1 %v479_v61  ;;  %1362 = vmatpush2.msra.mxu0 %v313_v62  ;;  %v419_v61 = vld [vmem:[%s4713_s1 + $0xc98] sm:$0xff]  ;;  %v574_v62 = vld [vmem:[%s4713_s1 + $0x1170] sm:$0xff] }
  0xf1   :  { %1431 = vmatpush2.msra.mxu1 %v478_v63  ;;  %1363 = vmatprep.subr.mxu0 %v309_v2  ;;  %v418_v63 = vld [vmem:[%s4713_s1 + $0xc90] sm:$0xff]  ;;  %v573_v2 = vld [vmem:[%s4713_s1 + $0x1168] sm:$0xff] }
  0xf2   :  { %1432 = vmatprep.subr.mxu1 %v474_v4  ;;  %1364 = vmatpush2.msra.mxu0 %v308_v5  ;;  %v569_v4 = vld [vmem:[%s4713_s1 + $0x1148] sm:$0xff]  ;;  %v734_v5 = vld [vmem:[%s4713_s1 + $0x1670] sm:$0xff] }
  0xf3   :  { %1433 = vmatpush2.msra.mxu1 %v473_v7  ;;  %1365 = vmatprep.subr.mxu0 %v304_v8  ;;  %v568_v7 = vld [vmem:[%s4713_s1 + $0x1140] sm:$0xff]  ;;  %v733_v8 = vld [vmem:[%s4713_s1 + $0x1668] sm:$0xff] }
  0xf4   :  { %1434 = vmatprep.subr.mxu1 %v469_v9  ;;  %1366 = vmatpush2.msra.mxu0 %v303_v11  ;;  %v564_v9 = vld [vmem:[%s4713_s1 + $0x1120] sm:$0xff]  ;;  %v729_v11 = vld [vmem:[%s4713_s1 + $0x1648] sm:$0xff] }
  0xf5   :  { %1435 = vmatpush2.msra.mxu1 %v468_v13  ;;  %1367 = vmatprep.subr.mxu0 %v299_v14  ;;  %v563_v13 = vld [vmem:[%s4713_s1 + $0x1118] sm:$0xff]  ;;  %v728_v14 = vld [vmem:[%s4713_s1 + $0x1640] sm:$0xff] }
  0xf6   :  { %1436 = vmatprep.subr.mxu1 %v464_v17  ;;  %1368 = vmatpush2.msra.mxu0 %v298_v18  ;;  %v559_v17 = vld [vmem:[%s4713_s1 + $0x10f8] sm:$0xff]  ;;  %v724_v18 = vld [vmem:[%s4713_s1 + $0x1620] sm:$0xff] }
  0xf7   :  { %1437 = vmatpush2.msra.mxu1 %v463_v19  ;;  %1369 = vmatprep.subr.mxu0 %v294_v20  ;;  %v558_v19 = vld [vmem:[%s4713_s1 + $0x10f0] sm:$0xff]  ;;  %v723_v20 = vld [vmem:[%s4713_s1 + $0x1618] sm:$0xff] }
  0xf8   :  { %1438 = vmatprep.subr.mxu1 %v459_v21  ;;  %1370 = vmatpush2.msra.mxu0 %v293_v22  ;;  %v554_v21 = vld [vmem:[%s4713_s1 + $0x10d0] sm:$0xff]  ;;  %v719_v22 = vld [vmem:[%s4713_s1 + $0x15f8] sm:$0xff] }
  0xf9   :  { %1439 = vmatpush2.msra.mxu1 %v458_v23  ;;  %1371 = vmatprep.subr.mxu0 %v289_v24  ;;  %v553_v23 = vld [vmem:[%s4713_s1 + $0x10c8] sm:$0xff]  ;;  %v718_v24 = vld [vmem:[%s4713_s1 + $0x15f0] sm:$0xff] }
  0xfa   :  { %1440 = vmatprep.subr.mxu1 %v454_v26  ;;  %1372 = vmatpush2.msra.mxu0 %v288_v27  ;;  %v549_v26 = vld [vmem:[%s4713_s1 + $0x10a8] sm:$0xff]  ;;  %v714_v27 = vld [vmem:[%s4713_s1 + $0x15d0] sm:$0xff] }
  0xfb   :  { %1441 = vmatpush2.msra.mxu1 %v453_v28  ;;  %1373 = vmatprep.subr.mxu0 %v284_v29  ;;  %v548_v28 = vld [vmem:[%s4713_s1 + $0x10a0] sm:$0xff]  ;;  %v713_v29 = vld [vmem:[%s4713_s1 + $0x15c8] sm:$0xff] }
  0xfc   :  { %1442 = vmatprep.subr.mxu1 %v449_v30  ;;  %1374 = vmatpush2.msra.mxu0 %v283_v31  ;;  %v544_v30 = vld [vmem:[%s4713_s1 + $0x1080] sm:$0xff]  ;;  %v709_v31 = vld [vmem:[%s4713_s1 + $0x15a8] sm:$0xff] }
  0xfd   :  { %1443 = vmatpush2.msra.mxu1 %v448_v32  ;;  %1375 = vmatprep.subr.mxu0 %v279_v34  ;;  %v543_v32 = vld [vmem:[%s4713_s1 + $0x1078] sm:$0xff]  ;;  %v708_v34 = vld [vmem:[%s4713_s1 + $0x15a0] sm:$0xff] }
  0xfe   :  { %1444 = vmatprep.subr.mxu1 %v444_v36  ;;  %1376 = vmatpush2.msra.mxu0 %v278_v38  ;;  %v539_v36 = vld [vmem:[%s4713_s1 + $0x1058] sm:$0xff]  ;;  %v704_v38 = vld [vmem:[%s4713_s1 + $0x1580] sm:$0xff] }
  0xff   :  { %1445 = vmatpush2.msra.mxu1 %v443_v39  ;;  %1377 = vmatprep.subr.mxu0 %v274_v40  ;;  %v538_v39 = vld [vmem:[%s4713_s1 + $0x1050] sm:$0xff]  ;;  %v703_v40 = vld [vmem:[%s4713_s1 + $0x1578] sm:$0xff] }
 0x100   :  { %1446 = vmatprep.subr.mxu1 %v439_v42  ;;  %1378 = vmatpush2.msra.mxu0 %v273_v45  ;;  %v534_v42 = vld [vmem:[%s4713_s1 + $0x1030] sm:$0xff]  ;;  %v699_v45 = vld [vmem:[%s4713_s1 + $0x1558] sm:$0xff] }
 0x101   :  { %1447 = vmatpush2.msra.mxu1 %v438_v46  ;;  %1379 = vmatprep.subr.mxu0 %v269_v47  ;;  %v533_v46 = vld [vmem:[%s4713_s1 + $0x1028] sm:$0xff]  ;;  %v698_v47 = vld [vmem:[%s4713_s1 + $0x1550] sm:$0xff] }
 0x102   :  { %1448 = vmatprep.subr.mxu1 %v434_v56  ;;  %1380 = vmatpush2.msra.mxu0 %v268_v48  ;;  %v529_v56 = vld [vmem:[%s4713_s1 + $0x1008] sm:$0xff]  ;;  %v694_v48 = vld [vmem:[%s4713_s1 + $0x1530] sm:$0xff] }
 0x103   :  { %1449 = vmatpush2.msra.mxu1 %v433_v49  ;;  %1381 = vmatprep.subr.mxu0 %v264_v50  ;;  %v528_v49 = vld [vmem:[%s4713_s1 + $0x1000] sm:$0xff]  ;;  %v693_v50 = vld [vmem:[%s4713_s1 + $0x1528] sm:$0xff] }
 0x104   :  { %1450 = vmatprep.subr.mxu1 %v429_v51  ;;  %1382 = vmatpush2.msra.mxu0 %v263_v52  ;;  %v524_v51 = vld [vmem:[%s4713_s1 + $0xfe0] sm:$0xff]  ;;  %v689_v52 = vld [vmem:[%s4713_s1 + $0x1508] sm:$0xff] }
 0x105   :  { %1451 = vmatpush2.msra.mxu1 %v428_v54  ;;  %1383 = vmatprep.subr.mxu0 %v259_v55  ;;  %v523_v54 = vld [vmem:[%s4713_s1 + $0xfd8] sm:$0xff]  ;;  %v688_v55 = vld [vmem:[%s4713_s1 + $0x1500] sm:$0xff] }
 0x106   :  { %1452 = vmatprep.subr.mxu1 %v424_v57  ;;  %1384 = vmatpush2.msra.mxu0 %v258_v58  ;;  %v519_v57 = vld [vmem:[%s4713_s1 + $0xfb8] sm:$0xff]  ;;  %v684_v58 = vld [vmem:[%s4713_s1 + $0x14e0] sm:$0xff] }
 0x107   :  { %1385 = vmatprep.mubr.f32.mxu0 %v2621_v10  ;;  %1453 = vmatpush2.msra.mxu1 %v423_v60  ;;  %v518_v60 = vld [vmem:[%s4713_s1 + $0xfb0] sm:$0xff] }
 0x108   :  { %1386 = vmatmul.mubr.f32.vlgmr.msra.gmra.mxu0 %v2629_v12  ;;  %1454 = vmatprep.subr.mxu1 %v419_v61  ;;  %v683_v61 = vld [vmem:[%s4713_s1 + $0x14d8] sm:$0xff] }
 0x109   :  { %1463 = vmatprep.subr.mxu0 %v574_v62  ;;  %1455 = vmatpush2.msra.mxu1 %v418_v63  ;;  %v514_v62 = vld [vmem:[%s4713_s1 + $0xf90] sm:$0xff]  ;;  %v679_v63 = vld [vmem:[%s4713_s1 + $0x14b8] sm:$0xff] }
 0x10a   :  { %1456 = vmatprep.mubr.f32.mxu1 %v3007_v33  ;;  %1464 = vmatpush1.msra.mxu0 %v573_v2  ;;  %v513_v2 = vld [vmem:[%s4713_s1 + $0xf88] sm:$0xff] }
 0x10b   :  { %1457 = vmatmul.mubr.f32.vlgmr.msra.gmra.mxu1 %v3016_v37  ;;  %1465 = vmatprep.subr.mxu0 %v569_v4  ;;  %v678_v4 = vld [vmem:[%s4713_s1 + $0x14b0] sm:$0xff] }
 0x10c   :  { %1534 = vmatprep.subr.mxu1 %v734_v5  ;;  %1466 = vmatpush1.msra.mxu0 %v568_v7  ;;  %v509_v5 = vld [vmem:[%s4713_s1 + $0xf68] sm:$0xff]  ;;  %v674_v7 = vld [vmem:[%s4713_s1 + $0x1490] sm:$0xff] }
 0x10d   :  { %1535 = vmatpush1.msra.mxu1 %v733_v8  ;;  %1467 = vmatprep.subr.mxu0 %v564_v9  ;;  %v508_v8 = vld [vmem:[%s4713_s1 + $0xf60] sm:$0xff]  ;;  %v673_v9 = vld [vmem:[%s4713_s1 + $0x1488] sm:$0xff] }
 0x10e   :  { %1536 = vmatprep.subr.mxu1 %v729_v11  ;;  %1468 = vmatpush1.msra.mxu0 %v563_v13  ;;  %v504_v11 = vld [vmem:[%s4713_s1 + $0xf40] sm:$0xff]  ;;  %v669_v13 = vld [vmem:[%s4713_s1 + $0x1468] sm:$0xff] }
 0x10f   :  { %1537 = vmatpush1.msra.mxu1 %v728_v14  ;;  %1469 = vmatprep.subr.mxu0 %v559_v17  ;;  %v503_v14 = vld [vmem:[%s4713_s1 + $0xf38] sm:$0xff]  ;;  %v668_v17 = vld [vmem:[%s4713_s1 + $0x1460] sm:$0xff] }
 0x110   :  { %1538 = vmatprep.subr.mxu1 %v724_v18  ;;  %1470 = vmatpush1.msra.mxu0 %v558_v19  ;;  %v499_v18 = vld [vmem:[%s4713_s1 + $0xf18] sm:$0xff]  ;;  %v664_v19 = vld [vmem:[%s4713_s1 + $0x1440] sm:$0xff] }
 0x111   :  { %1539 = vmatpush1.msra.mxu1 %v723_v20  ;;  %1471 = vmatprep.subr.mxu0 %v554_v21  ;;  %v498_v20 = vld [vmem:[%s4713_s1 + $0xf10] sm:$0xff]  ;;  %v663_v21 = vld [vmem:[%s4713_s1 + $0x1438] sm:$0xff] }
 0x112   :  { %1540 = vmatprep.subr.mxu1 %v719_v22  ;;  %1472 = vmatpush1.msra.mxu0 %v553_v23  ;;  %v654_v22 = vld [vmem:[%s4713_s1 + $0x13f0] sm:$0xff]  ;;  %v659_v23 = vld [vmem:[%s4713_s1 + $0x1418] sm:$0xff] }
 0x113   :  { %1541 = vmatpush1.msra.mxu1 %v718_v24  ;;  %1473 = vmatprep.subr.mxu0 %v549_v26  ;;  %v653_v24 = vld [vmem:[%s4713_s1 + $0x13e8] sm:$0xff]  ;;  %v658_v26 = vld [vmem:[%s4713_s1 + $0x1410] sm:$0xff] }
 0x114   :  { %1542 = vmatprep.subr.mxu1 %v714_v27  ;;  %1474 = vmatpush1.msra.mxu0 %v548_v28  ;;  %v649_v27 = vld [vmem:[%s4713_s1 + $0x13c8] sm:$0xff]  ;;  %v814_v28 = vld [vmem:[%s4713_s1 + $0x18f0] sm:$0xff] }
 0x115   :  { %1543 = vmatpush1.msra.mxu1 %v713_v29  ;;  %1475 = vmatprep.subr.mxu0 %v544_v30  ;;  %v648_v29 = vld [vmem:[%s4713_s1 + $0x13c0] sm:$0xff]  ;;  %v813_v30 = vld [vmem:[%s4713_s1 + $0x18e8] sm:$0xff] }
 0x116   :  { %1544 = vmatprep.subr.mxu1 %v709_v31  ;;  %1476 = vmatpush1.msra.mxu0 %v543_v32  ;;  %v644_v31 = vld [vmem:[%s4713_s1 + $0x13a0] sm:$0xff]  ;;  %v809_v32 = vld [vmem:[%s4713_s1 + $0x18c8] sm:$0xff] }
 0x117   :  { %1545 = vmatpush1.msra.mxu1 %v708_v34  ;;  %1477 = vmatprep.subr.mxu0 %v539_v36  ;;  %v643_v34 = vld [vmem:[%s4713_s1 + $0x1398] sm:$0xff]  ;;  %v808_v36 = vld [vmem:[%s4713_s1 + $0x18c0] sm:$0xff] }
 0x118   :  { %1546 = vmatprep.subr.mxu1 %v704_v38  ;;  %1478 = vmatpush1.msra.mxu0 %v538_v39  ;;  %v639_v38 = vld [vmem:[%s4713_s1 + $0x1378] sm:$0xff]  ;;  %v804_v39 = vld [vmem:[%s4713_s1 + $0x18a0] sm:$0xff] }
 0x119   :  { %1547 = vmatpush1.msra.mxu1 %v703_v40  ;;  %1479 = vmatprep.subr.mxu0 %v534_v42  ;;  %v638_v40 = vld [vmem:[%s4713_s1 + $0x1370] sm:$0xff]  ;;  %v803_v42 = vld [vmem:[%s4713_s1 + $0x1898] sm:$0xff] }
 0x11a   :  { %1548 = vmatprep.subr.mxu1 %v699_v45  ;;  %1480 = vmatpush1.msra.mxu0 %v533_v46  ;;  %v634_v45 = vld [vmem:[%s4713_s1 + $0x1350] sm:$0xff]  ;;  %v799_v46 = vld [vmem:[%s4713_s1 + $0x1878] sm:$0xff] }
 0x11b   :  { %1549 = vmatpush1.msra.mxu1 %v698_v47  ;;  %1481 = vmatprep.subr.mxu0 %v529_v56  ;;  %v633_v47 = vld [vmem:[%s4713_s1 + $0x1348] sm:$0xff]  ;;  %v798_v56 = vld [vmem:[%s4713_s1 + $0x1870] sm:$0xff] }
 0x11c   :  { %1550 = vmatprep.subr.mxu1 %v694_v48  ;;  %1482 = vmatpush1.msra.mxu0 %v528_v49  ;;  %v629_v48 = vld [vmem:[%s4713_s1 + $0x1328] sm:$0xff]  ;;  %v794_v49 = vld [vmem:[%s4713_s1 + $0x1850] sm:$0xff] }
 0x11d   :  { %1551 = vmatpush1.msra.mxu1 %v693_v50  ;;  %1483 = vmatprep.subr.mxu0 %v524_v51  ;;  %v628_v50 = vld [vmem:[%s4713_s1 + $0x1320] sm:$0xff]  ;;  %v793_v51 = vld [vmem:[%s4713_s1 + $0x1848] sm:$0xff] }
 0x11e   :  { %1552 = vmatprep.subr.mxu1 %v689_v52  ;;  %1484 = vmatpush1.msra.mxu0 %v523_v54  ;;  %v624_v52 = vld [vmem:[%s4713_s1 + $0x1300] sm:$0xff]  ;;  %v789_v54 = vld [vmem:[%s4713_s1 + $0x1828] sm:$0xff] }
 0x11f   :  { %1553 = vmatpush1.msra.mxu1 %v688_v55  ;;  %1485 = vmatprep.subr.mxu0 %v519_v57  ;;  %v623_v55 = vld [vmem:[%s4713_s1 + $0x12f8] sm:$0xff]  ;;  %v788_v57 = vld [vmem:[%s4713_s1 + $0x1820] sm:$0xff] }
 0x120   :  { %1554 = vmatprep.subr.mxu1 %v684_v58  ;;  %1486 = vmatpush1.msra.mxu0 %v518_v60  ;;  %v619_v58 = vld [vmem:[%s4713_s1 + $0x12d8] sm:$0xff]  ;;  %v784_v60 = vld [vmem:[%s4713_s1 + $0x1800] sm:$0xff] }
 0x121   :  { %1555 = vmatpush1.msra.mxu1 %v683_v61  ;;  %1487 = vmatprep.subr.mxu0 %v514_v62  ;;  %v618_v61 = vld [vmem:[%s4713_s1 + $0x12d0] sm:$0xff]  ;;  %v783_v62 = vld [vmem:[%s4713_s1 + $0x17f8] sm:$0xff] }
 0x122   :  { %1556 = vmatprep.subr.mxu1 %v679_v63  ;;  %1488 = vmatpush1.msra.mxu0 %v513_v2  ;;  %v614_v63 = vld [vmem:[%s4713_s1 + $0x12b0] sm:$0xff]  ;;  %v779_v2 = vld [vmem:[%s4713_s1 + $0x17d8] sm:$0xff] }
 0x123   :  { %1557 = vmatpush1.msra.mxu1 %v678_v4  ;;  %1489 = vmatprep.subr.mxu0 %v509_v5  ;;  %v613_v4 = vld [vmem:[%s4713_s1 + $0x12a8] sm:$0xff]  ;;  %v778_v5 = vld [vmem:[%s4713_s1 + $0x17d0] sm:$0xff] }
 0x124   :  { %1558 = vmatprep.subr.mxu1 %v674_v7  ;;  %1490 = vmatpush1.msra.mxu0 %v508_v8  ;;  %v609_v7 = vld [vmem:[%s4713_s1 + $0x1288] sm:$0xff]  ;;  %v774_v8 = vld [vmem:[%s4713_s1 + $0x17b0] sm:$0xff] }
 0x125   :  { %1559 = vmatpush1.msra.mxu1 %v673_v9  ;;  %1491 = vmatprep.subr.mxu0 %v504_v11  ;;  %v608_v9 = vld [vmem:[%s4713_s1 + $0x1280] sm:$0xff]  ;;  %v773_v11 = vld [vmem:[%s4713_s1 + $0x17a8] sm:$0xff] }
 0x126   :  { %1560 = vmatprep.subr.mxu1 %v669_v13  ;;  %1492 = vmatpush1.msra.mxu0 %v503_v14  ;;  %v604_v13 = vld [vmem:[%s4713_s1 + $0x1260] sm:$0xff]  ;;  %v769_v14 = vld [vmem:[%s4713_s1 + $0x1788] sm:$0xff] }
 0x127   :  { %1561 = vmatpush1.msra.mxu1 %v668_v17  ;;  %1493 = vmatprep.subr.mxu0 %v499_v18  ;;  %v603_v17 = vld [vmem:[%s4713_s1 + $0x1258] sm:$0xff]  ;;  %v768_v18 = vld [vmem:[%s4713_s1 + $0x1780] sm:$0xff] }
 0x128   :  { %1562 = vmatprep.subr.mxu1 %v664_v19  ;;  %1494 = vmatpush1.msra.mxu0 %v498_v20  ;;  %v599_v19 = vld [vmem:[%s4713_s1 + $0x1238] sm:$0xff]  ;;  %v764_v20 = vld [vmem:[%s4713_s1 + $0x1760] sm:$0xff] }
 0x129   :  { %1563 = vmatpush1.msra.mxu1 %v663_v21  ;;  %1495 = vmatprep.subr.mxu0 %v654_v22  ;;  %v598_v21 = vld [vmem:[%s4713_s1 + $0x1230] sm:$0xff]  ;;  %v763_v22 = vld [vmem:[%s4713_s1 + $0x1758] sm:$0xff] }
 0x12a   :  { %1564 = vmatprep.subr.mxu1 %v659_v23  ;;  %1496 = vmatpush2.msra.mxu0 %v653_v24  ;;  %v594_v23 = vld [vmem:[%s4713_s1 + $0x1210] sm:$0xff]  ;;  %v759_v24 = vld [vmem:[%s4713_s1 + $0x1738] sm:$0xff] }
 0x12b   :  { %1565 = vmatpush1.msra.mxu1 %v658_v26  ;;  %1497 = vmatprep.subr.mxu0 %v649_v27  ;;  %v593_v26 = vld [vmem:[%s4713_s1 + $0x1208] sm:$0xff]  ;;  %v758_v27 = vld [vmem:[%s4713_s1 + $0x1730] sm:$0xff] }
 0x12c   :  { %1566 = vmatprep.subr.mxu1 %v814_v28  ;;  %1498 = vmatpush2.msra.mxu0 %v648_v29  ;;  %v589_v28 = vld [vmem:[%s4713_s1 + $0x11e8] sm:$0xff]  ;;  %v754_v29 = vld [vmem:[%s4713_s1 + $0x1710] sm:$0xff] }
 0x12d   :  { %1567 = vmatpush2.msra.mxu1 %v813_v30  ;;  %1499 = vmatprep.subr.mxu0 %v644_v31  ;;  %v588_v30 = vld [vmem:[%s4713_s1 + $0x11e0] sm:$0xff]  ;;  %v753_v31 = vld [vmem:[%s4713_s1 + $0x1708] sm:$0xff] }
 0x12e   :  { %1568 = vmatprep.subr.mxu1 %v809_v32  ;;  %1500 = vmatpush2.msra.mxu0 %v643_v34  ;;  %v584_v32 = vld [vmem:[%s4713_s1 + $0x11c0] sm:$0xff]  ;;  %v749_v34 = vld [vmem:[%s4713_s1 + $0x16e8] sm:$0xff] }
 0x12f   :  { %1569 = vmatpush2.msra.mxu1 %v808_v36  ;;  %1501 = vmatprep.subr.mxu0 %v639_v38  ;;  %v583_v36 = vld [vmem:[%s4713_s1 + $0x11b8] sm:$0xff]  ;;  %v748_v38 = vld [vmem:[%s4713_s1 + $0x16e0] sm:$0xff] }
 0x130   :  { %1570 = vmatprep.subr.mxu1 %v804_v39  ;;  %1502 = vmatpush2.msra.mxu0 %v638_v40  ;;  %v579_v39 = vld [vmem:[%s4713_s1 + $0x1198] sm:$0xff]  ;;  %v744_v40 = vld [vmem:[%s4713_s1 + $0x16c0] sm:$0xff] }
 0x131   :  { %1571 = vmatpush2.msra.mxu1 %v803_v42  ;;  %1503 = vmatprep.subr.mxu0 %v634_v45  ;;  %v578_v42 = vld [vmem:[%s4713_s1 + $0x1190] sm:$0xff]  ;;  %v743_v45 = vld [vmem:[%s4713_s1 + $0x16b8] sm:$0xff] }
 0x132   :  { %1572 = vmatprep.subr.mxu1 %v799_v46  ;;  %1504 = vmatpush2.msra.mxu0 %v633_v47  ;;  %v739_v46 = vld [vmem:[%s4713_s1 + $0x1698] sm:$0xff] }
 0x133   :  { %1573 = vmatpush2.msra.mxu1 %v798_v56  ;;  %1505 = vmatprep.subr.mxu0 %v629_v48  ;;  %v175_v47 = vld [vmem:[%s4713_s1 + $0x4f8] sm:$0xff]  ;;  %v738_v56 = vld [vmem:[%s4713_s1 + $0x1690] sm:$0xff] }
 0x134   :  { %1574 = vmatprep.subr.mxu1 %v794_v49  ;;  %1506 = vmatpush2.msra.mxu0 %v628_v50  ;;  %v95_v48 = vld [vmem:[%s4713_s1 + $0x278] sm:$0xff]  ;;  %v170_v49 = vld [vmem:[%s4713_s1 + $0x4d0] sm:$0xff] }
 0x135   :  { %1575 = vmatpush2.msra.mxu1 %v793_v51  ;;  %1507 = vmatprep.subr.mxu0 %v624_v52  ;;  %v335_v50 = vld [vmem:[%s4713_s1 + $0x9f8] sm:$0xff]  ;;  %v90_v51 = vld [vmem:[%s4713_s1 + $0x250] sm:$0xff] }
 0x136   :  { %1576 = vmatprep.subr.mxu1 %v789_v54  ;;  %1508 = vmatpush2.msra.mxu0 %v623_v55  ;;  %v255_v52 = vld [vmem:[%s4713_s1 + $0x778] sm:$0xff]  ;;  %v165_v54 = vld [vmem:[%s4713_s1 + $0x4a8] sm:$0xff]  ;;  %v330_v55 = vld [vmem:[%s4713_s1 + $0x9d0] sm:$0xff] }
 0x137   :  { %1577 = vmatpush2.msra.mxu1 %v788_v57  ;;  %1509 = vmatprep.subr.mxu0 %v619_v58  ;;  %v85_v57 = vld [vmem:[%s4713_s1 + $0x228] sm:$0xff]  ;;  %v250_v58 = vld [vmem:[%s4713_s1 + $0x750] sm:$0xff] }
 0x138   :  { %1578 = vmatprep.subr.mxu1 %v784_v60  ;;  %1510 = vmatpush2.msra.mxu0 %v618_v61  ;;  %v160_v60 = vld [vmem:[%s4713_s1 + $0x480] sm:$0xff]  ;;  %v325_v61 = vld [vmem:[%s4713_s1 + $0x9a8] sm:$0xff] }
 0x139   :  { %1579 = vmatpush2.msra.mxu1 %v783_v62  ;;  %1511 = vmatprep.subr.mxu0 %v614_v63  ;;  %v80_v62 = vld [vmem:[%s4713_s1 + $0x200] sm:$0xff]  ;;  %v245_v63 = vld [vmem:[%s4713_s1 + $0x728] sm:$0xff] }
 0x13a   :  { %1580 = vmatprep.subr.mxu1 %v779_v2  ;;  %1512 = vmatpush2.msra.mxu0 %v613_v4  ;;  %v155_v2 = vld [vmem:[%s4713_s1 + $0x458] sm:$0xff]  ;;  %v320_v4 = vld [vmem:[%s4713_s1 + $0x980] sm:$0xff] }
 0x13b   :  { %1581 = vmatpush2.msra.mxu1 %v778_v5  ;;  %1513 = vmatprep.subr.mxu0 %v609_v7  ;;  %v75_v5 = vld [vmem:[%s4713_s1 + $0x1d8] sm:$0xff]  ;;  %v240_v7 = vld [vmem:[%s4713_s1 + $0x700] sm:$0xff] }
 0x13c   :  { %1582 = vmatprep.subr.mxu1 %v774_v8  ;;  %1514 = vmatpush2.msra.mxu0 %v608_v9  ;;  %v150_v8 = vld [vmem:[%s4713_s1 + $0x430] sm:$0xff]  ;;  %v315_v9 = vld [vmem:[%s4713_s1 + $0x958] sm:$0xff] }
 0x13d   :  { %1583 = vmatpush2.msra.mxu1 %v773_v11  ;;  %1515 = vmatprep.subr.mxu0 %v604_v13  ;;  %v70_v11 = vld [vmem:[%s4713_s1 + $0x1b0] sm:$0xff]  ;;  %v235_v13 = vld [vmem:[%s4713_s1 + $0x6d8] sm:$0xff] }
 0x13e   :  { %1584 = vmatprep.subr.mxu1 %v769_v14  ;;  %1516 = vmatpush2.msra.mxu0 %v603_v17  ;;  %v145_v14 = vld [vmem:[%s4713_s1 + $0x408] sm:$0xff]  ;;  %v310_v17 = vld [vmem:[%s4713_s1 + $0x930] sm:$0xff] }
 0x13f   :  { %1585 = vmatpush2.msra.mxu1 %v768_v18  ;;  %1517 = vmatprep.subr.mxu0 %v599_v19  ;;  %v65_v18 = vld [vmem:[%s4713_s1 + $0x188] sm:$0xff]  ;;  %v230_v19 = vld [vmem:[%s4713_s1 + $0x6b0] sm:$0xff] }
 0x140   :  { %1586 = vmatprep.subr.mxu1 %v764_v20  ;;  %1518 = vmatpush2.msra.mxu0 %v598_v21  ;;  %v140_v20 = vld [vmem:[%s4713_s1 + $0x3e0] sm:$0xff]  ;;  %v305_v21 = vld [vmem:[%s4713_s1 + $0x908] sm:$0xff] }
 0x141   :  { %1587 = vmatpush2.msra.mxu1 %v763_v22  ;;  %1519 = vmatprep.subr.mxu0 %v594_v23  ;;  %v60_v22 = vld [vmem:[%s4713_s1 + $0x160] sm:$0xff]  ;;  %v225_v23 = vld [vmem:[%s4713_s1 + $0x688] sm:$0xff] }
 0x142   :  { %1588 = vmatprep.subr.mxu1 %v759_v24  ;;  %1520 = vmatpush2.msra.mxu0 %v593_v26  ;;  %v135_v24 = vld [vmem:[%s4713_s1 + $0x3b8] sm:$0xff]  ;;  %v300_v26 = vld [vmem:[%s4713_s1 + $0x8e0] sm:$0xff] }
 0x143   :  { %1589 = vmatpush2.msra.mxu1 %v758_v27  ;;  %1521 = vmatprep.subr.mxu0 %v589_v28  ;;  %v55_v27 = vld [vmem:[%s4713_s1 + $0x138] sm:$0xff]  ;;  %v220_v28 = vld [vmem:[%s4713_s1 + $0x660] sm:$0xff] }
 0x144   :  { %1590 = vmatprep.subr.mxu1 %v754_v29  ;;  %1522 = vmatpush2.msra.mxu0 %v588_v30  ;;  %v130_v29 = vld [vmem:[%s4713_s1 + $0x390] sm:$0xff]  ;;  %v295_v30 = vld [vmem:[%s4713_s1 + $0x8b8] sm:$0xff] }
 0x145   :  { %1591 = vmatpush2.msra.mxu1 %v753_v31  ;;  %1523 = vmatprep.subr.mxu0 %v584_v32  ;;  %v50_v31 = vld [vmem:[%s4713_s1 + $0x110] sm:$0xff]  ;;  %v215_v32 = vld [vmem:[%s4713_s1 + $0x638] sm:$0xff] }
 0x146   :  { %1592 = vmatprep.subr.mxu1 %v749_v34  ;;  %1524 = vmatpush2.msra.mxu0 %v583_v36  ;;  %v125_v34 = vld [vmem:[%s4713_s1 + $0x368] sm:$0xff]  ;;  %v290_v36 = vld [vmem:[%s4713_s1 + $0x890] sm:$0xff] }
 0x147   :  { %1593 = vmatpush2.msra.mxu1 %v748_v38  ;;  %1525 = vmatprep.subr.mxu0 %v579_v39  ;;  %v45_v38 = vld [vmem:[%s4713_s1 + $0xe8] sm:$0xff]  ;;  %v210_v39 = vld [vmem:[%s4713_s1 + $0x610] sm:$0xff] }
 0x148   :  { %1594 = vmatprep.subr.mxu1 %v744_v40  ;;  %1526 = vmatpush2.msra.mxu0 %v578_v42  ;;  %v120_v40 = vld [vmem:[%s4713_s1 + $0x340] sm:$0xff]  ;;  %v285_v42 = vld [vmem:[%s4713_s1 + $0x868] sm:$0xff] }
 0x149   :  { %1527 = vmatprep.mubr.f32.mxu0 %v3028_v41  ;;  %1595 = vmatpush2.msra.mxu1 %v743_v45  ;;  %v40_v45 = vld [vmem:[%s4713_s1 + $0xc0] sm:$0xff] }
 0x14a   :  { %1528 = vmatmul.mubr.f32.vlgmr.msra.gmra.mxu0 %v3035_v43  ;;  %1596 = vmatprep.subr.mxu1 %v739_v46  ;;  %v205_v46 = vld [vmem:[%s4713_s1 + $0x5e8] sm:$0xff] }
 0x14b   :  { %2009 = vmatprep.subr.mxu0 %v175_v47  ;;  %1597 = vmatpush2.msra.mxu1 %v738_v56  ;;  %v115_v47 = vld [vmem:[%s4713_s1 + $0x318] sm:$0xff]  ;;  %v280_v56 = vld [vmem:[%s4713_s1 + $0x840] sm:$0xff] }
 0x14c   :  { %1598 = vmatprep.mubr.f32.mxu1 %v3413_v15  ;;  %2010 = vmatpush3.msra.mxu0 %v95_v48  ;;  %v35_v48 = vld [vmem:[%s4713_s1 + $0x98] sm:$0xff] }
 0x14d   :  { %1599 = vmatmul.mubr.f32.vlgmr.msra.gmra.mxu1 %v3416_v16  ;;  %2011 = vmatprep.subr.mxu0 %v170_v49  ;;  %v200_v49 = vld [vmem:[%s4713_s1 + $0x5c0] sm:$0xff] }
 0x14e   :  { %2044 = vmatprep.subr.mxu1 %v335_v50  ;;  %2012 = vmatpush3.msra.mxu0 %v90_v51  ;;  %v110_v50 = vld [vmem:[%s4713_s1 + $0x2f0] sm:$0xff]  ;;  %v275_v51 = vld [vmem:[%s4713_s1 + $0x818] sm:$0xff] }
 0x14f   :  { %2045 = vmatpush3.msra.mxu1 %v255_v52  ;;  %2013 = vmatprep.subr.mxu0 %v165_v54  ;;  %v30_v52 = vld [vmem:[%s4713_s1 + $0x70] sm:$0xff]  ;;  %v195_v54 = vld [vmem:[%s4713_s1 + $0x598] sm:$0xff] }
 0x150   :  { %2046 = vmatprep.subr.mxu1 %v330_v55  ;;  %2014 = vmatpush3.msra.mxu0 %v85_v57  ;;  %v105_v55 = vld [vmem:[%s4713_s1 + $0x2c8] sm:$0xff]  ;;  %v270_v57 = vld [vmem:[%s4713_s1 + $0x7f0] sm:$0xff] }
 0x151   :  { %2047 = vmatpush3.msra.mxu1 %v250_v58  ;;  %2015 = vmatprep.subr.mxu0 %v160_v60  ;;  %v25_v58 = vld [vmem:[%s4713_s1 + $0x48] sm:$0xff]  ;;  %v190_v60 = vld [vmem:[%s4713_s1 + $0x570] sm:$0xff] }
 0x152   :  { %2048 = vmatprep.subr.mxu1 %v325_v61  ;;  %2016 = vmatpush3.msra.mxu0 %v80_v62  ;;  %v100_v61 = vld [vmem:[%s4713_s1 + $0x2a0] sm:$0xff]  ;;  %v265_v62 = vld [vmem:[%s4713_s1 + $0x7c8] sm:$0xff] }
 0x153   :  { %2049 = vmatpush3.msra.mxu1 %v245_v63  ;;  %2017 = vmatprep.subr.mxu0 %v155_v2  ;;  %v20_v63 = vld [vmem:[%s4713_s1 + $0x20] sm:$0xff]  ;;  %v185_v2 = vld [vmem:[%s4713_s1 + $0x548] sm:$0xff] }
 0x154   :  { %2050 = vmatprep.subr.mxu1 %v320_v4  ;;  %2018 = vmatpush3.msra.mxu0 %v75_v5  ;;  %v260_v4 = vld [vmem:[%s4713_s1 + $0x7a0] sm:$0xff]  ;;  %v495_v5 = vld [vmem:[%s4713_s1 + $0xef8] sm:$0xff] }
 0x155   :  { %2051 = vmatpush3.msra.mxu1 %v240_v7  ;;  %2019 = vmatprep.subr.mxu0 %v150_v8  ;;  %v180_v7 = vld [vmem:[%s4713_s1 + $0x520] sm:$0xff]  ;;  %v415_v8 = vld [vmem:[%s4713_s1 + $0xc78] sm:$0xff] }
 0x156   :  { %2052 = vmatprep.subr.mxu1 %v315_v9  ;;  %2020 = vmatpush3.msra.mxu0 %v70_v11  ;;  %v490_v9 = vld [vmem:[%s4713_s1 + $0xed0] sm:$0xff]  ;;  %v655_v11 = vld [vmem:[%s4713_s1 + $0x13f8] sm:$0xff] }
 0x157   :  { %2053 = vmatpush3.msra.mxu1 %v235_v13  ;;  %2021 = vmatprep.subr.mxu0 %v145_v14  ;;  %v485_v13 = vld [vmem:[%s4713_s1 + $0xea8] sm:$0xff]  ;;  %v650_v14 = vld [vmem:[%s4713_s1 + $0x13d0] sm:$0xff] }
 0x158   :  { %2054 = vmatprep.subr.mxu1 %v310_v17  ;;  %2022 = vmatpush3.msra.mxu0 %v65_v18  ;;  %v570_v17 = vld [vmem:[%s4713_s1 + $0x1150] sm:$0xff]  ;;  %v480_v18 = vld [vmem:[%s4713_s1 + $0xe80] sm:$0xff] }
 0x159   :  { %2055 = vmatpush3.msra.mxu1 %v230_v19  ;;  %2023 = vmatprep.subr.mxu0 %v140_v20  ;;  %v400_v19 = vld [vmem:[%s4713_s1 + $0xc00] sm:$0xff]  ;;  %v565_v20 = vld [vmem:[%s4713_s1 + $0x1128] sm:$0xff] }
 0x15a   :  { %2056 = vmatprep.subr.mxu1 %v305_v21  ;;  %2024 = vmatpush3.msra.mxu0 %v60_v22  ;;  %v475_v21 = vld [vmem:[%s4713_s1 + $0xe58] sm:$0xff]  ;;  %v640_v22 = vld [vmem:[%s4713_s1 + $0x1380] sm:$0xff] }
 0x15b   :  { %2057 = vmatpush3.msra.mxu1 %v225_v23  ;;  %2025 = vmatprep.subr.mxu0 %v135_v24  ;;  %v395_v23 = vld [vmem:[%s4713_s1 + $0xbd8] sm:$0xff]  ;;  %v560_v24 = vld [vmem:[%s4713_s1 + $0x1100] sm:$0xff] }
 0x15c   :  { %2058 = vmatprep.subr.mxu1 %v300_v26  ;;  %2026 = vmatpush3.msra.mxu0 %v55_v27  ;;  %v470_v26 = vld [vmem:[%s4713_s1 + $0xe30] sm:$0xff]  ;;  %v635_v27 = vld [vmem:[%s4713_s1 + $0x1358] sm:$0xff] }
 0x15d   :  { %2059 = vmatpush3.msra.mxu1 %v220_v28  ;;  %2027 = vmatprep.subr.mxu0 %v130_v29  ;;  %v390_v28 = vld [vmem:[%s4713_s1 + $0xbb0] sm:$0xff]  ;;  %v555_v29 = vld [vmem:[%s4713_s1 + $0x10d8] sm:$0xff] }
 0x15e   :  { %2060 = vmatprep.subr.mxu1 %v295_v30  ;;  %2028 = vmatpush3.msra.mxu0 %v50_v31  ;;  %v465_v30 = vld [vmem:[%s4713_s1 + $0xe08] sm:$0xff]  ;;  %v630_v31 = vld [vmem:[%s4713_s1 + $0x1330] sm:$0xff] }
 0x15f   :  { %2061 = vmatpush3.msra.mxu1 %v215_v32  ;;  %2029 = vmatprep.subr.mxu0 %v125_v34  ;;  %v385_v32 = vld [vmem:[%s4713_s1 + $0xb88] sm:$0xff]  ;;  %v550_v34 = vld [vmem:[%s4713_s1 + $0x10b0] sm:$0xff] }
 0x160   :  { %2062 = vmatprep.subr.mxu1 %v290_v36  ;;  %2030 = vmatpush3.msra.mxu0 %v45_v38  ;;  %v460_v36 = vld [vmem:[%s4713_s1 + $0xde0] sm:$0xff]  ;;  %v625_v38 = vld [vmem:[%s4713_s1 + $0x1308] sm:$0xff] }
 0x161   :  { %2063 = vmatpush3.msra.mxu1 %v210_v39  ;;  %2031 = vmatprep.subr.mxu0 %v120_v40  ;;  %v380_v39 = vld [vmem:[%s4713_s1 + $0xb60] sm:$0xff]  ;;  %v545_v40 = vld [vmem:[%s4713_s1 + $0x1088] sm:$0xff] }
 0x162   :  { %2064 = vmatprep.subr.mxu1 %v285_v42  ;;  %2032 = vmatpush3.msra.mxu0 %v40_v45  ;;  %v455_v42 = vld [vmem:[%s4713_s1 + $0xdb8] sm:$0xff]  ;;  %v620_v45 = vld [vmem:[%s4713_s1 + $0x12e0] sm:$0xff] }
 0x163   :  { %2065 = vmatpush3.msra.mxu1 %v205_v46  ;;  %2033 = vmatprep.subr.mxu0 %v115_v47  ;;  %v375_v46 = vld [vmem:[%s4713_s1 + $0xb38] sm:$0xff]  ;;  %v540_v47 = vld [vmem:[%s4713_s1 + $0x1060] sm:$0xff] }
 0x164   :  { %2066 = vmatprep.subr.mxu1 %v280_v56  ;;  %2034 = vmatpush3.msra.mxu0 %v35_v48  ;;  %v450_v56 = vld [vmem:[%s4713_s1 + $0xd90] sm:$0xff]  ;;  %v615_v48 = vld [vmem:[%s4713_s1 + $0x12b8] sm:$0xff] }
 0x165   :  { %2067 = vmatpush3.msra.mxu1 %v200_v49  ;;  %2035 = vmatprep.subr.mxu0 %v110_v50  ;;  %v370_v49 = vld [vmem:[%s4713_s1 + $0xb10] sm:$0xff]  ;;  %v535_v50 = vld [vmem:[%s4713_s1 + $0x1038] sm:$0xff] }
 0x166   :  { %2068 = vmatprep.subr.mxu1 %v275_v51  ;;  %2036 = vmatpush3.msra.mxu0 %v30_v52  ;;  %v445_v51 = vld [vmem:[%s4713_s1 + $0xd68] sm:$0xff]  ;;  %v610_v52 = vld [vmem:[%s4713_s1 + $0x1290] sm:$0xff] }
 0x167   :  { %2069 = vmatpush3.msra.mxu1 %v195_v54  ;;  %2037 = vmatprep.subr.mxu0 %v105_v55  ;;  %v365_v54 = vld [vmem:[%s4713_s1 + $0xae8] sm:$0xff]  ;;  %v530_v55 = vld [vmem:[%s4713_s1 + $0x1010] sm:$0xff] }
 0x168   :  { %2070 = vmatprep.subr.mxu1 %v270_v57  ;;  %2038 = vmatpush3.msra.mxu0 %v25_v58  ;;  %v440_v57 = vld [vmem:[%s4713_s1 + $0xd40] sm:$0xff]  ;;  %v605_v58 = vld [vmem:[%s4713_s1 + $0x1268] sm:$0xff] }
 0x169   :  { %2071 = vmatpush3.msra.mxu1 %v190_v60  ;;  %2039 = vmatprep.subr.mxu0 %v100_v61  ;;  %v360_v60 = vld [vmem:[%s4713_s1 + $0xac0] sm:$0xff]  ;;  %v525_v61 = vld [vmem:[%s4713_s1 + $0xfe8] sm:$0xff] }
 0x16a   :  { %2072 = vmatprep.subr.mxu1 %v265_v62  ;;  %2040 = vmatpush3.msra.mxu0 %v20_v63  ;;  %v435_v62 = vld [vmem:[%s4713_s1 + $0xd18] sm:$0xff]  ;;  %v600_v63 = vld [vmem:[%s4713_s1 + $0x1240] sm:$0xff] }
 0x16b   :  { %1669 = vmatprep.mubr.f32.mxu0 %v2591_v0  ;;  %2073 = vmatpush3.msra.mxu1 %v185_v2  ;;  %v410_v0 = vld [vmem:[%s4713_s1 + $0xc50] sm:$0xff]  ;;  %v355_v2 = vld [vmem:[%s4713_s1 + $0xa98] sm:$0xff] }
 0x16c   :  { %1670 = vmatmul.mubr.f32.vlgmr.msra.gmra.mxu0 %v2606_v6  ;;  %2074 = vmatprep.subr.mxu1 %v260_v4  ;;  %v575_v6 = vld [vmem:[%s4713_s1 + $0x1178] sm:$0xff]  ;;  %v520_v4 = vld [vmem:[%s4713_s1 + $0xfc0] sm:$0xff] }
 0x16d   :  { %2079 = vmatprep.subr.mxu0 %v495_v5  ;;  %2075 = vmatpush3.msra.mxu1 %v180_v7  ;;  %v430_v5 = vld [vmem:[%s4713_s1 + $0xcf0] sm:$0xff]  ;;  %v595_v7 = vld [vmem:[%s4713_s1 + $0x1218] sm:$0xff] }
 0x16e   :  { %1739 = vmatprep.mubr.f32.mxu1 %v2621_v10  ;;  %2080 = vmatpush3.msra.mxu0 %v415_v8  ;;  %v405_v10 = vld [vmem:[%s4713_s1 + $0xc28] sm:$0xff]  ;;  %v350_v8 = vld [vmem:[%s4713_s1 + $0xa70] sm:$0xff] }
 0x16f   :  { %1740 = vmatmul.mubr.f32.vlgmr.msra.gmra.mxu1 %v2629_v12  ;;  %2081 = vmatprep.subr.mxu0 %v490_v9  ;;  %v645_v12 = vld [vmem:[%s4713_s1 + $0x13a8] sm:$0xff]  ;;  %v515_v9 = vld [vmem:[%s4713_s1 + $0xf98] sm:$0xff] }
 0x170   :  { %2114 = vmatprep.subr.mxu1 %v655_v11  ;;  %2082 = vmatpush3.msra.mxu0 %v410_v0  ;;  %v425_v11 = vld [vmem:[%s4713_s1 + $0xcc8] sm:$0xff]  ;;  %v590_v0 = vld [vmem:[%s4713_s1 + $0x11f0] sm:$0xff] }
 0x171   :  { %2115 = vmatpush3.msra.mxu1 %v575_v6  ;;  %2083 = vmatprep.subr.mxu0 %v485_v13  ;;  %v345_v6 = vld [vmem:[%s4713_s1 + $0xa48] sm:$0xff]  ;;  %v510_v13 = vld [vmem:[%s4713_s1 + $0xf70] sm:$0xff] }
 0x172   :  { %2116 = vmatprep.subr.mxu1 %v650_v14  ;;  %2084 = vmatpush3.msra.mxu0 %v405_v10  ;;  %v420_v14 = vld [vmem:[%s4713_s1 + $0xca0] sm:$0xff]  ;;  %v585_v10 = vld [vmem:[%s4713_s1 + $0x11c8] sm:$0xff] }
 0x173   :  { %2117 = vmatpush3.msra.mxu1 %v570_v17  ;;  %2085 = vmatprep.subr.mxu0 %v480_v18  ;;  %v340_v17 = vld [vmem:[%s4713_s1 + $0xa20] sm:$0xff]  ;;  %v505_v18 = vld [vmem:[%s4713_s1 + $0xf48] sm:$0xff] }
 0x174   :  { %2118 = vmatprep.subr.mxu1 %v645_v12  ;;  %2086 = vmatpush3.msra.mxu0 %v400_v19  ;;  %v580_v12 = vld [vmem:[%s4713_s1 + $0x11a0] sm:$0xff]  ;;  %v815_v19 = vld [vmem:[%s4713_s1 + $0x18f8] sm:$0xff] }
 0x175   :  { %2119 = vmatpush3.msra.mxu1 %v565_v20  ;;  %2087 = vmatprep.subr.mxu0 %v475_v21  ;;  %v500_v20 = vld [vmem:[%s4713_s1 + $0xf20] sm:$0xff]  ;;  %v735_v21 = vld [vmem:[%s4713_s1 + $0x1678] sm:$0xff] }
 0x176   :  { %2120 = vmatprep.subr.mxu1 %v640_v22  ;;  %2088 = vmatpush3.msra.mxu0 %v395_v23  ;;  %v810_v22 = vld [vmem:[%s4713_s1 + $0x18d0] sm:$0xff] }
 0x177   :  { %2121 = vmatpush3.msra.mxu1 %v560_v24  ;;  %2089 = vmatprep.subr.mxu0 %v470_v26  ;;  %v730_v23 = vld [vmem:[%s4713_s1 + $0x1650] sm:$0xff]  ;;  %v800_v24 = vld [vmem:[%s4713_s1 + $0x1880] sm:$0xff]  ;;  %v715_v26 = vld [vmem:[%s4713_s1 + $0x15d8] sm:$0xff] }
 0x178   :  { %2122 = vmatprep.subr.mxu1 %v635_v27  ;;  %2090 = vmatpush3.msra.mxu0 %v390_v28  ;;  %v710_v27 = vld [vmem:[%s4713_s1 + $0x15b0] sm:$0xff]  ;;  %v785_v28 = vld [vmem:[%s4713_s1 + $0x1808] sm:$0xff] }
 0x179   :  { %2123 = vmatpush3.msra.mxu1 %v555_v29  ;;  %2091 = vmatprep.subr.mxu0 %v465_v30  ;;  %v705_v29 = vld [vmem:[%s4713_s1 + $0x1588] sm:$0xff]  ;;  %v780_v30 = vld [vmem:[%s4713_s1 + $0x17e0] sm:$0xff] }
 0x17a   :  { %2124 = vmatprep.subr.mxu1 %v630_v31  ;;  %2092 = vmatpush3.msra.mxu0 %v385_v32  ;;  %v700_v31 = vld [vmem:[%s4713_s1 + $0x1560] sm:$0xff]  ;;  %v775_v32 = vld [vmem:[%s4713_s1 + $0x17b8] sm:$0xff] }
 0x17b   :  { %2125 = vmatpush3.msra.mxu1 %v550_v34  ;;  %2093 = vmatprep.subr.mxu0 %v460_v36  ;;  %v695_v34 = vld [vmem:[%s4713_s1 + $0x1538] sm:$0xff]  ;;  %v770_v36 = vld [vmem:[%s4713_s1 + $0x1790] sm:$0xff] }
 0x17c   :  { %2126 = vmatprep.subr.mxu1 %v625_v38  ;;  %2094 = vmatpush3.msra.mxu0 %v380_v39  ;;  %v690_v38 = vld [vmem:[%s4713_s1 + $0x1510] sm:$0xff]  ;;  %v765_v39 = vld [vmem:[%s4713_s1 + $0x1768] sm:$0xff] }
 0x17d   :  { %2127 = vmatpush3.msra.mxu1 %v545_v40  ;;  %2095 = vmatprep.subr.mxu0 %v455_v42  ;;  %v685_v40 = vld [vmem:[%s4713_s1 + $0x14e8] sm:$0xff]  ;;  %v760_v42 = vld [vmem:[%s4713_s1 + $0x1740] sm:$0xff] }
 0x17e   :  { %2128 = vmatprep.subr.mxu1 %v620_v45  ;;  %2096 = vmatpush3.msra.mxu0 %v375_v46  ;;  %v680_v45 = vld [vmem:[%s4713_s1 + $0x14c0] sm:$0xff]  ;;  %v755_v46 = vld [vmem:[%s4713_s1 + $0x1718] sm:$0xff] }
 0x17f   :  { %2129 = vmatpush3.msra.mxu1 %v540_v47  ;;  %2097 = vmatprep.subr.mxu0 %v450_v56  ;;  %v675_v47 = vld [vmem:[%s4713_s1 + $0x1498] sm:$0xff]  ;;  %v750_v56 = vld [vmem:[%s4713_s1 + $0x16f0] sm:$0xff] }
 0x180   :  { %2130 = vmatprep.subr.mxu1 %v615_v48  ;;  %2098 = vmatpush3.msra.mxu0 %v370_v49  ;;  %v670_v48 = vld [vmem:[%s4713_s1 + $0x1470] sm:$0xff]  ;;  %v745_v49 = vld [vmem:[%s4713_s1 + $0x16c8] sm:$0xff] }
 0x181   :  { %2131 = vmatpush3.msra.mxu1 %v535_v50  ;;  %2099 = vmatprep.subr.mxu0 %v445_v51  ;;  %v665_v50 = vld [vmem:[%s4713_s1 + $0x1448] sm:$0xff]  ;;  %v740_v51 = vld [vmem:[%s4713_s1 + $0x16a0] sm:$0xff] }
 0x182   :  { %2132 = vmatprep.subr.mxu1 %v610_v52  ;;  %2100 = vmatpush3.msra.mxu0 %v365_v54  ;;  %v660_v52 = vld [vmem:[%s4713_s1 + $0x1420] sm:$0xff]  ;;  %v961_v54 = vpop.f32.mrf.mxu0 }
 0x183   :  { %2133 = vmatpush3.msra.mxu1 %v530_v55  ;;  %2101 = vmatprep.subr.mxu0 %v440_v57  ;;  %v1032_v57 = vpop.f32.mrf.mxu1 }
 0x184   :  { %2134 = vmatprep.subr.mxu1 %v605_v58  ;;  %2102 = vmatpush3.msra.mxu0 %v360_v60  ;;  %v963_v55 = vpop.f32.mrf.mxu0 }
 0x185   :  { %2135 = vmatpush3.msra.mxu1 %v525_v61  ;;  %2103 = vmatprep.subr.mxu0 %v435_v62  ;;  %v1034_v60 = vpop.f32.mrf.mxu1 }
 0x186   :  { %2136 = vmatprep.subr.mxu1 %v600_v63  ;;  %2104 = vmatpush3.msra.mxu0 %v355_v2  ;;  %v1103_v58 = vpop.f32.mrf.mxu0 }
 0x187   :  { %2137 = vmatpush3.msra.mxu1 %v520_v4  ;;  %2105 = vmatprep.subr.mxu0 %v430_v5  ;;  %v1174_v62 = vpop.f32.mrf.mxu1 }
 0x188   :  { %2138 = vmatprep.subr.mxu1 %v595_v7  ;;  %2106 = vmatpush3.msra.mxu0 %v350_v8  ;;  %v1105_v61 = vpop.f32.mrf.mxu0 }
 0x189   :  { %2139 = vmatpush3.msra.mxu1 %v515_v9  ;;  %2107 = vmatprep.subr.mxu0 %v425_v11  ;;  %v1176_v2 = vpop.f32.mrf.mxu1 }
 0x18a   :  { %2140 = vmatprep.subr.mxu1 %v590_v0  ;;  %2108 = vmatpush3.msra.mxu0 %v345_v6  ;;  %v1245_v63 = vpop.f32.mrf.mxu0  ;;  %v816_v0 = vld [vmem:[%s4715_s2] sm:$0x1f] }
 0x18b   :  { %2141 = vmatpush3.msra.mxu1 %v510_v13  ;;  %2109 = vmatprep.subr.mxu0 %v420_v14  ;;  %v1316_v5 = vpop.f32.mrf.mxu1  ;;  %v885_v6 = vrot.slane %v816_v0, %v833_v1  ;;  %v877_v13 = vrot.slane %v816_v0, %v2555_v53 }
 0x18c   :  { %2142 = vmatprep.subr.mxu1 %v585_v10  ;;  %2110 = vmatpush3.msra.mxu0 %v340_v17  ;;  %v1247_v4 = vpop.f32.mrf.mxu0  ;;  %v881_v10 = vrot.slane %v816_v0, %v829_v3  ;;  %v873_v17 = vrot.slane %v816_v0, %v2575_v59  ;;  %v889_v59 = vrot.slane %v816_v0, %v837_v25 }
 0x18d   :  { %1809 = vmatprep.mubr.f32.mxu0 %v3007_v33  ;;  %2143 = vmatpush3.msra.mxu1 %v505_v18  ;;  %v805_v33 = vld [vmem:[%s4713_s1 + $0x18a8] sm:$0xff]  ;;  %v1318_v8 = vpop.f32.mrf.mxu1 }
 0x18e   :  { %1810 = vmatmul.mubr.f32.vlgmr.msra.gmra.mxu0 %v3016_v37  ;;  %2144 = vmatprep.subr.mxu1 %v580_v12  ;;  %v725_v37 = vld [vmem:[%s4713_s1 + $0x1628] sm:$0xff] }
 0x18f   :  { %2149 = vmatprep.subr.mxu0 %v815_v19  ;;  %2145 = vmatpush3.msra.mxu1 %v500_v20  ;;  %v1319_v19 = vadd.f32 %v1318_v8, %v885_v6  ;;  %v964_v20 = vadd.f32 %v963_v55, %v877_v13 }
 0x190   :  { %1879 = vmatprep.mubr.f32.mxu1 %v3028_v41  ;;  %2150 = vmatpush3.msra.mxu0 %v735_v21  ;;  %v720_v41 = vld [vmem:[%s4713_s1 + $0x1600] sm:$0xff] }
 0x191   :  { %1880 = vmatmul.mubr.f32.vlgmr.msra.gmra.mxu1 %v3035_v43  ;;  %2151 = vmatprep.subr.mxu0 %v810_v22  ;;  %v795_v43 = vld [vmem:[%s4713_s1 + $0x1858] sm:$0xff]  ;;  %v1317_v22 = vadd.f32 %v1316_v5, %v881_v10 }
 0x192   :  { %2152 = vmatpush3.msra.mxu0 %v730_v23  ;;  %1949 = vmatprep.mubr.f32.mxu0 %v3413_v15  ;;  %v790_v15 = vld [vmem:[%s4713_s1 + $0x1830] sm:$0xff] }
 0x193   :  { %2153 = vmatprep.subr.mxu0 %v805_v33  ;;  %v962_v33 = vadd.f32 %v961_v54, %v873_v17 }
 0x194   :  { %2154 = vmatpush3.msra.mxu0 %v725_v37 }
 0x195   :  { %2155 = vmatprep.subr.mxu0 %v800_v24 }
 0x196   :  { %2156 = vmatpush3.msra.mxu0 %v720_v41  ;;  %v1035_v41 = vadd.f32 %v1034_v60, %v964_v20 }
 0x197   :  { %2157 = vmatprep.subr.mxu0 %v795_v43 }
 0x198   :  { %2158 = vmatpush3.msra.mxu0 %v715_v26  ;;  %v1033_v26 = vadd.f32 %v1032_v57, %v962_v33 }
 0x199   :  { %2159 = vmatprep.subr.mxu0 %v790_v15  ;;  %v1106_v15 = vadd.f32 %v1105_v61, %v1035_v41 }
 0x19a   :  { %2160 = vmatpush3.msra.mxu0 %v710_v27 }
 0x19b   :  { %2161 = vmatprep.subr.mxu0 %v785_v28 }
 0x19c   :  { %2162 = vmatpush3.msra.mxu0 %v705_v29 }
 0x19d   :  { %2163 = vmatprep.subr.mxu0 %v780_v30  ;;  %v2185_v30 = vmov 1966171168  }
 0x19e   :  { %2164 = vmatpush3.msra.mxu0 %v700_v31  ;;  %v1963_v31 = vunpack.c.l.s4 %v2185_v30 }
 0x19f   :  { %2165 = vmatprep.subr.mxu0 %v775_v32 }
 0x1a0   :  { %2166 = vmatpush3.msra.mxu0 %v695_v34  ;;  %v1104_v34 = vadd.f32 %v1103_v58, %v1033_v26 }
 0x1a1   :  { %2167 = vmatprep.subr.mxu0 %v770_v36 }
 0x1a2   :  { %2168 = vmatpush3.msra.mxu0 %v690_v38 }
 0x1a3   :  { %2169 = vmatprep.subr.mxu0 %v765_v39 }
 0x1a4   :  { %2170 = vmatpush3.msra.mxu0 %v685_v40  ;;  %v1177_v40 = vadd.f32 %v1176_v2, %v1106_v15 }
 0x1a5   :  { %2171 = vmatprep.subr.mxu0 %v760_v42 }
 0x1a6   :  { %2172 = vmatpush3.msra.mxu0 %v680_v45 }
 0x1a7   :  { %2173 = vmatprep.subr.mxu0 %v755_v46 }
 0x1a8   :  { %2174 = vmatpush3.msra.mxu0 %v675_v47  ;;  %v1964_v47 = vunpack.c.0.s8 %v1963_v31 }
 0x1a9   :  { %2175 = vmatprep.subr.mxu0 %v750_v56  ;;  %v1175_v56 = vadd.f32 %v1174_v62, %v1104_v34 }
 0x1aa   :  { %2176 = vmatpush3.msra.mxu0 %v670_v48  ;;  %v1248_v48 = vadd.f32 %v1247_v4, %v1177_v40  ;;  %v1967_v57 = vsub.s32 %v1964_v47, %v2528_v44 }
 0x1ab   :  { %2177 = vmatprep.subr.mxu0 %v745_v49 }
 0x1ac   :  { %2178 = vmatpush3.msra.mxu0 %v665_v50 }
 0x1ad   :  { %2179 = vmatprep.subr.mxu0 %v740_v51 }
 0x1ae   :  { %2180 = vmatpush3.msra.mxu0 %v660_v52  ;;  %v1246_v52 = vadd.f32 %v1245_v63, %v1175_v56 }
 0x1af   :  { %1950 = vmatmul.mubr.f32.vlgmr.msra.gmra.mxu0 %v3416_v16 }
 0x1b0   :  { %v1960_v55 = vcombine.low %v1246_v52, %v1248_v48 }
 0x1c8   :  { %v1387_v7 = vpop.f32.mrf.mxu0 }
 0x1c9   :  { %v1388_v24 = vadd.f32 %v1387_v7, %v1317_v22  ;;  %v1968_v7 = vrot.slane %v1960_v55, %v1967_v57 }
 0x1ca   :  { %v1389_v9 = vpop.f32.mrf.mxu0 }
 0x1cb   :  { %v1458_v11 = vpop.f32.mrf.mxu1  ;;  %v1390_v23 = vadd.f32 %v1389_v9, %v1319_v19 }
 0x1cc   :  { %v1459_v3 = vadd.f32 %v1458_v11, %v1388_v24 }
 0x1cd   :  { %v1460_v14 = vpop.f32.mrf.mxu1 }
 0x1ce   :  { %v1461_v53 = vadd.f32 %v1460_v14, %v1390_v23 }
 0x20a   :  { %v1529_v16 = vpop.f32.mrf.mxu0 }
 0x20b   :  { %v1530_v36 = vadd.f32 %v1529_v16, %v1459_v3 }
 0x20c   :  { %v1531_v18 = vpop.f32.mrf.mxu0 }
 0x20d   :  { %v1600_v12 = vpop.f32.mrf.mxu1  ;;  %v1532_v28 = vadd.f32 %v1531_v18, %v1461_v53 }
 0x20e   :  { %v1601_v49 = vadd.f32 %v1600_v12, %v1530_v36 }
 0x20f   :  { %v1602_v37 = vpop.f32.mrf.mxu1 }
 0x210   :  { %v1603_v42 = vadd.f32 %v1602_v37, %v1532_v28 }
 0x212   :  { %v1961_v25 = vcombine.low %v1601_v49, %v1603_v42 }
 0x214   :  { %v1975_v5 = vrot.slane %v1961_v25, %v1967_v57 }
 0x216   :  { %v1983_v11 = vcombine.low %v1968_v7, %v1975_v5 }
 0x218   :  { %v1990_v0 = vrot.slane %v1983_v11, %v1967_v57 }
 0x22c   :  { %v2041_v21 = vpop.f32.mrf.mxu0 }
 0x22e   :  { %v2042_v1 = vpop.f32.mrf.mxu0 }
 0x22f   :  { %v2076_v43 = vpop.f32.mrf.mxu1  ;;  %v2043_v29 = vadd.f32 %v2042_v1, %v2041_v21 }
 0x231   :  { %v2077_v32 = vpop.f32.mrf.mxu1  ;;  %v1672_v45 = vadd.f32 %v2043_v29, %v889_v59 }
 0x232   :  { %v2078_v46 = vadd.f32 %v2077_v32, %v2076_v43 }
 0x234   :  { %v1742_v54 = vadd.f32 %v2078_v46, %v1672_v45 }
 0x24e   :  { %v2111_v27 = vpop.f32.mrf.mxu0 }
 0x250   :  { %v2112_v38 = vpop.f32.mrf.mxu0 }
 0x251   :  { %v2146_v39 = vpop.f32.mrf.mxu1  ;;  %v2113_v50 = vadd.f32 %v2112_v38, %v2111_v27 }
 0x253   :  { %v2147_v51 = vpop.f32.mrf.mxu1  ;;  %v1812_v58 = vadd.f32 %v2113_v50, %v1742_v54 }
 0x254   :  { %v2148_v60 = vadd.f32 %v2147_v51, %v2146_v39 }
 0x256   :  { %v1882_v8 = vadd.f32 %v2148_v60, %v1812_v58 }
 0x26f   :  { %v2181_v61 = vpop.f32.mrf.mxu0 }
 0x271   :  { %v2182_v2 = vpop.f32.mrf.mxu0 }
 0x272   :  { %v2183_v9 = vadd.f32 %v2182_v2, %v2181_v61 }
 0x274   :  { %v1952_v62 = vadd.f32 %v2183_v9, %v1882_v8 }
 0x276   :  { %v1982_v4 = vrot.slane %v1952_v62, %v1967_v57 }
 0x278   :  { %v1997_v16 = vrot.slane %v1982_v4, %v1967_v57 }
 0x27a   :  { %v1998_v63 = vcombine.low %v1990_v0, %v1997_v16 }
 0x27c   :  { %2004 = vst.msk [vmem:[%s4716_s3] sm:$0x1f] %vm2002_vm0, %v1998_v63 }

</bundles_post_ra>
